<compile_context>
chip_gen: v5e
topology: v5e:2x2
jax: 0.10.0
libtpu: 0.0.40
codegen_flags: <defaults>
</compile_context>

<pallas_src>
import jax
import jax.numpy as jnp
from jax.experimental import pallas as pl
from jax.experimental.pallas import tpu as pltpu

_LANE = 128
_BN_EPS = 1e-5


def _round_up(x, m):
    return (x + m - 1) // m * m


def _pick_row_tile(rows):
    if rows <= 1024:
        return rows
    for rt in (1024, 512, 256, 128, 64, 32, 16, 8):
        if rows % rt == 0:
            return rt
    return rows


def _cparams():
    return pltpu.CompilerParams(
        dimension_semantics=("parallel",),
        vmem_limit_bytes=48 * 1024 * 1024,   # stays under v7x's 64 MiB VMEM
    )


# ----------------------------------------------------------------------------
# In-kernel 3x3 conv (pad=1) of one image + per-channel partial BN statistics.
# ----------------------------------------------------------------------------
def _conv3x3_taps(xsrc, xpad_ref, w_ref, y_ref, st_ref):
    """
    xsrc     : (Hp, Wp, Cin) bf16 value (already pooled / BN+ReLU'd)
    xpad_ref : VMEM scratch (Hp+2, Wp+2, Cin) bf16 -- zero-padded halo
    w_ref    : (9, Cin, Cout_pad) bf16 weights, tap-major
    y_ref    : (1, Hp, Wp, Cout_pad) bf16 output block (raw conv result)
    st_ref   : (1, 2, Cout_pad) f32 output block: [sum, sum_sq] over pixels
    """
    Hp, Wp, _ = xsrc.shape
    # zero-padded halo in VMEM (padding=1 for the 3x3 conv)
    xpad_ref[...] = jnp.zeros_like(xpad_ref)
    xpad_ref[1:Hp + 1, 1:Wp + 1, :] = xsrc
    # nine shifted MXU matmuls accumulated in f32 (in-VMEM "im2col", no HBM 9x)
    acc = None
    for t in range(9):
        dy, dx = divmod(t, 3)
        lhs = xpad_ref[dy:dy + Hp, dx:dx + Wp, :].reshape(Hp * Wp, -1)
        d = jnp.dot(lhs, w_ref[t], preferred_element_type=jnp.float32)
        acc = d if acc is None else acc + d
    # per-image partial BatchNorm stats (reduced across images in JAX)
    st_ref[0, 0:1, :] = jnp.sum(acc, axis=0, keepdims=True)
    st_ref[0, 1:2, :] = jnp.sum(acc * acc, axis=0, keepdims=True)
    y_ref[0] = acc.reshape(Hp, Wp, acc.shape[-1]).astype(y_ref.dtype)


# ----------------------------------------------------------------------------
# Kernel A: fused 2x2 max-pool + conv1 + BN1 partial stats (one image / step)
# ----------------------------------------------------------------------------
def _pool_conv1_kernel(x_ref, w_ref, y_ref, st_ref, xpad_ref):
    # x_ref block: (1, 4, Hp, Wp, Cin) -- the 4 stride-2 pooling quadrants
    pooled = jnp.maximum(jnp.maximum(x_ref[0, 0], x_ref[0, 1]),
                         jnp.maximum(x_ref[0, 2], x_ref[0, 3]))
    _conv3x3_taps(pooled, xpad_ref, w_ref, y_ref, st_ref)


# ----------------------------------------------------------------------------
# Kernel B: BN1 affine + ReLU fused into conv2 + BN2 partial stats
# ----------------------------------------------------------------------------
def _bn_relu_conv2_kernel(y1_ref, sc_ref, of_ref, w_ref, y_ref, st_ref, xpad_ref):
    sc = sc_ref[...].reshape(1, 1, -1)
    of = of_ref[...].reshape(1, 1, -1)
    a = jnp.maximum(y1_ref[0].astype(jnp.float32) * sc + of, 0.0)
    _conv3x3_taps(a.astype(jnp.bfloat16), xpad_ref, w_ref, y_ref, st_ref)


# ----------------------------------------------------------------------------
# Kernel C: final BN2 + ReLU, row-tiled, lane-dense (channels padded to 128)
# ----------------------------------------------------------------------------
def _bn_relu_kernel(y_ref, sc_ref, of_ref, o_ref):
    y = y_ref[...].astype(jnp.float32)
    o_ref[...] = jnp.maximum(y * sc_ref[...] + of_ref[...], 0.0)


# ----------------------------------------------------------------------------
# Wrapper helpers (tiny JAX glue)
# ----------------------------------------------------------------------------
def _prep_weight(w_oihw, cin_pad, cout_pad):
    """(Cout, Cin, 3, 3) -> (9, cin_pad, cout_pad) bf16, tap-major, zero-padded."""
    cout, cin = w_oihw.shape[0], w_oihw.shape[1]
    w = jnp.transpose(w_oihw, (2, 3, 1, 0)).reshape(9, cin, cout)
    w = jnp.pad(w, ((0, 0), (0, cin_pad - cin), (0, cout_pad - cout)))
    return w.astype(jnp.bfloat16)


def _bn_scale_offset(stats, gamma, beta, c_pad, count):
    """Training-mode BN scale/offset from per-image partial sums (biased var)."""
    c = gamma.shape[0]
    gamma_p = jnp.pad(gamma, (0, c_pad - c))
    beta_p = jnp.pad(beta, (0, c_pad - c))
    s = jnp.sum(stats[:, 0, :], axis=0)
    ss = jnp.sum(stats[:, 1, :], axis=0)
    mean = s / count
    var = jnp.maximum(ss / count - mean * mean, 0.0)
    scale = gamma_p * jax.lax.rsqrt(var + _BN_EPS)
    offset = beta_p - mean * scale
    return (scale.reshape(1, c_pad).astype(jnp.float32),
            offset.reshape(1, c_pad).astype(jnp.float32))


# ----------------------------------------------------------------------------
# Down.forward : NCHW in -> NCHW out
# ----------------------------------------------------------------------------
@jax.jit
def down_forward(x_nchw, params):
    N, Cin, H, W = x_nchw.shape
    assert H % 2 == 0 and W % 2 == 0, "MaxPool2d(2) path assumes even H, W"
    Hp, Wp = H // 2, W // 2
    Cmid = params["conv1_w"].shape[0]
    Cout = params["conv2_w"].shape[0]
    Cmid_p = _round_up(Cmid, _LANE)
    Cout_p = _round_up(Cout, _LANE)
    count = N * Hp * Wp

    # Single layout transpose: quadrant-major NHWC (pool fuses into conv1).
    xq = x_nchw.reshape(N, Cin, Hp, 2, Wp, 2)
    xq = jnp.transpose(xq, (0, 3, 5, 2, 4, 1)).reshape(N, 4, Hp, Wp, Cin)
    xq = xq.astype(jnp.bfloat16)

    w1 = _prep_weight(params["conv1_w"], Cin, Cmid_p)
    w2 = _prep_weight(params["conv2_w"], Cmid_p, Cout_p)
    # conv biases intentionally unused: cancelled by the batch-mean subtraction.

    # ---- stage 1: maxpool + conv1 + per-image BN1 partial stats ----
    y1, st1 = pl.pallas_call(
        _pool_conv1_kernel,
        out_shape=(jax.ShapeDtypeStruct((N, Hp, Wp, Cmid_p), jnp.bfloat16),
                   jax.ShapeDtypeStruct((N, 2, Cmid_p), jnp.float32)),
        grid=(N,),
        in_specs=[
            pl.BlockSpec((1, 4, Hp, Wp, Cin), lambda n: (n, 0, 0, 0, 0)),
            pl.BlockSpec((9, Cin, Cmid_p), lambda n: (0, 0, 0)),
        ],
        out_specs=(
            pl.BlockSpec((1, Hp, Wp, Cmid_p), lambda n: (n, 0, 0, 0)),
            pl.BlockSpec((1, 2, Cmid_p), lambda n: (n, 0, 0)),
        ),
        scratch_shapes=[pltpu.VMEM((Hp + 2, Wp + 2, Cin), jnp.bfloat16)],
        compiler_params=_cparams(),
    )(xq, w1)
    sc1, of1 = _bn_scale_offset(st1, params["bn1_gamma"], params["bn1_beta"],
                                Cmid_p, count)

    # ---- stage 2: BN1 + ReLU fused into conv2 + per-image BN2 partial stats ----
    y2, st2 = pl.pallas_call(
        _bn_relu_conv2_kernel,
        out_shape=(jax.ShapeDtypeStruct((N, Hp, Wp, Cout_p), jnp.bfloat16),
                   jax.ShapeDtypeStruct((N, 2, Cout_p), jnp.float32)),
        grid=(N,),
        in_specs=[
            pl.BlockSpec((1, Hp, Wp, Cmid_p), lambda n: (n, 0, 0, 0)),
            pl.BlockSpec((1, Cmid_p), lambda n: (0, 0)),
            pl.BlockSpec((1, Cmid_p), lambda n: (0, 0)),
            pl.BlockSpec((9, Cmid_p, Cout_p), lambda n: (0, 0, 0)),
        ],
        out_specs=(
            pl.BlockSpec((1, Hp, Wp, Cout_p), lambda n: (n, 0, 0, 0)),
            pl.BlockSpec((1, 2, Cout_p), lambda n: (n, 0, 0)),
        ),
        scratch_shapes=[pltpu.VMEM((Hp + 2, Wp + 2, Cmid_p), jnp.bfloat16)],
        compiler_params=_cparams(),
    )(y1, sc1, of1, w2)
    sc2, of2 = _bn_scale_offset(st2, params["bn2_gamma"], params["bn2_beta"],
                                Cout_p, count)

    # ---- stage 3: BN2 + ReLU, row-tiled over all pixels ----
    R = N * Hp * Wp
    rt = _pick_row_tile(R)
    out = pl.pallas_call(
        _bn_relu_kernel,
        out_shape=jax.ShapeDtypeStruct((R, Cout_p), jnp.float32),
        grid=(R // rt,),
        in_specs=[
            pl.BlockSpec((rt, Cout_p), lambda i: (i, 0)),
            pl.BlockSpec((1, Cout_p), lambda i: (0, 0)),
            pl.BlockSpec((1, Cout_p), lambda i: (0, 0)),
        ],
        out_specs=pl.BlockSpec((rt, Cout_p), lambda i: (i, 0)),
        compiler_params=_cparams(),
    )(y2.reshape(R, Cout_p), sc2, of2)

    out = out.reshape(N, Hp, Wp, Cout_p)[:, :, :, :Cout]
    return jnp.transpose(out, (0, 3, 1, 2))   # NHWC -> NCHW


# ----------------------------------------------------------------------------
# Parameter init (mirrors fresh PyTorch Conv2d / BatchNorm2d shapes)
# ----------------------------------------------------------------------------
def init_down_params(key, in_channels, out_channels, mid_channels=None):
    if mid_channels is None:
        mid_channels = out_channels
    k1, k2, k3, k4 = jax.random.split(key, 4)

    def conv_init(kw, kb, cin, cout):
        fan_in = cin * 9
        bound = 1.0 / (fan_in ** 0.5)
        w = jax.random.uniform(kw, (cout, cin, 3, 3), jnp.float32, -bound, bound)
        b = jax.random.uniform(kb, (cout,), jnp.float32, -bound, bound)
        return w, b

    w1, b1 = conv_init(k1, k2, in_channels, mid_channels)
    w2, b2 = conv_init(k3, k4, mid_channels, out_channels)
    return {
        "conv1_w": w1, "conv1_b": b1,   # biases kept for parity; cancelled by BN
        "bn1_gamma": jnp.ones((mid_channels,), jnp.float32),
        "bn1_beta": jnp.zeros((mid_channels,), jnp.float32),
        "conv2_w": w2, "conv2_b": b2,
        "bn2_gamma": jnp.ones((out_channels,), jnp.float32),
        "bn2_beta": jnp.zeros((out_channels,), jnp.float32),
    }


if __name__ == "__main__":
    key = jax.random.PRNGKey(0)
    k_param, k_x = jax.random.split(key)

    N, Cin, H, W = 2, 4, 16, 16
    Cout = 8
    x = jax.random.normal(k_x, (N, Cin, H, W), jnp.float32)
    params = init_down_params(k_param, Cin, Cout)

    y = down_forward(x, params)
    y = jax.block_until_ready(y)

    assert y.shape == (N, Cout, H // 2, W // 2), y.shape
    assert bool(jnp.all(jnp.isfinite(y)))
    print("KERNEL_OK")
</pallas_src>

<mosaic_0001>
module attributes {stable_mosaic.version = 11 : i64} {
  func.func @_pool_conv1_kernel(%arg0: i32, %arg1: memref<1x4x8x8x4xbf16, #tpu.memory_space<vmem>>, %arg2: memref<9x4x128xbf16, #tpu.memory_space<vmem>>, %arg3: memref<1x8x8x128xbf16, #tpu.memory_space<vmem>>, %arg4: memref<1x2x128xf32, #tpu.memory_space<vmem>>, %arg5: memref<10x10x4xbf16, #tpu.memory_space<vmem>>) attributes {dimension_semantics = [#tpu.dimension_semantics<parallel>], iteration_bounds = array<i64: 2>, scalar_prefetch = 0 : i64, scratch_operands = 1 : i64, tpu.core_type = #tpu.core_type<tc>, window_params = [{transform_indices = @transform_0, window_bounds = array<i64: 1, 4, 8, 8, 4>}, {pipeline_mode = #tpu.pipeline_mode<synchronous>, transform_indices = @transform_1, window_bounds = array<i64: 9, 4, 128>}, {transform_indices = @transform_2, window_bounds = array<i64: 1, 8, 8, 128>}, {transform_indices = @transform_3, window_bounds = array<i64: 1, 2, 128>}]} {
    %c0 = arith.constant 0 : index
    %c0_0 = arith.constant 0 : index
    %c0_1 = arith.constant 0 : index
    %c0_2 = arith.constant 0 : index
    %c0_3 = arith.constant 0 : index
    %0 = vector.load %arg1[%c0, %c0_0, %c0_1, %c0_2, %c0_3] : memref<1x4x8x8x4xbf16, #tpu.memory_space<vmem>>, vector<1x1x8x8x4xbf16>
    %1 = vector.shape_cast %0 : vector<1x1x8x8x4xbf16> to vector<8x8x4xbf16>
    %c0_4 = arith.constant 0 : index
    %c1 = arith.constant 1 : index
    %c0_5 = arith.constant 0 : index
    %c0_6 = arith.constant 0 : index
    %c0_7 = arith.constant 0 : index
    %2 = vector.load %arg1[%c0_4, %c1, %c0_5, %c0_6, %c0_7] : memref<1x4x8x8x4xbf16, #tpu.memory_space<vmem>>, vector<1x1x8x8x4xbf16>
    %3 = vector.shape_cast %2 : vector<1x1x8x8x4xbf16> to vector<8x8x4xbf16>
    %4 = arith.maximumf %1, %3 : vector<8x8x4xbf16>
    %c0_8 = arith.constant 0 : index
    %c2 = arith.constant 2 : index
    %c0_9 = arith.constant 0 : index
    %c0_10 = arith.constant 0 : index
    %c0_11 = arith.constant 0 : index
    %5 = vector.load %arg1[%c0_8, %c2, %c0_9, %c0_10, %c0_11] : memref<1x4x8x8x4xbf16, #tpu.memory_space<vmem>>, vector<1x1x8x8x4xbf16>
    %6 = vector.shape_cast %5 : vector<1x1x8x8x4xbf16> to vector<8x8x4xbf16>
    %c0_12 = arith.constant 0 : index
    %c3 = arith.constant 3 : index
    %c0_13 = arith.constant 0 : index
    %c0_14 = arith.constant 0 : index
    %c0_15 = arith.constant 0 : index
    %7 = vector.load %arg1[%c0_12, %c3, %c0_13, %c0_14, %c0_15] : memref<1x4x8x8x4xbf16, #tpu.memory_space<vmem>>, vector<1x1x8x8x4xbf16>
    %8 = vector.shape_cast %7 : vector<1x1x8x8x4xbf16> to vector<8x8x4xbf16>
    %9 = arith.maximumf %6, %8 : vector<8x8x4xbf16>
    %10 = arith.maximumf %4, %9 : vector<8x8x4xbf16>
    %cst = arith.constant 0.000000e+00 : bf16
    %11 = vector.broadcast %cst : bf16 to vector<10x10x4xbf16>
    %c0_16 = arith.constant 0 : index
    %c0_17 = arith.constant 0 : index
    %c0_18 = arith.constant 0 : index
    %12 = vector.load %arg5[%c0_16, %c0_17, %c0_18] : memref<10x10x4xbf16, #tpu.memory_space<vmem>>, vector<10x10x4xbf16>
    tpu.vector_store %arg5[%c0_16, %c0_17, %c0_18], %11 {strides = array<i32>} : memref<10x10x4xbf16, #tpu.memory_space<vmem>>, vector<10x10x4xbf16>,
    %c1_19 = arith.constant 1 : index
    %c1_20 = arith.constant 1 : index
    %c0_21 = arith.constant 0 : index
    %13 = vector.load %arg5[%c1_19, %c1_20, %c0_21] : memref<10x10x4xbf16, #tpu.memory_space<vmem>>, vector<8x8x4xbf16>
    tpu.vector_store %arg5[%c1_19, %c1_20, %c0_21], %10 {strides = array<i32>} : memref<10x10x4xbf16, #tpu.memory_space<vmem>>, vector<8x8x4xbf16>,
    %c0_22 = arith.constant 0 : index
    %c0_23 = arith.constant 0 : index
    %c0_24 = arith.constant 0 : index
    %14 = vector.load %arg5[%c0_22, %c0_23, %c0_24] : memref<10x10x4xbf16, #tpu.memory_space<vmem>>, vector<8x8x4xbf16>
    %15 = vector.shape_cast %14 : vector<8x8x4xbf16> to vector<64x4xbf16>
    %c0_25 = arith.constant 0 : index
    %c0_26 = arith.constant 0 : index
    %c0_27 = arith.constant 0 : index
    %16 = vector.load %arg2[%c0_25, %c0_26, %c0_27] : memref<9x4x128xbf16, #tpu.memory_space<vmem>>, vector<1x4x128xbf16>
    %17 = vector.shape_cast %16 : vector<1x4x128xbf16> to vector<4x128xbf16>
    %cst_28 = arith.constant dense<0.000000e+00> : vector<64x128xf32>
    %18 = tpu.matmul %15, %17, %cst_28 {dimension_numbers = #tpu.dot_dimension_numbers<[1], [0], [0], [1], [0, 0, 1, 1], [], []>} : vector<64x4xbf16>, vector<4x128xbf16>, vector<64x128xf32> -> vector<64x128xf32>
    %c0_29 = arith.constant 0 : index
    %c1_30 = arith.constant 1 : index
    %c0_31 = arith.constant 0 : index
    %19 = vector.load %arg5[%c0_29, %c1_30, %c0_31] : memref<10x10x4xbf16, #tpu.memory_space<vmem>>, vector<8x8x4xbf16>
    %20 = vector.shape_cast %19 : vector<8x8x4xbf16> to vector<64x4xbf16>
    %c1_32 = arith.constant 1 : index
    %c0_33 = arith.constant 0 : index
    %c0_34 = arith.constant 0 : index
    %21 = vector.load %arg2[%c1_32, %c0_33, %c0_34] : memref<9x4x128xbf16, #tpu.memory_space<vmem>>, vector<1x4x128xbf16>
    %22 = vector.shape_cast %21 : vector<1x4x128xbf16> to vector<4x128xbf16>
    %cst_35 = arith.constant dense<0.000000e+00> : vector<64x128xf32>
    %23 = tpu.matmul %20, %22, %cst_35 {dimension_numbers = #tpu.dot_dimension_numbers<[1], [0], [0], [1], [0, 0, 1, 1], [], []>} : vector<64x4xbf16>, vector<4x128xbf16>, vector<64x128xf32> -> vector<64x128xf32>
    %24 = arith.addf %18, %23 : vector<64x128xf32>
    %c0_36 = arith.constant 0 : index
    %c2_37 = arith.constant 2 : index
    %c0_38 = arith.constant 0 : index
    %25 = vector.load %arg5[%c0_36, %c2_37, %c0_38] : memref<10x10x4xbf16, #tpu.memory_space<vmem>>, vector<8x8x4xbf16>
    %26 = vector.shape_cast %25 : vector<8x8x4xbf16> to vector<64x4xbf16>
    %c2_39 = arith.constant 2 : index
    %c0_40 = arith.constant 0 : index
    %c0_41 = arith.constant 0 : index
    %27 = vector.load %arg2[%c2_39, %c0_40, %c0_41] : memref<9x4x128xbf16, #tpu.memory_space<vmem>>, vector<1x4x128xbf16>
    %28 = vector.shape_cast %27 : vector<1x4x128xbf16> to vector<4x128xbf16>
    %cst_42 = arith.constant dense<0.000000e+00> : vector<64x128xf32>
    %29 = tpu.matmul %26, %28, %cst_42 {dimension_numbers = #tpu.dot_dimension_numbers<[1], [0], [0], [1], [0, 0, 1, 1], [], []>} : vector<64x4xbf16>, vector<4x128xbf16>, vector<64x128xf32> -> vector<64x128xf32>
    %30 = arith.addf %24, %29 : vector<64x128xf32>
    %c1_43 = arith.constant 1 : index
    %c0_44 = arith.constant 0 : index
    %c0_45 = arith.constant 0 : index
    %31 = vector.load %arg5[%c1_43, %c0_44, %c0_45] : memref<10x10x4xbf16, #tpu.memory_space<vmem>>, vector<8x8x4xbf16>
    %32 = vector.shape_cast %31 : vector<8x8x4xbf16> to vector<64x4xbf16>
    %c3_46 = arith.constant 3 : index
    %c0_47 = arith.constant 0 : index
    %c0_48 = arith.constant 0 : index
    %33 = vector.load %arg2[%c3_46, %c0_47, %c0_48] : memref<9x4x128xbf16, #tpu.memory_space<vmem>>, vector<1x4x128xbf16>
    %34 = vector.shape_cast %33 : vector<1x4x128xbf16> to vector<4x128xbf16>
    %cst_49 = arith.constant dense<0.000000e+00> : vector<64x128xf32>
    %35 = tpu.matmul %32, %34, %cst_49 {dimension_numbers = #tpu.dot_dimension_numbers<[1], [0], [0], [1], [0, 0, 1, 1], [], []>} : vector<64x4xbf16>, vector<4x128xbf16>, vector<64x128xf32> -> vector<64x128xf32>
    %36 = arith.addf %30, %35 : vector<64x128xf32>
    %c1_50 = arith.constant 1 : index
    %c1_51 = arith.constant 1 : index
    %c0_52 = arith.constant 0 : index
    %37 = vector.load %arg5[%c1_50, %c1_51, %c0_52] : memref<10x10x4xbf16, #tpu.memory_space<vmem>>, vector<8x8x4xbf16>
    %38 = vector.shape_cast %37 : vector<8x8x4xbf16> to vector<64x4xbf16>
    %c4 = arith.constant 4 : index
    %c0_53 = arith.constant 0 : index
    %c0_54 = arith.constant 0 : index
    %39 = vector.load %arg2[%c4, %c0_53, %c0_54] : memref<9x4x128xbf16, #tpu.memory_space<vmem>>, vector<1x4x128xbf16>
    %40 = vector.shape_cast %39 : vector<1x4x128xbf16> to vector<4x128xbf16>
    %cst_55 = arith.constant dense<0.000000e+00> : vector<64x128xf32>
    %41 = tpu.matmul %38, %40, %cst_55 {dimension_numbers = #tpu.dot_dimension_numbers<[1], [0], [0], [1], [0, 0, 1, 1], [], []>} : vector<64x4xbf16>, vector<4x128xbf16>, vector<64x128xf32> -> vector<64x128xf32>
    %42 = arith.addf %36, %41 : vector<64x128xf32>
    %c1_56 = arith.constant 1 : index
    %c2_57 = arith.constant 2 : index
    %c0_58 = arith.constant 0 : index
    %43 = vector.load %arg5[%c1_56, %c2_57, %c0_58] : memref<10x10x4xbf16, #tpu.memory_space<vmem>>, vector<8x8x4xbf16>
    %44 = vector.shape_cast %43 : vector<8x8x4xbf16> to vector<64x4xbf16>
    %c5 = arith.constant 5 : index
    %c0_59 = arith.constant 0 : index
    %c0_60 = arith.constant 0 : index
    %45 = vector.load %arg2[%c5, %c0_59, %c0_60] : memref<9x4x128xbf16, #tpu.memory_space<vmem>>, vector<1x4x128xbf16>
    %46 = vector.shape_cast %45 : vector<1x4x128xbf16> to vector<4x128xbf16>
    %cst_61 = arith.constant dense<0.000000e+00> : vector<64x128xf32>
    %47 = tpu.matmul %44, %46, %cst_61 {dimension_numbers = #tpu.dot_dimension_numbers<[1], [0], [0], [1], [0, 0, 1, 1], [], []>} : vector<64x4xbf16>, vector<4x128xbf16>, vector<64x128xf32> -> vector<64x128xf32>
    %48 = arith.addf %42, %47 : vector<64x128xf32>
    %c2_62 = arith.constant 2 : index
    %c0_63 = arith.constant 0 : index
    %c0_64 = arith.constant 0 : index
    %49 = vector.load %arg5[%c2_62, %c0_63, %c0_64] : memref<10x10x4xbf16, #tpu.memory_space<vmem>>, vector<8x8x4xbf16>
    %50 = vector.shape_cast %49 : vector<8x8x4xbf16> to vector<64x4xbf16>
    %c6 = arith.constant 6 : index
    %c0_65 = arith.constant 0 : index
    %c0_66 = arith.constant 0 : index
    %51 = vector.load %arg2[%c6, %c0_65, %c0_66] : memref<9x4x128xbf16, #tpu.memory_space<vmem>>, vector<1x4x128xbf16>
    %52 = vector.shape_cast %51 : vector<1x4x128xbf16> to vector<4x128xbf16>
    %cst_67 = arith.constant dense<0.000000e+00> : vector<64x128xf32>
    %53 = tpu.matmul %50, %52, %cst_67 {dimension_numbers = #tpu.dot_dimension_numbers<[1], [0], [0], [1], [0, 0, 1, 1], [], []>} : vector<64x4xbf16>, vector<4x128xbf16>, vector<64x128xf32> -> vector<64x128xf32>
    %54 = arith.addf %48, %53 : vector<64x128xf32>
    %c2_68 = arith.constant 2 : index
    %c1_69 = arith.constant 1 : index
    %c0_70 = arith.constant 0 : index
    %55 = vector.load %arg5[%c2_68, %c1_69, %c0_70] : memref<10x10x4xbf16, #tpu.memory_space<vmem>>, vector<8x8x4xbf16>
    %56 = vector.shape_cast %55 : vector<8x8x4xbf16> to vector<64x4xbf16>
    %c7 = arith.constant 7 : index
    %c0_71 = arith.constant 0 : index
    %c0_72 = arith.constant 0 : index
    %57 = vector.load %arg2[%c7, %c0_71, %c0_72] : memref<9x4x128xbf16, #tpu.memory_space<vmem>>, vector<1x4x128xbf16>
    %58 = vector.shape_cast %57 : vector<1x4x128xbf16> to vector<4x128xbf16>
    %cst_73 = arith.constant dense<0.000000e+00> : vector<64x128xf32>
    %59 = tpu.matmul %56, %58, %cst_73 {dimension_numbers = #tpu.dot_dimension_numbers<[1], [0], [0], [1], [0, 0, 1, 1], [], []>} : vector<64x4xbf16>, vector<4x128xbf16>, vector<64x128xf32> -> vector<64x128xf32>
    %60 = arith.addf %54, %59 : vector<64x128xf32>
    %c2_74 = arith.constant 2 : index
    %c2_75 = arith.constant 2 : index
    %c0_76 = arith.constant 0 : index
    %61 = vector.load %arg5[%c2_74, %c2_75, %c0_76] : memref<10x10x4xbf16, #tpu.memory_space<vmem>>, vector<8x8x4xbf16>
    %62 = vector.shape_cast %61 : vector<8x8x4xbf16> to vector<64x4xbf16>
    %c8 = arith.constant 8 : index
    %c0_77 = arith.constant 0 : index
    %c0_78 = arith.constant 0 : index
    %63 = vector.load %arg2[%c8, %c0_77, %c0_78] : memref<9x4x128xbf16, #tpu.memory_space<vmem>>, vector<1x4x128xbf16>
    %64 = vector.shape_cast %63 : vector<1x4x128xbf16> to vector<4x128xbf16>
    %cst_79 = arith.constant dense<0.000000e+00> : vector<64x128xf32>
    %65 = tpu.matmul %62, %64, %cst_79 {dimension_numbers = #tpu.dot_dimension_numbers<[1], [0], [0], [1], [0, 0, 1, 1], [], []>} : vector<64x4xbf16>, vector<4x128xbf16>, vector<64x128xf32> -> vector<64x128xf32>
    %66 = arith.addf %60, %65 : vector<64x128xf32>
    %cst_80 = arith.constant dense<0.000000e+00> : vector<128xf32>
    %67 = vector.multi_reduction <add>, %66, %cst_80 [0] : vector<64x128xf32> to vector<128xf32>
    %68 = vector.shape_cast %67 : vector<128xf32> to vector<1x128xf32>
    %c0_81 = arith.constant 0 : index
    %c0_82 = arith.constant 0 : index
    %c0_83 = arith.constant 0 : index
    %69 = vector.load %arg4[%c0_81, %c0_82, %c0_83] : memref<1x2x128xf32, #tpu.memory_space<vmem>>, vector<1x1x128xf32>
    %70 = vector.shape_cast %69 : vector<1x1x128xf32> to vector<1x128xf32>
    %71 = vector.shape_cast %68 : vector<1x128xf32> to vector<1x1x128xf32>
    tpu.vector_store %arg4[%c0_81, %c0_82, %c0_83], %71 {strides = array<i32>} : memref<1x2x128xf32, #tpu.memory_space<vmem>>, vector<1x1x128xf32>,
    %72 = arith.mulf %66, %66 : vector<64x128xf32>
    %cst_84 = arith.constant dense<0.000000e+00> : vector<128xf32>
    %73 = vector.multi_reduction <add>, %72, %cst_84 [0] : vector<64x128xf32> to vector<128xf32>
    %74 = vector.shape_cast %73 : vector<128xf32> to vector<1x128xf32>
    %c0_85 = arith.constant 0 : index
    %c1_86 = arith.constant 1 : index
    %c0_87 = arith.constant 0 : index
    %75 = vector.load %arg4[%c0_85, %c1_86, %c0_87] : memref<1x2x128xf32, #tpu.memory_space<vmem>>, vector<1x1x128xf32>
    %76 = vector.shape_cast %75 : vector<1x1x128xf32> to vector<1x128xf32>
    %77 = vector.shape_cast %74 : vector<1x128xf32> to vector<1x1x128xf32>
    tpu.vector_store %arg4[%c0_85, %c1_86, %c0_87], %77 {strides = array<i32>} : memref<1x2x128xf32, #tpu.memory_space<vmem>>, vector<1x1x128xf32>,
    %78 = vector.shape_cast %66 : vector<64x128xf32> to vector<8x8x128xf32>
    %79 = arith.truncf %78 : vector<8x8x128xf32> to vector<8x8x128xbf16>
    %c0_88 = arith.constant 0 : index
    %c0_89 = arith.constant 0 : index
    %c0_90 = arith.constant 0 : index
    %c0_91 = arith.constant 0 : index
    %80 = vector.load %arg3[%c0_88, %c0_89, %c0_90, %c0_91] : memref<1x8x8x128xbf16, #tpu.memory_space<vmem>>, vector<1x8x8x128xbf16>
    %81 = vector.shape_cast %80 : vector<1x8x8x128xbf16> to vector<8x8x128xbf16>
    %82 = vector.shape_cast %79 : vector<8x8x128xbf16> to vector<1x8x8x128xbf16>
    tpu.vector_store %arg3[%c0_88, %c0_89, %c0_90, %c0_91], %82 {strides = array<i32>} : memref<1x8x8x128xbf16, #tpu.memory_space<vmem>>, vector<1x8x8x128xbf16>,
    return
  }
  func.func @transform_0(%arg0: i32) -> (i32, i32, i32, i32, i32) {
    %c0_i32 = arith.constant 0 : i32
    %c0_i32_0 = arith.constant 0 : i32
    %c0_i32_1 = arith.constant 0 : i32
    %c0_i32_2 = arith.constant 0 : i32
    %c0_i32_3 = arith.constant 0 : i32
    return %arg0, %c0_i32, %c0_i32_0, %c0_i32_1, %c0_i32_2 : i32, i32, i32, i32, i32
  }
  func.func @transform_1(%arg0: i32) -> (i32, i32, i32) {
    %c0_i32 = arith.constant 0 : i32
    %c0_i32_0 = arith.constant 0 : i32
    %c0_i32_1 = arith.constant 0 : i32
    %c0_i32_2 = arith.constant 0 : i32
    return %c0_i32, %c0_i32_0, %c0_i32_1 : i32, i32, i32
  }
  func.func @transform_2(%arg0: i32) -> (i32, i32, i32, i32) {
    %c0_i32 = arith.constant 0 : i32
    %c0_i32_0 = arith.constant 0 : i32
    %c0_i32_1 = arith.constant 0 : i32
    %c0_i32_2 = arith.constant 0 : i32
    return %arg0, %c0_i32, %c0_i32_0, %c0_i32_1 : i32, i32, i32, i32
  }
  func.func @transform_3(%arg0: i32) -> (i32, i32, i32) {
    %c0_i32 = arith.constant 0 : i32
    %c0_i32_0 = arith.constant 0 : i32
    %c0_i32_1 = arith.constant 0 : i32
    return %arg0, %c0_i32, %c0_i32_0 : i32, i32, i32
  }
}

module attributes {stable_mosaic.version = 11 : i64} {
  func.func @_bn_relu_conv2_kernel(%arg0: i32, %arg1: memref<1x8x8x128xbf16, #tpu.memory_space<vmem>>, %arg2: memref<1x128xf32, #tpu.memory_space<vmem>>, %arg3: memref<1x128xf32, #tpu.memory_space<vmem>>, %arg4: memref<9x128x128xbf16, #tpu.memory_space<vmem>>, %arg5: memref<1x8x8x128xbf16, #tpu.memory_space<vmem>>, %arg6: memref<1x2x128xf32, #tpu.memory_space<vmem>>, %arg7: memref<10x10x128xbf16, #tpu.memory_space<vmem>>) attributes {dimension_semantics = [#tpu.dimension_semantics<parallel>], iteration_bounds = array<i64: 2>, scalar_prefetch = 0 : i64, scratch_operands = 1 : i64, tpu.core_type = #tpu.core_type<tc>, window_params = [{transform_indices = @transform_0, window_bounds = array<i64: 1, 8, 8, 128>}, {pipeline_mode = #tpu.pipeline_mode<synchronous>, transform_indices = @transform_1, window_bounds = array<i64: 1, 128>}, {pipeline_mode = #tpu.pipeline_mode<synchronous>, transform_indices = @transform_2, window_bounds = array<i64: 1, 128>}, {pipeline_mode = #tpu.pipeline_mode<synchronous>, transform_indices = @transform_3, window_bounds = array<i64: 9, 128, 128>}, {transform_indices = @transform_4, window_bounds = array<i64: 1, 8, 8, 128>}, {transform_indices = @transform_5, window_bounds = array<i64: 1, 2, 128>}]} {
    %c0 = arith.constant 0 : index
    %c0_0 = arith.constant 0 : index
    %0 = vector.load %arg2[%c0, %c0_0] : memref<1x128xf32, #tpu.memory_space<vmem>>, vector<1x128xf32>
    %1 = vector.shape_cast %0 : vector<1x128xf32> to vector<1x1x128xf32>
    %c0_1 = arith.constant 0 : index
    %c0_2 = arith.constant 0 : index
    %2 = vector.load %arg3[%c0_1, %c0_2] : memref<1x128xf32, #tpu.memory_space<vmem>>, vector<1x128xf32>
    %3 = vector.shape_cast %2 : vector<1x128xf32> to vector<1x1x128xf32>
    %c0_3 = arith.constant 0 : index
    %c0_4 = arith.constant 0 : index
    %c0_5 = arith.constant 0 : index
    %c0_6 = arith.constant 0 : index
    %4 = vector.load %arg1[%c0_3, %c0_4, %c0_5, %c0_6] : memref<1x8x8x128xbf16, #tpu.memory_space<vmem>>, vector<1x8x8x128xbf16>
    %5 = vector.shape_cast %4 : vector<1x8x8x128xbf16> to vector<8x8x128xbf16>
    %6 = arith.extf %5 : vector<8x8x128xbf16> to vector<8x8x128xf32>
    %7 = vector.broadcast %1 : vector<1x1x128xf32> to vector<8x8x128xf32>
    %8 = arith.mulf %6, %7 : vector<8x8x128xf32>
    %9 = vector.broadcast %3 : vector<1x1x128xf32> to vector<8x8x128xf32>
    %10 = arith.addf %8, %9 : vector<8x8x128xf32>
    %cst = arith.constant 0.000000e+00 : f32
    %11 = vector.broadcast %cst : f32 to vector<8x8x128xf32>
    %12 = arith.maximumf %10, %11 : vector<8x8x128xf32>
    %13 = arith.truncf %12 : vector<8x8x128xf32> to vector<8x8x128xbf16>
    %cst_7 = arith.constant 0.000000e+00 : bf16
    %14 = vector.broadcast %cst_7 : bf16 to vector<10x10x128xbf16>
    %c0_8 = arith.constant 0 : index
    %c0_9 = arith.constant 0 : index
    %c0_10 = arith.constant 0 : index
    %15 = vector.load %arg7[%c0_8, %c0_9, %c0_10] : memref<10x10x128xbf16, #tpu.memory_space<vmem>>, vector<10x10x128xbf16>
    tpu.vector_store %arg7[%c0_8, %c0_9, %c0_10], %14 {strides = array<i32>} : memref<10x10x128xbf16, #tpu.memory_space<vmem>>, vector<10x10x128xbf16>,
    %c1 = arith.constant 1 : index
    %c1_11 = arith.constant 1 : index
    %c0_12 = arith.constant 0 : index
    %16 = vector.load %arg7[%c1, %c1_11, %c0_12] : memref<10x10x128xbf16, #tpu.memory_space<vmem>>, vector<8x8x128xbf16>
    tpu.vector_store %arg7[%c1, %c1_11, %c0_12], %13 {strides = array<i32>} : memref<10x10x128xbf16, #tpu.memory_space<vmem>>, vector<8x8x128xbf16>,
    %c0_13 = arith.constant 0 : index
    %c0_14 = arith.constant 0 : index
    %c0_15 = arith.constant 0 : index
    %17 = vector.load %arg7[%c0_13, %c0_14, %c0_15] : memref<10x10x128xbf16, #tpu.memory_space<vmem>>, vector<8x8x128xbf16>
    %18 = vector.shape_cast %17 : vector<8x8x128xbf16> to vector<64x128xbf16>
    %c0_16 = arith.constant 0 : index
    %c0_17 = arith.constant 0 : index
    %c0_18 = arith.constant 0 : index
    %19 = vector.load %arg4[%c0_16, %c0_17, %c0_18] : memref<9x128x128xbf16, #tpu.memory_space<vmem>>, vector<1x128x128xbf16>
    %20 = vector.shape_cast %19 : vector<1x128x128xbf16> to vector<128x128xbf16>
    %cst_19 = arith.constant dense<0.000000e+00> : vector<64x128xf32>
    %21 = tpu.matmul %18, %20, %cst_19 {dimension_numbers = #tpu.dot_dimension_numbers<[1], [0], [0], [1], [0, 0, 1, 1], [], []>} : vector<64x128xbf16>, vector<128x128xbf16>, vector<64x128xf32> -> vector<64x128xf32>
    %c0_20 = arith.constant 0 : index
    %c1_21 = arith.constant 1 : index
    %c0_22 = arith.constant 0 : index
    %22 = vector.load %arg7[%c0_20, %c1_21, %c0_22] : memref<10x10x128xbf16, #tpu.memory_space<vmem>>, vector<8x8x128xbf16>
    %23 = vector.shape_cast %22 : vector<8x8x128xbf16> to vector<64x128xbf16>
    %c1_23 = arith.constant 1 : index
    %c0_24 = arith.constant 0 : index
    %c0_25 = arith.constant 0 : index
    %24 = vector.load %arg4[%c1_23, %c0_24, %c0_25] : memref<9x128x128xbf16, #tpu.memory_space<vmem>>, vector<1x128x128xbf16>
    %25 = vector.shape_cast %24 : vector<1x128x128xbf16> to vector<128x128xbf16>
    %cst_26 = arith.constant dense<0.000000e+00> : vector<64x128xf32>
    %26 = tpu.matmul %23, %25, %cst_26 {dimension_numbers = #tpu.dot_dimension_numbers<[1], [0], [0], [1], [0, 0, 1, 1], [], []>} : vector<64x128xbf16>, vector<128x128xbf16>, vector<64x128xf32> -> vector<64x128xf32>
    %27 = arith.addf %21, %26 : vector<64x128xf32>
    %c0_27 = arith.constant 0 : index
    %c2 = arith.constant 2 : index
    %c0_28 = arith.constant 0 : index
    %28 = vector.load %arg7[%c0_27, %c2, %c0_28] : memref<10x10x128xbf16, #tpu.memory_space<vmem>>, vector<8x8x128xbf16>
    %29 = vector.shape_cast %28 : vector<8x8x128xbf16> to vector<64x128xbf16>
    %c2_29 = arith.constant 2 : index
    %c0_30 = arith.constant 0 : index
    %c0_31 = arith.constant 0 : index
    %30 = vector.load %arg4[%c2_29, %c0_30, %c0_31] : memref<9x128x128xbf16, #tpu.memory_space<vmem>>, vector<1x128x128xbf16>
    %31 = vector.shape_cast %30 : vector<1x128x128xbf16> to vector<128x128xbf16>
    %cst_32 = arith.constant dense<0.000000e+00> : vector<64x128xf32>
    %32 = tpu.matmul %29, %31, %cst_32 {dimension_numbers = #tpu.dot_dimension_numbers<[1], [0], [0], [1], [0, 0, 1, 1], [], []>} : vector<64x128xbf16>, vector<128x128xbf16>, vector<64x128xf32> -> vector<64x128xf32>
    %33 = arith.addf %27, %32 : vector<64x128xf32>
    %c1_33 = arith.constant 1 : index
    %c0_34 = arith.constant 0 : index
    %c0_35 = arith.constant 0 : index
    %34 = vector.load %arg7[%c1_33, %c0_34, %c0_35] : memref<10x10x128xbf16, #tpu.memory_space<vmem>>, vector<8x8x128xbf16>
    %35 = vector.shape_cast %34 : vector<8x8x128xbf16> to vector<64x128xbf16>
    %c3 = arith.constant 3 : index
    %c0_36 = arith.constant 0 : index
    %c0_37 = arith.constant 0 : index
    %36 = vector.load %arg4[%c3, %c0_36, %c0_37] : memref<9x128x128xbf16, #tpu.memory_space<vmem>>, vector<1x128x128xbf16>
    %37 = vector.shape_cast %36 : vector<1x128x128xbf16> to vector<128x128xbf16>
    %cst_38 = arith.constant dense<0.000000e+00> : vector<64x128xf32>
    %38 = tpu.matmul %35, %37, %cst_38 {dimension_numbers = #tpu.dot_dimension_numbers<[1], [0], [0], [1], [0, 0, 1, 1], [], []>} : vector<64x128xbf16>, vector<128x128xbf16>, vector<64x128xf32> -> vector<64x128xf32>
    %39 = arith.addf %33, %38 : vector<64x128xf32>
    %c1_39 = arith.constant 1 : index
    %c1_40 = arith.constant 1 : index
    %c0_41 = arith.constant 0 : index
    %40 = vector.load %arg7[%c1_39, %c1_40, %c0_41] : memref<10x10x128xbf16, #tpu.memory_space<vmem>>, vector<8x8x128xbf16>
    %41 = vector.shape_cast %40 : vector<8x8x128xbf16> to vector<64x128xbf16>
    %c4 = arith.constant 4 : index
    %c0_42 = arith.constant 0 : index
    %c0_43 = arith.constant 0 : index
    %42 = vector.load %arg4[%c4, %c0_42, %c0_43] : memref<9x128x128xbf16, #tpu.memory_space<vmem>>, vector<1x128x128xbf16>
    %43 = vector.shape_cast %42 : vector<1x128x128xbf16> to vector<128x128xbf16>
    %cst_44 = arith.constant dense<0.000000e+00> : vector<64x128xf32>
    %44 = tpu.matmul %41, %43, %cst_44 {dimension_numbers = #tpu.dot_dimension_numbers<[1], [0], [0], [1], [0, 0, 1, 1], [], []>} : vector<64x128xbf16>, vector<128x128xbf16>, vector<64x128xf32> -> vector<64x128xf32>
    %45 = arith.addf %39, %44 : vector<64x128xf32>
    %c1_45 = arith.constant 1 : index
    %c2_46 = arith.constant 2 : index
    %c0_47 = arith.constant 0 : index
    %46 = vector.load %arg7[%c1_45, %c2_46, %c0_47] : memref<10x10x128xbf16, #tpu.memory_space<vmem>>, vector<8x8x128xbf16>
    %47 = vector.shape_cast %46 : vector<8x8x128xbf16> to vector<64x128xbf16>
    %c5 = arith.constant 5 : index
    %c0_48 = arith.constant 0 : index
    %c0_49 = arith.constant 0 : index
    %48 = vector.load %arg4[%c5, %c0_48, %c0_49] : memref<9x128x128xbf16, #tpu.memory_space<vmem>>, vector<1x128x128xbf16>
    %49 = vector.shape_cast %48 : vector<1x128x128xbf16> to vector<128x128xbf16>
    %cst_50 = arith.constant dense<0.000000e+00> : vector<64x128xf32>
    %50 = tpu.matmul %47, %49, %cst_50 {dimension_numbers = #tpu.dot_dimension_numbers<[1], [0], [0], [1], [0, 0, 1, 1], [], []>} : vector<64x128xbf16>, vector<128x128xbf16>, vector<64x128xf32> -> vector<64x128xf32>
    %51 = arith.addf %45, %50 : vector<64x128xf32>
    %c2_51 = arith.constant 2 : index
    %c0_52 = arith.constant 0 : index
    %c0_53 = arith.constant 0 : index
    %52 = vector.load %arg7[%c2_51, %c0_52, %c0_53] : memref<10x10x128xbf16, #tpu.memory_space<vmem>>, vector<8x8x128xbf16>
    %53 = vector.shape_cast %52 : vector<8x8x128xbf16> to vector<64x128xbf16>
    %c6 = arith.constant 6 : index
    %c0_54 = arith.constant 0 : index
    %c0_55 = arith.constant 0 : index
    %54 = vector.load %arg4[%c6, %c0_54, %c0_55] : memref<9x128x128xbf16, #tpu.memory_space<vmem>>, vector<1x128x128xbf16>
    %55 = vector.shape_cast %54 : vector<1x128x128xbf16> to vector<128x128xbf16>
    %cst_56 = arith.constant dense<0.000000e+00> : vector<64x128xf32>
    %56 = tpu.matmul %53, %55, %cst_56 {dimension_numbers = #tpu.dot_dimension_numbers<[1], [0], [0], [1], [0, 0, 1, 1], [], []>} : vector<64x128xbf16>, vector<128x128xbf16>, vector<64x128xf32> -> vector<64x128xf32>
    %57 = arith.addf %51, %56 : vector<64x128xf32>
    %c2_57 = arith.constant 2 : index
    %c1_58 = arith.constant 1 : index
    %c0_59 = arith.constant 0 : index
    %58 = vector.load %arg7[%c2_57, %c1_58, %c0_59] : memref<10x10x128xbf16, #tpu.memory_space<vmem>>, vector<8x8x128xbf16>
    %59 = vector.shape_cast %58 : vector<8x8x128xbf16> to vector<64x128xbf16>
    %c7 = arith.constant 7 : index
    %c0_60 = arith.constant 0 : index
    %c0_61 = arith.constant 0 : index
    %60 = vector.load %arg4[%c7, %c0_60, %c0_61] : memref<9x128x128xbf16, #tpu.memory_space<vmem>>, vector<1x128x128xbf16>
    %61 = vector.shape_cast %60 : vector<1x128x128xbf16> to vector<128x128xbf16>
    %cst_62 = arith.constant dense<0.000000e+00> : vector<64x128xf32>
    %62 = tpu.matmul %59, %61, %cst_62 {dimension_numbers = #tpu.dot_dimension_numbers<[1], [0], [0], [1], [0, 0, 1, 1], [], []>} : vector<64x128xbf16>, vector<128x128xbf16>, vector<64x128xf32> -> vector<64x128xf32>
    %63 = arith.addf %57, %62 : vector<64x128xf32>
    %c2_63 = arith.constant 2 : index
    %c2_64 = arith.constant 2 : index
    %c0_65 = arith.constant 0 : index
    %64 = vector.load %arg7[%c2_63, %c2_64, %c0_65] : memref<10x10x128xbf16, #tpu.memory_space<vmem>>, vector<8x8x128xbf16>
    %65 = vector.shape_cast %64 : vector<8x8x128xbf16> to vector<64x128xbf16>
    %c8 = arith.constant 8 : index
    %c0_66 = arith.constant 0 : index
    %c0_67 = arith.constant 0 : index
    %66 = vector.load %arg4[%c8, %c0_66, %c0_67] : memref<9x128x128xbf16, #tpu.memory_space<vmem>>, vector<1x128x128xbf16>
    %67 = vector.shape_cast %66 : vector<1x128x128xbf16> to vector<128x128xbf16>
    %cst_68 = arith.constant dense<0.000000e+00> : vector<64x128xf32>
    %68 = tpu.matmul %65, %67, %cst_68 {dimension_numbers = #tpu.dot_dimension_numbers<[1], [0], [0], [1], [0, 0, 1, 1], [], []>} : vector<64x128xbf16>, vector<128x128xbf16>, vector<64x128xf32> -> vector<64x128xf32>
    %69 = arith.addf %63, %68 : vector<64x128xf32>
    %cst_69 = arith.constant dense<0.000000e+00> : vector<128xf32>
    %70 = vector.multi_reduction <add>, %69, %cst_69 [0] : vector<64x128xf32> to vector<128xf32>
    %71 = vector.shape_cast %70 : vector<128xf32> to vector<1x128xf32>
    %c0_70 = arith.constant 0 : index
    %c0_71 = arith.constant 0 : index
    %c0_72 = arith.constant 0 : index
    %72 = vector.load %arg6[%c0_70, %c0_71, %c0_72] : memref<1x2x128xf32, #tpu.memory_space<vmem>>, vector<1x1x128xf32>
    %73 = vector.shape_cast %72 : vector<1x1x128xf32> to vector<1x128xf32>
    %74 = vector.shape_cast %71 : vector<1x128xf32> to vector<1x1x128xf32>
    tpu.vector_store %arg6[%c0_70, %c0_71, %c0_72], %74 {strides = array<i32>} : memref<1x2x128xf32, #tpu.memory_space<vmem>>, vector<1x1x128xf32>,
    %75 = arith.mulf %69, %69 : vector<64x128xf32>
    %cst_73 = arith.constant dense<0.000000e+00> : vector<128xf32>
    %76 = vector.multi_reduction <add>, %75, %cst_73 [0] : vector<64x128xf32> to vector<128xf32>
    %77 = vector.shape_cast %76 : vector<128xf32> to vector<1x128xf32>
    %c0_74 = arith.constant 0 : index
    %c1_75 = arith.constant 1 : index
    %c0_76 = arith.constant 0 : index
    %78 = vector.load %arg6[%c0_74, %c1_75, %c0_76] : memref<1x2x128xf32, #tpu.memory_space<vmem>>, vector<1x1x128xf32>
    %79 = vector.shape_cast %78 : vector<1x1x128xf32> to vector<1x128xf32>
    %80 = vector.shape_cast %77 : vector<1x128xf32> to vector<1x1x128xf32>
    tpu.vector_store %arg6[%c0_74, %c1_75, %c0_76], %80 {strides = array<i32>} : memref<1x2x128xf32, #tpu.memory_space<vmem>>, vector<1x1x128xf32>,
    %81 = vector.shape_cast %69 : vector<64x128xf32> to vector<8x8x128xf32>
    %82 = arith.truncf %81 : vector<8x8x128xf32> to vector<8x8x128xbf16>
    %c0_77 = arith.constant 0 : index
    %c0_78 = arith.constant 0 : index
    %c0_79 = arith.constant 0 : index
    %c0_80 = arith.constant 0 : index
    %83 = vector.load %arg5[%c0_77, %c0_78, %c0_79, %c0_80] : memref<1x8x8x128xbf16, #tpu.memory_space<vmem>>, vector<1x8x8x128xbf16>
    %84 = vector.shape_cast %83 : vector<1x8x8x128xbf16> to vector<8x8x128xbf16>
    %85 = vector.shape_cast %82 : vector<8x8x128xbf16> to vector<1x8x8x128xbf16>
    tpu.vector_store %arg5[%c0_77, %c0_78, %c0_79, %c0_80], %85 {strides = array<i32>} : memref<1x8x8x128xbf16, #tpu.memory_space<vmem>>, vector<1x8x8x128xbf16>,
    return
  }
  func.func @transform_0(%arg0: i32) -> (i32, i32, i32, i32) {
    %c0_i32 = arith.constant 0 : i32
    %c0_i32_0 = arith.constant 0 : i32
    %c0_i32_1 = arith.constant 0 : i32
    %c0_i32_2 = arith.constant 0 : i32
    return %arg0, %c0_i32, %c0_i32_0, %c0_i32_1 : i32, i32, i32, i32
  }
  func.func @transform_1(%arg0: i32) -> (i32, i32) {
    %c0_i32 = arith.constant 0 : i32
    %c0_i32_0 = arith.constant 0 : i32
    %c0_i32_1 = arith.constant 0 : i32
    return %c0_i32, %c0_i32_0 : i32, i32
  }
  func.func @transform_2(%arg0: i32) -> (i32, i32) {
    %c0_i32 = arith.constant 0 : i32
    %c0_i32_0 = arith.constant 0 : i32
    %c0_i32_1 = arith.constant 0 : i32
    return %c0_i32, %c0_i32_0 : i32, i32
  }
  func.func @transform_3(%arg0: i32) -> (i32, i32, i32) {
    %c0_i32 = arith.constant 0 : i32
    %c0_i32_0 = arith.constant 0 : i32
    %c0_i32_1 = arith.constant 0 : i32
    %c0_i32_2 = arith.constant 0 : i32
    return %c0_i32, %c0_i32_0, %c0_i32_1 : i32, i32, i32
  }
  func.func @transform_4(%arg0: i32) -> (i32, i32, i32, i32) {
    %c0_i32 = arith.constant 0 : i32
    %c0_i32_0 = arith.constant 0 : i32
    %c0_i32_1 = arith.constant 0 : i32
    %c0_i32_2 = arith.constant 0 : i32
    return %arg0, %c0_i32, %c0_i32_0, %c0_i32_1 : i32, i32, i32, i32
  }
  func.func @transform_5(%arg0: i32) -> (i32, i32, i32) {
    %c0_i32 = arith.constant 0 : i32
    %c0_i32_0 = arith.constant 0 : i32
    %c0_i32_1 = arith.constant 0 : i32
    return %arg0, %c0_i32, %c0_i32_0 : i32, i32, i32
  }
}

module attributes {stable_mosaic.version = 11 : i64} {
  func.func @_bn_relu_kernel(%arg0: i32, %arg1: memref<128x128xbf16, #tpu.memory_space<vmem>>, %arg2: memref<1x128xf32, #tpu.memory_space<vmem>>, %arg3: memref<1x128xf32, #tpu.memory_space<vmem>>, %arg4: memref<128x128xf32, #tpu.memory_space<vmem>>) attributes {dimension_semantics = [#tpu.dimension_semantics<parallel>], iteration_bounds = array<i64: 1>, scalar_prefetch = 0 : i64, scratch_operands = 0 : i64, tpu.core_type = #tpu.core_type<tc>, window_params = [{transform_indices = @transform_0, window_bounds = array<i64: 128, 128>}, {pipeline_mode = #tpu.pipeline_mode<synchronous>, transform_indices = @transform_1, window_bounds = array<i64: 1, 128>}, {pipeline_mode = #tpu.pipeline_mode<synchronous>, transform_indices = @transform_2, window_bounds = array<i64: 1, 128>}, {transform_indices = @transform_3, window_bounds = array<i64: 128, 128>}]} {
    %c0 = arith.constant 0 : index
    %c0_0 = arith.constant 0 : index
    %0 = vector.load %arg1[%c0, %c0_0] : memref<128x128xbf16, #tpu.memory_space<vmem>>, vector<128x128xbf16>
    %1 = arith.extf %0 : vector<128x128xbf16> to vector<128x128xf32>
    %c0_1 = arith.constant 0 : index
    %c0_2 = arith.constant 0 : index
    %2 = vector.load %arg2[%c0_1, %c0_2] : memref<1x128xf32, #tpu.memory_space<vmem>>, vector<1x128xf32>
    %3 = vector.broadcast %2 : vector<1x128xf32> to vector<128x128xf32>
    %4 = arith.mulf %1, %3 : vector<128x128xf32>
    %c0_3 = arith.constant 0 : index
    %c0_4 = arith.constant 0 : index
    %5 = vector.load %arg3[%c0_3, %c0_4] : memref<1x128xf32, #tpu.memory_space<vmem>>, vector<1x128xf32>
    %6 = vector.broadcast %5 : vector<1x128xf32> to vector<128x128xf32>
    %7 = arith.addf %4, %6 : vector<128x128xf32>
    %cst = arith.constant 0.000000e+00 : f32
    %8 = vector.broadcast %cst : f32 to vector<128x128xf32>
    %9 = arith.maximumf %7, %8 : vector<128x128xf32>
    %c0_5 = arith.constant 0 : index
    %c0_6 = arith.constant 0 : index
    %10 = vector.load %arg4[%c0_5, %c0_6] : memref<128x128xf32, #tpu.memory_space<vmem>>, vector<128x128xf32>
    tpu.vector_store %arg4[%c0_5, %c0_6], %9 {strides = array<i32>} : memref<128x128xf32, #tpu.memory_space<vmem>>, vector<128x128xf32>,
    return
  }
  func.func @transform_0(%arg0: i32) -> (i32, i32) {
    %c0_i32 = arith.constant 0 : i32
    %c0_i32_0 = arith.constant 0 : i32
    return %arg0, %c0_i32 : i32, i32
  }
  func.func @transform_1(%arg0: i32) -> (i32, i32) {
    %c0_i32 = arith.constant 0 : i32
    %c0_i32_0 = arith.constant 0 : i32
    %c0_i32_1 = arith.constant 0 : i32
    return %c0_i32, %c0_i32_0 : i32, i32
  }
  func.func @transform_2(%arg0: i32) -> (i32, i32) {
    %c0_i32 = arith.constant 0 : i32
    %c0_i32_0 = arith.constant 0 : i32
    %c0_i32_1 = arith.constant 0 : i32
    return %c0_i32, %c0_i32_0 : i32, i32
  }
  func.func @transform_3(%arg0: i32) -> (i32, i32) {
    %c0_i32 = arith.constant 0 : i32
    %c0_i32_0 = arith.constant 0 : i32
    return %arg0, %c0_i32 : i32, i32
  }
}

</mosaic_0001>

<bundles_post_ra>
// kernel: down_forward.5
= control target key start
LH: loop header
LB: loop body
LE: loop exit
PB: predicated region body
PF: predicated region fallthrough
CT: control target
= control target key end

     0   :  { %s297_s0 = inlined_call_operand.vmem [shape: bf16[128,128], index: 0, kind: input, shape index: {}]   ;;  %s298_s1 = inlined_call_operand.vmem [shape: f32[1,128], index: 1, kind: input, shape index: {}]   ;;  %s299_s2 = inlined_call_operand.vmem [shape: f32[1,128], index: 2, kind: input, shape index: {}]   ;;  %s300_s3 = inlined_call_operand.vmem [shape: f32[128,128], index: 3, kind: output, shape index: {}]  }
   0x1   :  { %v123_v0 = vld [vmem:[%s297_s0] sm:$0xff]   ;;  %v154_v5 = vld [vmem:[%s297_s0 + $0x8] sm:$0xff]   ;;  %v155_v8 = vld [vmem:[%s297_s0 + $0x10] sm:$0xff]  }
   0x2   :  { %v189_v1 = vld [vmem:[%s298_s1] ss:$0 sm:$0xff]  ;;  %v124_v2 = vunpack.c.l.bf16 %v123_v0  ;;  %v125_v4 = vunpack.c.h.bf16 %v123_v0  ;;  %v128_v6 = vunpack.c.l.bf16 %v154_v5  ;;  %v129_v7 = vunpack.c.h.bf16 %v154_v5  ;;  %v156_v9 = vld [vmem:[%s297_s0 + $0x18] sm:$0xff]   ;;  %v158_v31 = vld [vmem:[%s297_s0 + $0x28] sm:$0xff]  }
   0x3   :  { %v194_v3 = vld [vmem:[%s299_s2] ss:$0 sm:$0xff]  ;;  %v132_v12 = vunpack.c.l.bf16 %v155_v8  ;;  %v133_v13 = vunpack.c.h.bf16 %v155_v8  ;;  %v136_v16 = vunpack.c.l.bf16 %v156_v9  ;;  %v137_v17 = vunpack.c.h.bf16 %v156_v9  ;;  %v159_v36 = vld [vmem:[%s297_s0 + $0x30] sm:$0xff]   ;;  %v160_v41 = vld [vmem:[%s297_s0 + $0x38] sm:$0xff]  }
   0x4   :  { %v50_v10 = vmul.f32 %v189_v1, %v124_v2  ;;  %v51_v11 = vmul.f32 %v189_v1, %v125_v4  ;;  %v52_v14 = vmul.f32 %v189_v1, %v128_v6  ;;  %v53_v15 = vmul.f32 %v189_v1, %v129_v7  ;;  %v157_v26 = vld [vmem:[%s297_s0 + $0x20] sm:$0xff]  }
   0x5   :  { %v54_v20 = vmul.f32 %v189_v1, %v132_v12  ;;  %v55_v21 = vmul.f32 %v189_v1, %v133_v13  ;;  %v56_v24 = vmul.f32 %v189_v1, %v136_v16  ;;  %v57_v25 = vmul.f32 %v189_v1, %v137_v17 }
   0x6   :  { %v70_v18 = vadd.f32 %v194_v3, %v50_v10  ;;  %v71_v19 = vadd.f32 %v194_v3, %v51_v11  ;;  %v72_v22 = vadd.f32 %v194_v3, %v52_v14  ;;  %v73_v23 = vadd.f32 %v194_v3, %v53_v15 }
   0x7   :  { %v74_v29 = vadd.f32 %v194_v3, %v54_v20  ;;  %v75_v30 = vadd.f32 %v194_v3, %v55_v21  ;;  %v76_v34 = vadd.f32 %v194_v3, %v56_v24  ;;  %v77_v35 = vadd.f32 %v194_v3, %v57_v25 }
   0x8   :  { %v86_v27 = vmax.f32 %v70_v18, 0.0  ;;  %v87_v28 = vmax.f32 %v71_v19, 0.0  ;;  %v88_v32 = vmax.f32 %v72_v22, 0.0  ;;  %v89_v33 = vmax.f32 %v73_v23, 0.0 }
   0x9   :  { %v90_v37 = vmax.f32 %v74_v29, 0.0  ;;  %v91_v38 = vmax.f32 %v75_v30, 0.0  ;;  %v140_v39 = vunpack.c.l.bf16 %v157_v26  ;;  %v141_v40 = vunpack.c.h.bf16 %v157_v26 }
   0xa   :  { %102 = vst [vmem:[%s300_s3] sm:$0xff] %v86_v27  ;;  %v92_v42 = vmax.f32 %v76_v34, 0.0  ;;  %v93_v43 = vmax.f32 %v77_v35, 0.0  ;;  %v144_v44 = vunpack.c.l.bf16 %v158_v31  ;;  %v145_v45 = vunpack.c.h.bf16 %v158_v31 }
   0xb   :  { %103 = vst [vmem:[%s300_s3 + $0x8] sm:$0xff] %v87_v28  ;;  %v58_v46 = vmul.f32 %v189_v1, %v140_v39  ;;  %v59_v47 = vmul.f32 %v189_v1, %v141_v40  ;;  %v148_v48 = vunpack.c.l.bf16 %v159_v36  ;;  %v149_v49 = vunpack.c.h.bf16 %v159_v36 }
   0xc   :  { %104 = vst [vmem:[%s300_s3 + $0x10] sm:$0xff] %v88_v32  ;;  %v60_v50 = vmul.f32 %v189_v1, %v144_v44  ;;  %v61_v51 = vmul.f32 %v189_v1, %v145_v45  ;;  %v152_v52 = vunpack.c.l.bf16 %v160_v41  ;;  %v153_v53 = vunpack.c.h.bf16 %v160_v41 }
   0xd   :  { %105 = vst [vmem:[%s300_s3 + $0x18] sm:$0xff] %v89_v33  ;;  %v78_v54 = vadd.f32 %v194_v3, %v58_v46  ;;  %v79_v55 = vadd.f32 %v194_v3, %v59_v47  ;;  %v62_v56 = vmul.f32 %v189_v1, %v148_v48  ;;  %v63_v57 = vmul.f32 %v189_v1, %v149_v49 }
   0xe   :  { %106 = vst [vmem:[%s300_s3 + $0x20] sm:$0xff] %v90_v37  ;;  %v80_v58 = vadd.f32 %v194_v3, %v60_v50  ;;  %v81_v59 = vadd.f32 %v194_v3, %v61_v51  ;;  %v64_v60 = vmul.f32 %v189_v1, %v152_v52  ;;  %v65_v61 = vmul.f32 %v189_v1, %v153_v53 }
   0xf   :  { %107 = vst [vmem:[%s300_s3 + $0x28] sm:$0xff] %v91_v38  ;;  %v94_v62 = vmax.f32 %v78_v54, 0.0  ;;  %v95_v63 = vmax.f32 %v79_v55, 0.0  ;;  %v82_v0 = vadd.f32 %v194_v3, %v62_v56  ;;  %v83_v2 = vadd.f32 %v194_v3, %v63_v57 }
  0x10   :  { %108 = vst [vmem:[%s300_s3 + $0x30] sm:$0xff] %v92_v42  ;;  %v96_v4 = vmax.f32 %v80_v58, 0.0  ;;  %v97_v5 = vmax.f32 %v81_v59, 0.0  ;;  %v84_v6 = vadd.f32 %v194_v3, %v64_v60  ;;  %v85_v1 = vadd.f32 %v194_v3, %v65_v61 }
  0x11   :  { %109 = vst [vmem:[%s300_s3 + $0x38] sm:$0xff] %v93_v43  ;;  %v98_v7 = vmax.f32 %v82_v0, 0.0  ;;  %v99_v8 = vmax.f32 %v83_v2, 0.0 }
  0x12   :  { %110 = vst [vmem:[%s300_s3 + $0x40] sm:$0xff] %v94_v62  ;;  %v100_v9 = vmax.f32 %v84_v6, 0.0  ;;  %v101_v3 = vmax.f32 %v85_v1, 0.0 }
  0x13   :  { %111 = vst [vmem:[%s300_s3 + $0x48] sm:$0xff] %v95_v63 }
  0x14   :  { %112 = vst [vmem:[%s300_s3 + $0x50] sm:$0xff] %v96_v4 }
  0x15   :  { %113 = vst [vmem:[%s300_s3 + $0x58] sm:$0xff] %v97_v5 }
  0x16   :  { %114 = vst [vmem:[%s300_s3 + $0x60] sm:$0xff] %v98_v7 }
  0x17   :  { %115 = vst [vmem:[%s300_s3 + $0x68] sm:$0xff] %v99_v8 }
  0x18   :  { %116 = vst [vmem:[%s300_s3 + $0x70] sm:$0xff] %v100_v9 }
  0x19   :  { %117 = vst [vmem:[%s300_s3 + $0x78] sm:$0xff] %v101_v3 }

// kernel: down_forward.3
= control target key start
LH: loop header
LB: loop body
LE: loop exit
PB: predicated region body
PF: predicated region fallthrough
CT: control target
= control target key end

     0   :  { %s2096_s12 = smov 0   ;;  %s2573_s0 = inlined_call_operand.vmem [shape: bf16[2,4,8,8,4], index: 0, kind: input, shape index: {}]   ;;  %s2574_s1 = inlined_call_operand.vmem [shape: bf16[9,4,128], index: 1, kind: input, shape index: {}]   ;;  %s2575_s2 = inlined_call_operand.vmem [shape: bf16[2,8,8,128], index: 2, kind: output, shape index: {0}]   ;;  %s2576_s3 = inlined_call_operand.vmem [shape: f32[2,2,128], index: 3, kind: output, shape index: {1}]  }
   0x1 LB: > { %s1787_s13 = sadd.s32 4294967295, %s2073_s12   ;;  %p1791_p0 = scmp.ge.s32.totalorder %s2073_s12, 1  ;;  %s2073_s12 = sphi %s2096_s12, %s14_s12  }
   0x2   : > { %p140_p1 = scmp.lt.s32.totalorder %s2073_s12, 3 }
   0x4   : > { %p141_p2 = pnand %p1791_p0, %p140_p1 }
   0x5   : > { %p168_p3 = scmp.lt.s32.totalorder (!%p141_p2), %s1787_s13, 1 }
   0x6   : > { %144 = sbr.rel (%p141_p2) target bundleno = 360 (0x168), region = 28 }
   0xb   : > { %v1821_v0 = vld [vmem:[%s2574_s1 + $0x2] sm:$0x3]  ;;  %vm630_vm0 = vcmask 1041408   ;;  %vm314_vm1 = vcmask 27648   ;;  %vm316_vm2 = vcmask 24576   ;;  %v2075_v2 = vmov 0  }
   0xc   : > { %v632_v1 = vsel %vm630_vm0, %v1821_v0, 0  ;;  %320 = vst.msk [vmem:[#allocation2 + $0x10] sm:$0xf] %vm314_vm1, %v2075_v2  ;;  %s2586_s13 = smov (!%p168_p3, %s1787_s13), 1  ;;  %vm418_vm3 = vsmask.f32 7938 }
   0xd   : > { %2055 = vmatpush.bf16.msra.mxu1 %v632_v1  ;;  %2056 = vmatpush.bf16.msra.mxu2 %v632_v1  ;;  %321 = vst.msk [vmem:[#allocation2 + $0x14] sm:$0x1] %vm316_vm2, %v2075_v2  ;;  %s1939_s16 = sshll.u32 %s2586_s13, 7  ;;  %vm424_vm4 = vsmask.f32 256  ;;  %vm2194_vm5 = vmand %vm314_vm1, %vm418_vm3  ;;  %vm617_vm10 = vcmask 31744  }
   0xe   : > { %2057 = vmatpush.bf16.msra.mxu3 %v632_v1  ;;  %641 = vmatpush.bf16.msra.mxu0 %v632_v1  ;;  %322 = vst.msk [vmem:[#allocation2 + $0x18] sm:$0xf] %vm314_vm1, %v2075_v2  ;;  %s2122_s19 = scalar_lea.vmem %s2573_s0, %s1939_s16  ;;  %vm2204_vm6 = vmand %vm316_vm2, %vm424_vm4  ;;  %vm488_vm7 = vsmask.f32 3328  ;;  %vm489_vm8 = vsmask.f32 7440 }
   0xf   : > { %323 = vst.msk [vmem:[#allocation2 + $0x1c] sm:$0x1] %vm316_vm2, %v2075_v2  ;;  %v2127_v3 = vld [vmem:[%s2122_s19] sm:$0xff]   ;;  %v2037_v4 = vld [vmem:[%s2122_s19 + $0x8] sm:$0xff]   ;;  %v2038_v22 = vld [vmem:[%s2122_s19 + $0x10] sm:$0xff]   ;;  %vm751_vm11 = vcmask 1042432  }
  0x10   : > { %315 = vst.msk [vmem:[#allocation2] sm:$0xf] %vm314_vm1, %v2075_v2  ;;  %v2131_v5 = vld [vmem:[%s2122_s19 + $0x20] sm:$0xff]   ;;  %v1956_v6 = vunpack.c.h.bf16 %v2127_v3  ;;  %v1959_v7 = vunpack.c.l.bf16 %v2037_v4  ;;  %v2041_v9 = vld [vmem:[%s2122_s19 + $0x28] sm:$0xff]   ;;  %v1960_v12 = vunpack.c.h.bf16 %v2037_v4  ;;  %v2042_v23 = vld [vmem:[%s2122_s19 + $0x30] sm:$0xff]   ;;  %v1963_v26 = vunpack.c.l.bf16 %v2038_v22  ;;  %s1940_s9 = sshll.u32 %s2586_s13, 5 }
  0x11   : > { %317 = vst.msk [vmem:[#allocation2 + $0x4] sm:$0x1] %vm316_vm2, %v2075_v2  ;;  %v1972_v8 = vunpack.c.h.bf16 %v2131_v5  ;;  %v2139_v10 = vld [vmem:[%s2122_s19 + $0x40] sm:$0xff]   ;;  %v2045_v11 = vld [vmem:[%s2122_s19 + $0x48] sm:$0xff]   ;;  %v1975_v13 = vunpack.c.l.bf16 %v2041_v9  ;;  %v1976_v18 = vunpack.c.h.bf16 %v2041_v9  ;;  %v1979_v27 = vunpack.c.l.bf16 %v2042_v23  ;;  %v2046_v29 = vld [vmem:[%s2122_s19 + $0x50] sm:$0xff]   ;;  %s2545_s14 = scalar_lea.vmem %s2575_s2, %s1940_s9  ;;  %s1796_s15 = sshll.u32 %s2586_s13, 1 }
  0x12   : > { %318 = vst.msk [vmem:[#allocation2 + $0x8] sm:$0xf] %vm314_vm1, %v2075_v2  ;;  %v1988_v14 = vunpack.c.h.bf16 %v2139_v10  ;;  %v1991_v15 = vunpack.c.l.bf16 %v2045_v11  ;;  %v2146_v16 = vld [vmem:[%s2122_s19 + $0x60] sm:$0xff]   ;;  %v2049_v17 = vld [vmem:[%s2122_s19 + $0x68] sm:$0xff]   ;;  %v1992_v24 = vunpack.c.h.bf16 %v2045_v11  ;;  %v2050_v30 = vld [vmem:[%s2122_s19 + $0x70] sm:$0xff]   ;;  %v1995_v33 = vunpack.c.l.bf16 %v2046_v29  ;;  %s181_s18 = scalar_lea.vmem %s2576_s3, %s1796_s15 }
  0x13   : > { %319 = vst.msk [vmem:[#allocation2 + $0xc] sm:$0x1] %vm316_vm2, %v2075_v2  ;;  %v217_v19 = vmax.f32 %v1956_v6, %v1972_v8  ;;  %v2004_v20 = vunpack.c.h.bf16 %v2146_v16  ;;  %v2007_v21 = vunpack.c.l.bf16 %v2049_v17  ;;  %v218_v25 = vmax.f32 %v1959_v7, %v1975_v13  ;;  %v2163_v35 = vld [vmem:[%s2122_s19 + $0x18] sm:$0xff]   ;;  %v429_v62 = vld [vmem:[#allocation2 + $0x10] sm:$0xf]  ;;  %vm2251_vm9 = vmor %vm488_vm7, %vm489_vm8 }
  0x14   : > { %324 = vst.msk [vmem:[#allocation2 + $0x20] sm:$0xf] %vm314_vm1, %v2075_v2  ;;  %v219_v28 = vmax.f32 %v1960_v12, %v1976_v18  ;;  %v2008_v34 = vunpack.c.h.bf16 %v2049_v17  ;;  %v2166_v36 = vld [vmem:[%s2122_s19 + $0x38] sm:$0xff]   ;;  %v220_v37 = vmax.f32 %v1963_v26, %v1979_v27  ;;  %v2011_v38 = vunpack.c.l.bf16 %v2050_v30  ;;  %v432_v63 = vld [vmem:[#allocation2 + $0x14] sm:$0x1] }
  0x15   : > { %325 = vst.msk [vmem:[#allocation2 + $0x24] sm:$0x1] %vm316_vm2, %v2075_v2  ;;  %v267_v31 = vmax.f32 %v1988_v14, %v2004_v20  ;;  %v268_v32 = vmax.f32 %v1991_v15, %v2007_v21  ;;  %v1964_v39 = vunpack.c.h.bf16 %v2038_v22  ;;  %v1967_v40 = vunpack.c.l.bf16 %v2163_v35  ;;  %v2172_v41 = vld [vmem:[%s2122_s19 + $0x58] sm:$0xff]  }
  0x16   : > { %326 = vst.msk [vmem:[#allocation2 + $0x28] sm:$0xf] %vm314_vm1, %v2075_v2  ;;  %v269_v44 = vmax.f32 %v1992_v24, %v2008_v34  ;;  %v270_v45 = vmax.f32 %v1995_v33, %v2011_v38  ;;  %v1980_v46 = vunpack.c.h.bf16 %v2042_v23  ;;  %v1983_v47 = vunpack.c.l.bf16 %v2166_v36  ;;  %v2183_v53 = vld [vmem:[%s2122_s19 + $0x78] sm:$0xff]  }
  0x17   : > { %327 = vst.msk [vmem:[#allocation2 + $0x2c] sm:$0x1] %vm316_vm2, %v2075_v2  ;;  %v299_v42 = vmax.f32 %v217_v19, %v267_v31  ;;  %v300_v43 = vmax.f32 %v218_v25, %v268_v32  ;;  %v1996_v48 = vunpack.c.h.bf16 %v2046_v29  ;;  %v1999_v52 = vunpack.c.l.bf16 %v2172_v41  ;;  %v435_v0 = vld [vmem:[#allocation2 + $0x18] sm:$0xf]  ;;  %v438_v12 = vld [vmem:[#allocation2 + $0x1c] sm:$0x1] }
  0x18   : > { %328 = vst.msk [vmem:[#allocation2 + $0x30] sm:$0xf] %vm314_vm1, %v2075_v2  ;;  %v301_v51 = vmax.f32 %v219_v28, %v269_v44  ;;  %v302_v54 = vmax.f32 %v220_v37, %v270_v45  ;;  %v221_v55 = vmax.f32 %v1964_v39, %v1980_v46  ;;  %v222_v56 = vmax.f32 %v1967_v40, %v1983_v47 }
  0x19   : > { %329 = vst.msk [vmem:[#allocation2 + $0x34] sm:$0x1] %vm316_vm2, %v2075_v2  ;;  %v307_v49 = vpack.c.bf16 %v299_v42, %v299_v42  ;;  %v308_v50 = vpack.c.bf16 %v300_v43, %v300_v43  ;;  %v2012_v57 = vunpack.c.h.bf16 %v2050_v30  ;;  %v2015_v6 = vunpack.c.l.bf16 %v2183_v53 }
  0x1a   : > { %330 = vst.msk [vmem:[#allocation2 + $0x38] sm:$0xf] %vm314_vm1, %v2075_v2  ;;  %v309_v1 = vpack.c.bf16 %v301_v51, %v301_v51  ;;  %v310_v4 = vpack.c.bf16 %v302_v54, %v302_v54  ;;  %v1955_v13 = vunpack.c.l.bf16 %v2127_v3  ;;  %v1971_v14 = vunpack.c.l.bf16 %v2131_v5  ;;  %v2226_v51 = vld [vmem:[#allocation2] sm:$0xf] }
  0x1b   : > { %331 = vst.msk [vmem:[#allocation2 + $0x3c] sm:$0x1] %vm316_vm2, %v2075_v2  ;;  %v345_v58 = vshrl.u32 %v307_v49, 16  ;;  %v348_v59 = vshll.u32 %v307_v49, 16  ;;  %v353_v60 = vshrl.u32 %v308_v50, 16  ;;  %v356_v61 = vshll.u32 %v308_v50, 16 }
  0x1c   : > { %332 = vst.msk [vmem:[#allocation2 + $0x40] sm:$0xf] %vm314_vm1, %v2075_v2  ;;  %v271_v7 = vmax.f32 %v1996_v48, %v2012_v57  ;;  %v361_v17 = vshrl.u32 %v309_v1, 16  ;;  %v364_v18 = vshll.u32 %v309_v1, 16  ;;  %v369_v19 = vshrl.u32 %v310_v4, 16 }
  0x1d   : > { %333 = vst.msk [vmem:[#allocation2 + $0x44] sm:$0x1] %vm316_vm2, %v2075_v2  ;;  %v347_v8 = vrot.slane %v345_v58, 7  ;;  %v355_v9 = vrot.slane %v353_v60, 7  ;;  %v372_v20 = vshll.u32 %v310_v4, 16  ;;  %v272_v5 = vmax.f32 %v1999_v52, %v2015_v6 }
  0x1e   : > { %334 = vst.msk [vmem:[#allocation2 + $0x48] sm:$0xf] %vm314_vm1, %v2075_v2  ;;  %v363_v3 = vrot.slane %v361_v17, 7  ;;  %v371_v25 = vrot.slane %v369_v19, 7  ;;  %v303_v26 = vmax.f32 %v221_v55, %v271_v7  ;;  %v441_v30 = vld [vmem:[#allocation2 + $0x20] sm:$0xf]  ;;  %v1987_v43 = vunpack.c.l.bf16 %v2139_v10 }
  0x1f   : > { %335 = vst.msk [vmem:[#allocation2 + $0x4c] sm:$0x1] %vm316_vm2, %v2075_v2  ;;  %v350_v21 = vor.u32 %v348_v59, %v347_v8  ;;  %v351_v22 = vrot.slane %v347_v8, 4  ;;  %v358_v23 = vor.u32 %v356_v61, %v355_v9  ;;  %v359_v24 = vrot.slane %v355_v9, 4  ;;  %v444_v31 = vld [vmem:[#allocation2 + $0x24] sm:$0x1] }
  0x20   : > { %v447_v32 = vld [vmem:[#allocation2 + $0x28] sm:$0xf]  ;;  %v366_v33 = vor.u32 %v364_v18, %v363_v3  ;;  %v367_v34 = vrot.slane %v363_v3, 4  ;;  %v374_v37 = vor.u32 %v372_v20, %v371_v25  ;;  %v375_v38 = vrot.slane %v371_v25, 4  ;;  %v450_v39 = vld [vmem:[#allocation2 + $0x2c] sm:$0x1] }
  0x21   : > { %v430_v27 = vsel %vm2194_vm5, %v350_v21, %v429_v62  ;;  %v433_v28 = vsel %vm2204_vm6, %v351_v22, %v432_v63  ;;  %v436_v2 = vsel %vm2194_vm5, %v358_v23, %v435_v0  ;;  %v439_v29 = vsel %vm2204_vm6, %v359_v24, %v438_v12  ;;  %v453_v52 = vld [vmem:[#allocation2 + $0x30] sm:$0xf]  ;;  %v456_v59 = vld [vmem:[#allocation2 + $0x34] sm:$0x1]  ;;  %v459_v60 = vld [vmem:[#allocation2 + $0x38] sm:$0xf] }
  0x22   : > { %431 = vst [vmem:[#allocation2 + $0x10] sm:$0xf] %v430_v27  ;;  %v304_v40 = vmax.f32 %v222_v56, %v272_v5  ;;  %v311_v42 = vpack.c.bf16 %v303_v26, %v303_v26  ;;  %v442_v44 = vsel %vm2194_vm5, %v366_v33, %v441_v30  ;;  %v445_v45 = vsel %vm2204_vm6, %v367_v34, %v444_v31  ;;  %v462_v19 = vld [vmem:[#allocation2 + $0x3c] sm:$0x1] }
  0x23   : > { %434 = vst [vmem:[#allocation2 + $0x14] sm:$0x1] %v433_v28  ;;  %v448_v46 = vsel %vm2194_vm5, %v374_v37, %v447_v32  ;;  %v2003_v50 = vunpack.c.l.bf16 %v2146_v16  ;;  %v451_v10 = vsel %vm2204_vm6, %v375_v38, %v450_v39  ;;  %v216_v54 = vmax.f32 %v1955_v13, %v1971_v14  ;;  %v1854_v16 = vld [vmem:[%s2574_s1 + $0x4] sm:$0x3] }
  0x24   : > { %437 = vst [vmem:[#allocation2 + $0x18] sm:$0xf] %v436_v2  ;;  %v312_v47 = vpack.c.bf16 %v304_v40, %v304_v40  ;;  %v377_v48 = vshrl.u32 %v311_v42, 16  ;;  %v380_v49 = vshll.u32 %v311_v42, 16  ;;  %v492_v61 = vshrl.u32 %v2226_v51, 16 }
  0x25   : > { %440 = vst [vmem:[#allocation2 + $0x1c] sm:$0x1] %v439_v29  ;;  %v266_v58 = vmax.f32 %v1987_v43, %v2003_v50  ;;  %v813_v8 = vsel %vm630_vm0, %v1854_v16, 0  ;;  %vm752_vm12 = vcmask 1046532  }
  0x26   : > { %443 = vst [vmem:[#allocation2 + $0x20] sm:$0xf] %v442_v44  ;;  %v379_v55 = vrot.slane %v377_v48, 7  ;;  %v385_v56 = vshrl.u32 %v312_v47, 16  ;;  %v388_v57 = vshll.u32 %v312_v47, 16  ;;  %822 = vmatpush.bf16.msrb.mxu2 %v813_v8  ;;  %vm2301_vm13 = vmor %vm751_vm11, %vm752_vm12 }
  0x27   : > { %446 = vst [vmem:[#allocation2 + $0x24] sm:$0x1] %v445_v45  ;;  %v298_v9 = vmax.f32 %v216_v54, %v266_v58 }
  0x28   : > { %449 = vst [vmem:[#allocation2 + $0x28] sm:$0xf] %v448_v46  ;;  %v382_v63 = vor.u32 %v380_v49, %v379_v55  ;;  %v383_v0 = vrot.slane %v379_v55, 4  ;;  %v387_v1 = vrot.slane %v385_v56, 7  ;;  %v495_v49 = vshll.u32 %v2226_v51, 16 }
  0x29   : > { %v473_v62 = vld [vmem:[#allocation2 + $0x10] sm:$0xf]  ;;  %452 = vst [vmem:[#allocation2 + $0x2c] sm:$0x1] %v451_v10  ;;  %v306_v54 = vpack.c.bf16 %v298_v9, %v298_v9  ;;  %v494_v9 = vrot.slane %v492_v61, 4 }
  0x2a   : > { %v2234_v4 = vld [vmem:[#allocation2 + $0x14] sm:$0x1]  ;;  %v520_v6 = vshrl.u32 %v473_v62, 16  ;;  %v523_v7 = vshll.u32 %v473_v62, 16  ;;  %v390_v14 = vor.u32 %v388_v57, %v387_v1  ;;  %v391_v17 = vrot.slane %v387_v1, 4 }
  0x2b   : > { %v474_v12 = vld [vmem:[#allocation2 + $0x18] sm:$0xf]  ;;  %v529_v13 = vshll.u32 %v2234_v4, 16  ;;  %v454_v18 = vsel %vm2194_vm5, %v382_v63, %v453_v52  ;;  %v457_v26 = vsel %vm2204_vm6, %v383_v0, %v456_v59  ;;  %v337_v62 = vshrl.u32 %v306_v54, 16 }
  0x2c   : > { %v2240_v20 = vld [vmem:[#allocation2 + $0x1c] sm:$0x1]  ;;  %v522_v21 = vrot.slane %v520_v6, 4  ;;  %v525_v22 = vrot.slane %v523_v7, 5  ;;  %v534_v23 = vshrl.u32 %v474_v12, 16  ;;  %v537_v24 = vshll.u32 %v474_v12, 16 }
  0x2d   : > { %v531_v3 = vrot.slane %v529_v13, 5  ;;  %v543_v25 = vshll.u32 %v2240_v20, 16  ;;  %v475_v5 = vld [vmem:[#allocation2 + $0x20] sm:$0xf]  ;;  %455 = vst [vmem:[#allocation2 + $0x30] sm:$0xf] %v454_v18  ;;  %v460_v27 = vsel %vm2194_vm5, %v390_v14, %v459_v60  ;;  %v463_v39 = vsel %vm2204_vm6, %v391_v17, %v462_v19 }
  0x2e   : > { %v526_v28 = vor.u32 %v525_v22, %v522_v21  ;;  %v536_v2 = vrot.slane %v534_v23, 4  ;;  %v539_v29 = vrot.slane %v537_v24, 5  ;;  %v2247_v30 = vld [vmem:[#allocation2 + $0x24] sm:$0x1]  ;;  %v548_v31 = vshrl.u32 %v475_v5, 16 }
  0x2f   : > { %v545_v33 = vrot.slane %v543_v25, 5  ;;  %v476_v34 = vld [vmem:[#allocation2 + $0x28] sm:$0xf]  ;;  %v551_v37 = vshll.u32 %v475_v5, 16  ;;  %v557_v38 = vshll.u32 %v2247_v30, 16  ;;  %v340_v63 = vshll.u32 %v306_v54, 16 }
  0x30   : > { %v527_v40 = vrot.slane %v526_v28, 4  ;;  %v540_v42 = vor.u32 %v539_v29, %v536_v2  ;;  %v2258_v43 = vld [vmem:[#allocation2 + $0x2c] sm:$0x1]  ;;  %v550_v44 = vrot.slane %v548_v31, 4  ;;  %v562_v45 = vshrl.u32 %v476_v34, 16 }
  0x31   : > { %v553_v46 = vrot.slane %v551_v37, 5  ;;  %v565_v47 = vshll.u32 %v476_v34, 16  ;;  %v571_v48 = vshll.u32 %v2258_v43, 16  ;;  %458 = vst [vmem:[#allocation2 + $0x34] sm:$0x1] %v457_v26  ;;  %v559_v57 = vrot.slane %v557_v38, 5 }
  0x32   : > { %v532_v50 = vsel %vm2251_vm9, %v527_v40, %v531_v3  ;;  %v541_v10 = vrot.slane %v540_v42, 4  ;;  %v564_v52 = vrot.slane %v562_v45, 4  ;;  %461 = vst [vmem:[#allocation2 + $0x38] sm:$0xf] %v460_v27  ;;  %v339_v12 = vrot.slane %v337_v62, 7 }
  0x33   : > { %v607_v55 = vunpack.c.l.b16 %v532_v50  ;;  %v554_v56 = vor.u32 %v553_v46, %v550_v44  ;;  %v567_v58 = vrot.slane %v565_v47, 5  ;;  %464 = vst [vmem:[#allocation2 + $0x3c] sm:$0x1] %v463_v39  ;;  %v573_v60 = vrot.slane %v571_v48, 5  ;;  %v420_v19 = vld [vmem:[#allocation2 + $0x8] sm:$0xf] }
  0x34   : > { %v546_v59 = vsel %vm2251_vm9, %v541_v10, %v545_v33  ;;  %v477_v16 = vld [vmem:[#allocation2 + $0x30] sm:$0xf]  ;;  %v426_v21 = vld [vmem:[#allocation2 + $0xc] sm:$0x1]  ;;  %v342_v3 = vor.u32 %v340_v63, %v339_v12  ;;  %v343_v25 = vrot.slane %v339_v12, 4  ;;  %v497_v27 = vrot.slane %v495_v49, 5 }
  0x35   : > { %v608_v0 = vunpack.c.l.b16 %v546_v59  ;;  %v555_v1 = vrot.slane %v554_v56, 4  ;;  %v568_v6 = vor.u32 %v567_v58, %v564_v52  ;;  %v576_v7 = vshrl.u32 %v477_v16, 16  ;;  %v480_v5 = vld [vmem:[#allocation2 + $0x4] sm:$0x1]  ;;  %v1859_v28 = vld [vmem:[%s2574_s1 + $0x6] sm:$0x3] }
  0x36   : > { %v579_v8 = vshll.u32 %v477_v16, 16  ;;  %v479_v37 = vld [vmem:[%s2574_s1] sm:$0x3]  ;;  %v421_v40 = vsel %vm2194_vm5, %v342_v3, %v420_v19  ;;  %v427_v42 = vsel %vm2204_vm6, %v343_v25, %v426_v21  ;;  %v1880_v44 = vld [vmem:[%s2574_s1 + $0x8] sm:$0x3]  ;;  %v498_v50 = vor.u32 %v497_v27, %v494_v9 }
  0x37   : > { %v614_v13 = vpack.c.b16 %v608_v0, %v607_v55  ;;  %v560_v14 = vsel %vm2251_vm9, %v555_v1, %v559_v57  ;;  %v569_v17 = vrot.slane %v568_v6, 4  ;;  %v578_v18 = vrot.slane %v576_v7, 4  ;;  %v727_v45 = vld [vmem:[#allocation2] sm:$0xe]  ;;  %422 = vst [vmem:[#allocation2 + $0x8] sm:$0xf] %v421_v40 }
  0x38   : > { %v609_v22 = vunpack.c.l.b16 %v560_v14  ;;  %v2270_v23 = vld [vmem:[#allocation2 + $0x34] sm:$0x1]  ;;  %v581_v24 = vrot.slane %v579_v8, 5  ;;  %428 = vst [vmem:[#allocation2 + $0xc] sm:$0x1] %v427_v42  ;;  %v501_v10 = vshll.u32 %v480_v5, 16 }
  0x39   : > { %1823 = vmatmul.msk.bf16.vlgmr.msra.gmra.mxu1 %vm617_vm10, %v614_v13  ;;  %v574_v51 = vsel %vm2251_vm9, %v569_v17, %v573_v60  ;;  %v478_v61 = vld [vmem:[#allocation2 + $0x38] sm:$0xf]  ;;  %v585_v26 = vshll.u32 %v2270_v23, 16  ;;  %v895_v52 = vsel %vm630_vm0, %v1859_v28, 0  ;;  %v1898_v54 = vld [vmem:[%s2574_s1 + $0xc] sm:$0x3] }
  0x3a   : > { %v610_v2 = vunpack.c.l.b16 %v574_v51  ;;  %v2279_v29 = vld [vmem:[#allocation2 + $0x3c] sm:$0x1]  ;;  %v582_v31 = vor.u32 %v581_v24, %v578_v18  ;;  %v590_v33 = vshrl.u32 %v478_v61, 16  ;;  %v593_v34 = vshll.u32 %v478_v61, 16  ;;  %904 = vmatpush.bf16.msrb.mxu3 %v895_v52  ;;  %v936_v16 = vld [vmem:[#allocation2 + $0x10] sm:$0xf] }
  0x3b   : > { %v587_v38 = vrot.slane %v585_v26, 5  ;;  %v599_v39 = vshll.u32 %v2279_v29, 16  ;;  %v696_v58 = vsel %vm630_vm0, %v479_v37, 0  ;;  %v756_v59 = vrot.slane %v480_v5, 5  ;;  %v1919_v8 = vld [vmem:[%s2574_s1 + $0xe] sm:$0x3] }
  0x3c   : > { %v615_v46 = vpack.c.b16 %v610_v2, %v609_v22  ;;  %v583_v47 = vrot.slane %v582_v31, 4  ;;  %v592_v48 = vrot.slane %v590_v33, 4  ;;  %v595_v49 = vrot.slane %v593_v34, 5  ;;  %705 = vmatpush.bf16.msrb.mxu1 %v696_v58  ;;  %v1828_v13 = vld [vmem:[#allocation2] sm:$0xf] }
  0x3d   : > { %v601_v57 = vrot.slane %v599_v39, 5  ;;  %v1089_v60 = vsel %vm630_vm0, %v1880_v44, 0  ;;  %v1846_v0 = vrot.slane %v727_v45, 9  ;;  %v1294_v1 = vsel %vm630_vm0, %v1898_v54, 0  ;;  %v1893_v42 = vld [vmem:[%s2574_s1 + $0xa] sm:$0x3] }
  0x3e   : > { %1824 = vmatmul.msk.bf16.vlgmr.msra.gmra.mxu2 %vm617_vm10, %v615_v46  ;;  %v588_v55 = vsel %vm2251_vm9, %v583_v47, %v587_v38  ;;  %v596_v56 = vor.u32 %v595_v49, %v592_v48  ;;  %1098 = vmatpush.bf16.msrb.mxu0 %v1089_v60  ;;  %v499_v7 = vrot.slane %v498_v50, 4  ;;  %v503_v9 = vrot.slane %v501_v10, 5  ;;  %v472_v19 = vld [vmem:[#allocation2 + $0x8] sm:$0xf]  ;;  %v2323_v54 = vld [vmem:[#allocation2 + $0x14] sm:$0x1] }
  0x3f   : > { %v611_v6 = vunpack.c.l.b16 %v588_v55  ;;  %1303 = vmatpush.bf16.msra.mxu2 %v1294_v1  ;;  %v965_v14 = vshrl.u32 %v936_v16, 16  ;;  %v968_v17 = vshll.u32 %v936_v16, 16  ;;  %v1941_v21 = vld [vmem:[#allocation2 + $0x4] sm:$0xf0]  ;;  %v757_v24 = vsel %vm2301_vm13, %v1846_v0, %v756_v59  ;;  %v481_v3 = vld [vmem:[#allocation2 + $0xc] sm:$0x1] }
  0x40   : > { %v597_v62 = vrot.slane %v596_v56, 4  ;;  %v728_v22 = vld [vmem:[#allocation2 + $0x8] sm:$0xe]  ;;  %v506_v25 = vshrl.u32 %v472_v19, 16  ;;  %v509_v5 = vshll.u32 %v472_v19, 16  ;;  %v1488_v61 = vsel %vm630_vm0, %v1919_v8, 0 }
  0x41   : > { %v1847_v51 = vrot.slane %v728_v22, 9  ;;  %v515_v27 = vshll.u32 %v481_v3, 16  ;;  %v760_v28 = vrot.slane %v481_v3, 5  ;;  %v1829_v2 = vor.u32 %v1941_v21, %v1828_v13  ;;  %v934_v31 = vld [vmem:[#allocation2 + $0x8] sm:$0xf] }
  0x42   : > { %v602_v12 = vsel %vm2251_vm9, %v597_v62, %v601_v57  ;;  %v508_v33 = vrot.slane %v506_v25, 4  ;;  %v511_v34 = vrot.slane %v509_v5, 5  ;;  %v788_v37 = vunpack.c.l.b16 %v757_v24  ;;  %v2326_v58 = vld [vmem:[#allocation2 + $0xc] sm:$0x1]  ;;  %v1932_v59 = vld [vmem:[%s2574_s1 + $0x10] sm:$0x3] }
  0x43   : > { %v612_v18 = vunpack.c.l.b16 %v602_v12  ;;  %v951_v38 = vshrl.u32 %v934_v31, 16  ;;  %v761_v39 = vsel %vm2301_vm13, %v1847_v51, %v760_v28  ;;  %v954_v40 = vshll.u32 %v934_v31, 16  ;;  %v729_v16 = vld [vmem:[#allocation2 + $0x10] sm:$0xe]  ;;  %v730_v62 = vld [vmem:[#allocation2 + $0x18] sm:$0xe] }
  0x44   : > { %v504_v44 = vsel %vm2251_vm9, %v499_v7, %v503_v9  ;;  %v512_v45 = vor.u32 %v511_v34, %v508_v33  ;;  %v517_v46 = vrot.slane %v515_v27, 5  ;;  %v789_v47 = vunpack.c.l.b16 %v761_v39  ;;  %v1862_v19 = vld [vmem:[#allocation2 + $0x8] sm:$0xf]  ;;  %v1945_v21 = vld [vmem:[#allocation2 + $0xc] sm:$0xf0] }
  0x45   : > { %v616_v26 = vpack.c.b16 %v612_v18, %v611_v6  ;;  %v953_v48 = vrot.slane %v951_v38, 4  ;;  %v967_v49 = vrot.slane %v965_v14, 4  ;;  %v970_v50 = vrot.slane %v968_v17, 5  ;;  %v1832_v22 = vld [vmem:[#allocation2 + $0x10] sm:$0xf] }
  0x46   : > { %v513_v10 = vrot.slane %v512_v45, 4  ;;  %v796_v52 = vpack.c.b16 %v789_v47, %v788_v37  ;;  %v956_v55 = vrot.slane %v954_v40, 5  ;;  %v1211_v56 = vsel %vm630_vm0, %v1893_v42, 0  ;;  %v1942_v24 = vld [vmem:[#allocation2 + $0x14] sm:$0xf0] }
  0x47   : > { %1825 = vmatmul.msk.bf16.vlgmr.msra.gmra.mxu3 %vm617_vm10, %v616_v26  ;;  %v605_v57 = vunpack.c.l.b16 %v504_v44  ;;  %1220 = vmatpush.bf16.msra.mxu1 %v1211_v56  ;;  %v974_v1 = vshll.u32 %v2323_v54, 16  ;;  %v764_v6 = vrot.slane %v2234_v4, 5  ;;  %v960_v8 = vshll.u32 %v2326_v58, 16  ;;  %v938_v4 = vld [vmem:[#allocation2 + $0x18] sm:$0xf] }
  0x48   : > { %1497 = vmatpush.bf16.msra.mxu3 %v1488_v61  ;;  %v518_v60 = vsel %vm2251_vm9, %v513_v10, %v517_v46  ;;  %v957_v7 = vor.u32 %v956_v55, %v953_v48  ;;  %v971_v12 = vor.u32 %v970_v50, %v967_v49  ;;  %v1610_v9 = vsel %vm630_vm0, %v1932_v59, 0  ;;  %v940_v61 = vld [vmem:[#allocation2 + $0x20] sm:$0xf]  ;;  %v2352_v49 = vld [vmem:[#allocation2 + $0x1c] sm:$0x1] }
  0x49   : > { %1842 = vmatmul.msk.bf16.vlgmr.msrb.gmra.mxu1 %vm617_vm10, %v1829_v2  ;;  %v606_v0 = vunpack.c.l.b16 %v518_v60  ;;  %v1848_v14 = vrot.slane %v729_v16, 9  ;;  %v1849_v17 = vrot.slane %v730_v62, 9  ;;  %v768_v18 = vrot.slane %v2240_v20, 5  ;;  %v2354_v55 = vld [vmem:[#allocation2 + $0x24] sm:$0x1] }
  0x4a   : > { %v958_v3 = vrot.slane %v957_v7, 4  ;;  %v962_v25 = vrot.slane %v960_v8, 5  ;;  %v972_v5 = vrot.slane %v971_v12, 4  ;;  %v976_v51 = vrot.slane %v974_v1, 5  ;;  %v731_v60 = vld [vmem:[#allocation2 + $0x20] sm:$0xe] }
  0x4b   : > { %v613_v13 = vpack.c.b16 %v606_v0, %v605_v57  ;;  %v1863_v26 = vor.u32 %v1945_v21, %v1862_v19  ;;  %v765_v27 = vsel %vm2301_vm13, %v1848_v14, %v764_v6  ;;  %v769_v20 = vsel %vm2301_vm13, %v1849_v17, %v768_v18  ;;  %v1866_v7 = vld [vmem:[#allocation2 + $0x18] sm:$0xf]  ;;  %v1836_v18 = vld [vmem:[#allocation2 + $0x20] sm:$0xf]  ;;  %v1870_v15 = vld [vmem:[#allocation2 + $0x28] sm:$0xf] }
  0x4c   : > { %v979_v28 = vshrl.u32 %v938_v4, 16  ;;  %v982_v2 = vshll.u32 %v938_v4, 16  ;;  %v1833_v31 = vor.u32 %v1942_v24, %v1832_v22  ;;  %v993_v33 = vshrl.u32 %v940_v61, 16  ;;  %v1943_v22 = vld [vmem:[#allocation2 + $0x24] sm:$0xf0] }
  0x4d   : > { %1822 = vmatmul.msk.bf16.vlgmr.msra.gmra.mxu0 %vm617_vm10, %v613_v13  ;;  %v996_v34 = vshll.u32 %v940_v61, 16  ;;  %v963_v37 = vsel %vm2251_vm9, %v958_v3, %v962_v25  ;;  %v977_v38 = vsel %vm2251_vm9, %v972_v5, %v976_v51  ;;  %v790_v39 = vunpack.c.l.b16 %v765_v27  ;;  %v1946_v13 = vld [vmem:[#allocation2 + $0x1c] sm:$0xf0]  ;;  %v942_v24 = vld [vmem:[#allocation2 + $0x28] sm:$0xf] }
  0x4e   : > { %1855 = vmatmul.msk.bf16.vlgmr.msrb.gmra.mxu2 %vm617_vm10, %v796_v52  ;;  %1619 = vmatpush.bf16.msra.mxu0 %v1610_v9  ;;  %v791_v40 = vunpack.c.l.b16 %v769_v20  ;;  %v981_v42 = vrot.slane %v979_v28, 4  ;;  %v984_v44 = vrot.slane %v982_v2, 5  ;;  %v1968_v45 = vunpack.c.h.bf16 %v2163_v35  ;;  %v732_v35 = vld [vmem:[#allocation2 + $0x28] sm:$0xe]  ;;  %v944_v4 = vld [vmem:[#allocation2 + $0x30] sm:$0xf] }
  0x4f   : > { %v1984_v46 = vunpack.c.h.bf16 %v2166_v36  ;;  %v1064_v47 = vunpack.c.l.b16 %v963_v37  ;;  %v1065_v48 = vunpack.c.l.b16 %v977_v38  ;;  %v995_v50 = vrot.slane %v993_v33, 4 }
  0x50   : > { %v998_v10 = vrot.slane %v996_v34, 5  ;;  %v797_v52 = vpack.c.b16 %v791_v40, %v790_v39  ;;  %v2000_v56 = vunpack.c.h.bf16 %v2172_v41  ;;  %v985_v57 = vor.u32 %v984_v44, %v981_v42  ;;  %v465_v44 = vld [vmem:[#allocation2 + $0x40] sm:$0xf] }
  0x51   : > { %v988_v59 = vshll.u32 %v2352_v49, 16  ;;  %v223_v16 = vmax.f32 %v1968_v45, %v1984_v46  ;;  %v2016_v36 = vunpack.c.h.bf16 %v2183_v53  ;;  %v1072_v62 = vpack.c.b16 %v1065_v48, %v1064_v47  ;;  %v468_v45 = vld [vmem:[#allocation2 + $0x44] sm:$0x1]  ;;  %v2374_v46 = vld [vmem:[#allocation2 + $0x2c] sm:$0x1] }
  0x52   : > { %v999_v0 = vor.u32 %v998_v10, %v995_v50  ;;  %v1002_v1 = vshll.u32 %v2354_v55, 16  ;;  %v1850_v8 = vrot.slane %v731_v60, 9  ;;  %v772_v12 = vrot.slane %v2247_v30, 5 }
  0x53   : > { %v273_v6 = vmax.f32 %v2000_v56, %v2016_v36  ;;  %v1851_v41 = vrot.slane %v732_v35, 9  ;;  %v776_v9 = vrot.slane %v2258_v43, 5  ;;  %v986_v14 = vrot.slane %v985_v57, 4  ;;  %v2376_v56 = vld [vmem:[#allocation2 + $0x34] sm:$0x1] }
  0x54   : > { %v990_v17 = vrot.slane %v988_v59, 5  ;;  %v1000_v53 = vrot.slane %v999_v0, 4  ;;  %v1004_v21 = vrot.slane %v1002_v1, 5  ;;  %v1867_v3 = vor.u32 %v1946_v13, %v1866_v7  ;;  %v733_v57 = vld [vmem:[#allocation2 + $0x30] sm:$0xe] }
  0x55   : > { %v305_v19 = vmax.f32 %v223_v16, %v273_v6  ;;  %v773_v25 = vsel %vm2301_vm13, %v1850_v8, %v772_v12  ;;  %v777_v30 = vsel %vm2301_vm13, %v1851_v41, %v776_v9  ;;  %v1837_v51 = vor.u32 %v1943_v22, %v1836_v18  ;;  %v734_v59 = vld [vmem:[#allocation2 + $0x38] sm:$0xe]  ;;  %v1947_v41 = vld [vmem:[#allocation2 + $0x2c] sm:$0xf0] }
  0x56   : > { %v991_v5 = vsel %vm2251_vm9, %v986_v14, %v990_v17  ;;  %v1007_v61 = vshrl.u32 %v942_v24, 16  ;;  %v1005_v27 = vsel %vm2251_vm9, %v1000_v53, %v1004_v21  ;;  %v1021_v20 = vshrl.u32 %v944_v4, 16  ;;  %v946_v12 = vld [vmem:[#allocation2 + $0x38] sm:$0xf]  ;;  %v1840_v18 = vld [vmem:[#allocation2 + $0x30] sm:$0xf] }
  0x57   : > { %1876 = vmatmul.msk.bf16.vlgmr.msrb.gmra.mxu3 %vm617_vm10, %v1863_v26  ;;  %v313_v43 = vpack.c.bf16 %v305_v19, %v305_v19  ;;  %v1010_v26 = vshll.u32 %v942_v24, 16  ;;  %v1024_v28 = vshll.u32 %v944_v4, 16  ;;  %v793_v33 = vunpack.c.l.b16 %v777_v30  ;;  %v1944_v19 = vld [vmem:[#allocation2 + $0x34] sm:$0xf0] }
  0x58   : > { %v1066_v38 = vunpack.c.l.b16 %v991_v5  ;;  %v1067_v39 = vunpack.c.l.b16 %v1005_v27  ;;  %v1009_v40 = vrot.slane %v1007_v61, 4  ;;  %v1023_v47 = vrot.slane %v1021_v20, 4  ;;  %v2398_v20 = vld [vmem:[#allocation2 + $0x3c] sm:$0x1] }
  0x59   : > { %1843 = vmatmul.msk.bf16.gmra.mxu1 %vm617_vm10, %v1833_v31  ;;  %v393_v2 = vshrl.u32 %v313_v43, 16  ;;  %v792_v31 = vunpack.c.l.b16 %v773_v25  ;;  %v396_v34 = vshll.u32 %v313_v43, 16  ;;  %v1012_v42 = vrot.slane %v1010_v26, 5 }
  0x5a   : > { %v1026_v48 = vrot.slane %v1024_v28, 5  ;;  %v1016_v16 = vshll.u32 %v2374_v46, 16  ;;  %v1073_v36 = vpack.c.b16 %v1067_v39, %v1066_v38  ;;  %v1030_v1 = vshll.u32 %v2376_v56, 16  ;;  %v1128_v28 = vld [vmem:[#allocation2 + $0x8] sm:$0xe] }
  0x5b   : > { %v395_v37 = vrot.slane %v393_v2, 7  ;;  %v1852_v6 = vrot.slane %v733_v57, 9  ;;  %v780_v7 = vrot.slane %v2270_v23, 5  ;;  %v1853_v8 = vrot.slane %v734_v59, 9  ;;  %v1129_v2 = vld [vmem:[#allocation2 + $0x10] sm:$0xe] }
  0x5c   : > { %v1027_v0 = vor.u32 %v1026_v48, %v1023_v47  ;;  %v784_v11 = vrot.slane %v2279_v29, 5  ;;  %v1018_v13 = vrot.slane %v1016_v16, 5  ;;  %v1032_v17 = vrot.slane %v1030_v1, 5  ;;  %v2411_v1 = vld [vmem:[#allocation2 + $0x14] sm:$0x1] }
  0x5d   : > { %1881 = vmatmul.msk.bf16.vlgmr.msrb.gmra.mxu0 %vm617_vm10, %v1072_v62  ;;  %v398_v50 = vor.u32 %v396_v34, %v395_v37  ;;  %v399_v10 = vrot.slane %v395_v37, 4  ;;  %v1013_v62 = vor.u32 %v1012_v42, %v1009_v40  ;;  %v781_v53 = vsel %vm2301_vm13, %v1852_v6, %v780_v7  ;;  %v1335_v34 = vld [vmem:[#allocation2 + $0x18] sm:$0xf] }
  0x5e   : > { %1856 = vmatmul.msk.bf16.gmra.mxu2 %vm617_vm10, %v797_v52  ;;  %v798_v52 = vpack.c.b16 %v793_v33, %v792_v31  ;;  %v1028_v14 = vrot.slane %v1027_v0, 4  ;;  %v785_v23 = vsel %vm2301_vm13, %v1853_v8, %v784_v11  ;;  %v1035_v21 = vshrl.u32 %v946_v12, 16 }
  0x5f   : > { %v466_v60 = vsel %vm2194_vm5, %v398_v50, %v465_v44  ;;  %v469_v35 = vsel %vm2204_vm6, %v399_v10, %v468_v45  ;;  %v1014_v9 = vrot.slane %v1013_v62, 4  ;;  %v1038_v22 = vshll.u32 %v946_v12, 16 }
  0x60   : > { %467 = vst [vmem:[#allocation2 + $0x40] sm:$0xf] %v466_v60  ;;  %v1871_v29 = vor.u32 %v1947_v41, %v1870_v15  ;;  %v1158_v25 = vrot.slane %v2323_v54, 5  ;;  %v1841_v30 = vor.u32 %v1944_v19, %v1840_v18  ;;  %v794_v43 = vunpack.c.l.b16 %v781_v53  ;;  %v1333_v54 = vld [vmem:[#allocation2 + $0x10] sm:$0xf] }
  0x61   : > { %470 = vst [vmem:[#allocation2 + $0x44] sm:$0x1] %v469_v35  ;;  %v795_v5 = vunpack.c.l.b16 %v785_v23  ;;  %v1033_v61 = vsel %vm2251_vm9, %v1028_v14, %v1032_v17  ;;  %v1037_v26 = vrot.slane %v1035_v21, 4  ;;  %v1040_v27 = vrot.slane %v1038_v22, 5  ;;  %v1874_v35 = vld [vmem:[#allocation2 + $0x38] sm:$0xf] }
  0x62   : > { %v1154_v37 = vrot.slane %v2326_v58, 5  ;;  %v1069_v39 = vunpack.c.l.b16 %v1033_v61  ;;  %v1044_v45 = vshll.u32 %v2398_v20, 16  ;;  %v1885_v47 = vrot.slane %v1128_v28, 9  ;;  %v1949_v61 = vld [vmem:[#allocation2 + $0x14] sm:$0xf0] }
  0x63   : > { %v799_v40 = vpack.c.b16 %v795_v5, %v794_v43  ;;  %v1041_v44 = vor.u32 %v1040_v27, %v1037_v26  ;;  %v1886_v48 = vrot.slane %v1129_v2, 9  ;;  %v1350_v50 = vshrl.u32 %v1333_v54, 16  ;;  %v1337_v43 = vld [vmem:[#allocation2 + $0x20] sm:$0xf]  ;;  %v1339_v5 = vld [vmem:[#allocation2 + $0x28] sm:$0xf] }
  0x64   : > { %v1353_v10 = vshll.u32 %v1333_v54, 16  ;;  %v1367_v57 = vshll.u32 %v1335_v34, 16  ;;  %v1155_v62 = vsel %vm2301_vm13, %v1885_v47, %v1154_v37  ;;  %v1359_v18 = vshll.u32 %v2411_v1, 16 }
  0x65   : > { %v1042_v16 = vrot.slane %v1041_v44, 4  ;;  %v1159_v0 = vsel %vm2301_vm13, %v1886_v48, %v1158_v25  ;;  %v1352_v6 = vrot.slane %v1350_v50, 4  ;;  %v1166_v54 = vrot.slane %v2354_v55, 5  ;;  %v1527_v48 = vld [vmem:[#allocation2 + $0x10] sm:$0xe] }
  0x66   : > { %v1355_v7 = vrot.slane %v1353_v10, 5  ;;  %v1369_v11 = vrot.slane %v1367_v57, 5  ;;  %v1187_v14 = vunpack.c.l.b16 %v1159_v0  ;;  %v1381_v37 = vshll.u32 %v1337_v43, 16 }
  0x67   : > { %1877 = vmatmul.msk.bf16.gmra.mxu3 %vm617_vm10, %v1867_v3  ;;  %v948_v24 = vld [vmem:[#allocation2 + $0x40] sm:$0xf] }
  0x68   : > { %v1049_v4 = vshrl.u32 %v948_v24, 16  ;;  %v1052_v3 = vshll.u32 %v948_v24, 16  ;;  %v2402_v42 = vld [vmem:[#allocation2 + $0x44] sm:$0x1]  ;;  %v1948_v12 = vld [vmem:[#allocation2 + $0x3c] sm:$0xf0]  ;;  %v1356_v53 = vor.u32 %v1355_v7, %v1352_v6 }
  0x69   : > { %1844 = vmatmul.msk.bf16.gmra.mxu1 %vm617_vm10, %v1837_v51  ;;  %v1019_v51 = vsel %vm2251_vm9, %v1014_v9, %v1018_v13  ;;  %v1058_v60 = vshll.u32 %v2402_v42, 16  ;;  %v2413_v9 = vld [vmem:[#allocation2 + $0x1c] sm:$0x1]  ;;  %v1186_v13 = vunpack.c.l.b16 %v1155_v62  ;;  %v1875_v19 = vor.u32 %v1948_v12, %v1874_v35  ;;  %v1901_v24 = vld [vmem:[#allocation2 + $0x10] sm:$0xf] }
  0x6a   : > { %v1051_v31 = vrot.slane %v1049_v4, 4  ;;  %v1054_v33 = vrot.slane %v1052_v3, 5  ;;  %v1068_v38 = vunpack.c.l.b16 %v1019_v51  ;;  %v1373_v21 = vshll.u32 %v2413_v9, 16  ;;  %v1130_v4 = vld [vmem:[#allocation2 + $0x18] sm:$0xe] }
  0x6b   : > { %v1060_v41 = vrot.slane %v1058_v60, 5  ;;  %v1131_v3 = vld [vmem:[#allocation2 + $0x20] sm:$0xe]  ;;  %v1357_v26 = vrot.slane %v1356_v53, 4  ;;  %v1887_v2 = vrot.slane %v1130_v4, 9  ;;  %v1383_v10 = vrot.slane %v1381_v37, 5 }
  0x6c   : > { %v1055_v59 = vor.u32 %v1054_v33, %v1051_v31  ;;  %v1074_v58 = vpack.c.b16 %v1069_v39, %v1068_v38  ;;  %v1375_v28 = vrot.slane %v1373_v21, 5  ;;  %v1162_v31 = vrot.slane %v2352_v49, 5  ;;  %v2437_v60 = vld [vmem:[#allocation2 + $0x2c] sm:$0x1]  ;;  %v1905_v21 = vld [vmem:[#allocation2 + $0x20] sm:$0xf] }
  0x6d   : > { %1882 = vmatmul.msk.bf16.gmra.mxu0 %vm617_vm10, %v1073_v36  ;;  %v1046_v36 = vrot.slane %v1044_v45, 5  ;;  %v1888_v33 = vrot.slane %v1131_v3, 9  ;;  %v1392_v38 = vshrl.u32 %v1339_v5, 16  ;;  %v1395_v39 = vshll.u32 %v1339_v5, 16  ;;  %v1343_v3 = vld [vmem:[#allocation2 + $0x38] sm:$0xf] }
  0x6e   : > { %1857 = vmatmul.msk.bf16.gmra.mxu2 %vm617_vm10, %v798_v52  ;;  %v1364_v52 = vshrl.u32 %v1335_v34, 16  ;;  %v1056_v15 = vrot.slane %v1055_v59, 4  ;;  %v1378_v34 = vshrl.u32 %v1337_v43, 16  ;;  %v1163_v49 = vsel %vm2301_vm13, %v1887_v2, %v1162_v31  ;;  %v2435_v59 = vld [vmem:[#allocation2 + $0x24] sm:$0x1] }
  0x6f   : > { %v1047_v17 = vsel %vm2251_vm9, %v1042_v16, %v1046_v36  ;;  %v1167_v55 = vsel %vm2301_vm13, %v1888_v33, %v1166_v54  ;;  %v1397_v57 = vrot.slane %v1395_v39, 5  ;;  %v1528_v16 = vld [vmem:[#allocation2 + $0x18] sm:$0xe]  ;;  %v1924_v36 = vrot.slane %v1527_v48, 9  ;;  %v1530_v39 = vld [vmem:[#allocation2 + $0x28] sm:$0xe] }
  0x70   : > { %v1366_v8 = vrot.slane %v1364_v52, 4  ;;  %v1061_v22 = vsel %vm2251_vm9, %v1056_v15, %v1060_v41  ;;  %v1070_v25 = vunpack.c.l.b16 %v1047_v17  ;;  %v1380_v50 = vrot.slane %v1378_v34, 4 }
  0x71   : > { %v1071_v51 = vunpack.c.l.b16 %v1061_v22  ;;  %v1394_v52 = vrot.slane %v1392_v38, 4  ;;  %v1553_v62 = vrot.slane %v2411_v1, 5  ;;  %v1188_v0 = vunpack.c.l.b16 %v1163_v49  ;;  %v1950_v22 = vld [vmem:[#allocation2 + $0x24] sm:$0xf0]  ;;  %v1529_v38 = vld [vmem:[#allocation2 + $0x20] sm:$0xe] }
  0x72   : > { %v1370_v23 = vor.u32 %v1369_v11, %v1366_v8  ;;  %v1189_v6 = vunpack.c.l.b16 %v1167_v55  ;;  %v1384_v7 = vor.u32 %v1383_v10, %v1380_v50  ;;  %v1387_v8 = vshll.u32 %v2435_v59, 16 }
  0x73   : > { %v1075_v45 = vpack.c.b16 %v1071_v51, %v1070_v25  ;;  %v1398_v11 = vor.u32 %v1397_v57, %v1394_v52  ;;  %v1401_v12 = vshll.u32 %v2437_v60, 16  ;;  %v1925_v15 = vrot.slane %v1528_v16, 9 }
  0x74   : > { %v1371_v27 = vrot.slane %v1370_v23, 4  ;;  %v1557_v41 = vrot.slane %v2413_v9, 5  ;;  %v1195_v17 = vpack.c.b16 %v1189_v6, %v1188_v0  ;;  %v1389_v1 = vrot.slane %v1387_v8, 5  ;;  %v1341_v9 = vld [vmem:[#allocation2 + $0x30] sm:$0xf] }
  0x75   : > { %v1403_v53 = vrot.slane %v1401_v12, 5  ;;  %v1409_v2 = vshll.u32 %v1341_v9, 16  ;;  %v1420_v31 = vshrl.u32 %v1343_v3, 16  ;;  %v1423_v33 = vshll.u32 %v1343_v3, 16 }
  0x76   : > { %v1376_v47 = vsel %vm2251_vm9, %v1371_v27, %v1375_v28  ;;  %v1558_v23 = vsel %vm2301_vm13, %v1925_v15, %v1557_v41  ;;  %v1174_v27 = vrot.slane %v2376_v56, 5  ;;  %v1406_v28 = vshrl.u32 %v1341_v9, 16  ;;  %v2463_v56 = vld [vmem:[#allocation2 + $0x3c] sm:$0x1] }
  0x77   : > { %1878 = vmatmul.msk.bf16.gmra.mxu3 %vm617_vm10, %v1871_v29  ;;  %v1194_v29 = vpack.c.b16 %v1187_v14, %v1186_v13  ;;  %v1464_v35 = vunpack.c.l.b16 %v1376_v47  ;;  %v1554_v14 = vsel %vm2301_vm13, %v1924_v36, %v1553_v62  ;;  %v1586_v25 = vunpack.c.l.b16 %v1558_v23 }
  0x78   : > { %v1585_v4 = vunpack.c.l.b16 %v1554_v14  ;;  %v1411_v47 = vrot.slane %v1409_v2, 5  ;;  %v1422_v49 = vrot.slane %v1420_v31, 4  ;;  %v1425_v55 = vrot.slane %v1423_v33, 5  ;;  %v1135_v14 = vld [vmem:[#allocation2 + $0x40] sm:$0xe] }
  0x79   : > { %1845 = vmatmul.msk.bf16.gmra.mxu1 %vm617_vm10, %v1841_v30  ;;  %v1361_v30 = vrot.slane %v1359_v18, 5  ;;  %v1385_v18 = vrot.slane %v1384_v7, 4  ;;  %v1926_v48 = vrot.slane %v1529_v38, 9  ;;  %v1561_v50 = vrot.slane %v2435_v59, 5  ;;  %v1909_v59 = vld [vmem:[#allocation2 + $0x30] sm:$0xf] }
  0x7a   : > { %v1593_v54 = vpack.c.b16 %v1586_v25, %v1585_v4  ;;  %v1927_v57 = vrot.slane %v1530_v39, 9  ;;  %v1429_v16 = vshll.u32 %v2463_v56, 16  ;;  %v1426_v0 = vor.u32 %v1425_v55, %v1422_v49 }
  0x7b   : > { %v1362_v44 = vsel %vm2251_vm9, %v1357_v26, %v1361_v30  ;;  %v1906_v30 = vor.u32 %v1950_v22, %v1905_v21  ;;  %v1390_v43 = vsel %vm2251_vm9, %v1385_v18, %v1389_v1  ;;  %v1562_v7 = vsel %vm2301_vm13, %v1926_v48, %v1561_v50 }
  0x7c   : > { %v1465_v34 = vunpack.c.l.b16 %v1390_v43  ;;  %v1431_v15 = vrot.slane %v1429_v16, 5  ;;  %v1427_v41 = vrot.slane %v1426_v0, 4  ;;  %v1178_v21 = vrot.slane %v2398_v20, 5 }
  0x7d   : > { %1883 = vmatmul.msk.bf16.gmra.mxu0 %vm617_vm10, %v1074_v58  ;;  %v1463_v58 = vunpack.c.l.b16 %v1362_v44  ;;  %v2461_v44 = vld [vmem:[#allocation2 + $0x34] sm:$0x1]  ;;  %v1892_v22 = vrot.slane %v1135_v14, 9 }
  0x7e   : > { %1858 = vmatmul.msk.bf16.gmra.mxu2 %vm617_vm10, %v799_v40  ;;  %v1902_v40 = vor.u32 %v1949_v61, %v1901_v24  ;;  %v1133_v24 = vld [vmem:[#allocation2 + $0x30] sm:$0xe]  ;;  %v1170_v61 = vrot.slane %v2374_v46, 5  ;;  %v1432_v4 = vsel %vm2251_vm9, %v1427_v41, %v1431_v15  ;;  %v1569_v39 = vrot.slane %v2461_v44, 5  ;;  %v1534_v41 = vld [vmem:[#allocation2 + $0x48] sm:$0xe] }
  0x7f   : > { %v1471_v13 = vpack.c.b16 %v1464_v35, %v1463_v58  ;;  %v1890_v26 = vrot.slane %v1133_v24, 9  ;;  %v1565_v58 = vrot.slane %v2437_v60, 5  ;;  %v1415_v35 = vshll.u32 %v2461_v44, 16  ;;  %v1952_v44 = vld [vmem:[#allocation2 + $0x44] sm:$0xf0] }
  0x81   : > { %v1175_v46 = vsel %vm2301_vm13, %v1890_v26, %v1174_v27  ;;  %v1566_v8 = vsel %vm2301_vm13, %v1927_v57, %v1565_v58  ;;  %v1417_v12 = vrot.slane %v1415_v35, 5  ;;  %v1532_v26 = vld [vmem:[#allocation2 + $0x38] sm:$0xe]  ;;  %v1913_v58 = vld [vmem:[#allocation2 + $0x40] sm:$0xf] }
  0x82   : > { %v1191_v52 = vunpack.c.l.b16 %v1175_v46  ;;  %v1588_v18 = vunpack.c.l.b16 %v1566_v8  ;;  %v1573_v46 = vrot.slane %v2463_v56, 5 }
  0x87   : > { %1879 = vmatmul.msk.bf16.gmra.mxu3 %vm617_vm10, %v1875_v19  ;;  %v1399_v19 = vrot.slane %v1398_v11, 4  ;;  %v1951_v11 = vld [vmem:[#allocation2 + $0x34] sm:$0xf0] }
  0x88   : > { %v1910_v1 = vor.u32 %v1951_v11, %v1909_v59 }
  0x89   : > { %1894 = vmatmul.msk.bf16.vlgmr.msra.gmra.mxu1 %vm617_vm10, %v1194_v29  ;;  %v1132_v29 = vld [vmem:[#allocation2 + $0x28] sm:$0xe]  ;;  %v1404_v5 = vsel %vm2251_vm9, %v1399_v19, %v1403_v53  ;;  %v1345_v19 = vld [vmem:[#allocation2 + $0x40] sm:$0xf] }
  0x8a   : > { %v1889_v51 = vrot.slane %v1132_v29, 9  ;;  %v1466_v37 = vunpack.c.l.b16 %v1404_v5  ;;  %v1347_v53 = vld [vmem:[#allocation2 + $0x48] sm:$0xf]  ;;  %v1182_v29 = vrot.slane %v2402_v42, 5  ;;  %v1434_v9 = vshrl.u32 %v1345_v19, 16 }
  0x8b   : > { %v1437_v3 = vshll.u32 %v1345_v19, 16  ;;  %v1448_v25 = vshrl.u32 %v1347_v53, 16 }
  0x8c   : > { %v1472_v36 = vpack.c.b16 %v1466_v37, %v1465_v34  ;;  %v1183_v20 = vsel %vm2301_vm13, %v1892_v22, %v1182_v29  ;;  %v1436_v27 = vrot.slane %v1434_v9, 4  ;;  %v1346_v34 = vld [vmem:[#allocation2 + $0x44] sm:$0x1]  ;;  %v1348_v37 = vld [vmem:[#allocation2 + $0x4c] sm:$0x1] }
  0x8d   : > { %1884 = vmatmul.msk.bf16.gmra.mxu0 %vm617_vm10, %v1075_v45  ;;  %v1408_v45 = vrot.slane %v1406_v28, 4  ;;  %v1439_v28 = vrot.slane %v1437_v3, 5  ;;  %v1450_v2 = vrot.slane %v1448_v25, 4  ;;  %v1443_v49 = vshll.u32 %v1346_v34, 16 }
  0x8e   : > { %1915 = vmatmul.msk.bf16.vlgmr.msra.gmra.mxu2 %vm617_vm10, %v1902_v40  ;;  %v1171_v40 = vsel %vm2301_vm13, %v1889_v51, %v1170_v61  ;;  %v1468_v51 = vunpack.c.l.b16 %v1432_v4  ;;  %v1531_v61 = vld [vmem:[#allocation2 + $0x30] sm:$0xe]  ;;  %v1457_v48 = vshll.u32 %v1348_v37, 16 }
  0x8f   : > { %v1190_v10 = vunpack.c.l.b16 %v1171_v40  ;;  %v1412_v62 = vor.u32 %v1411_v47, %v1408_v45  ;;  %v1928_v38 = vrot.slane %v1531_v61, 9  ;;  %v1929_v40 = vrot.slane %v1532_v26, 9 }
  0x90   : > { %v1440_v47 = vor.u32 %v1439_v28, %v1436_v27  ;;  %v1445_v16 = vrot.slane %v1443_v49, 5 }
  0x91   : > { %v1196_v6 = vpack.c.b16 %v1191_v52, %v1190_v10  ;;  %v1413_v60 = vrot.slane %v1412_v62, 4  ;;  %v1570_v10 = vsel %vm2301_vm13, %v1928_v38, %v1569_v39  ;;  %v1574_v52 = vsel %vm2301_vm13, %v1929_v40, %v1573_v46 }
  0x92   : > { %v1441_v35 = vrot.slane %v1440_v47, 4  ;;  %v1589_v62 = vunpack.c.l.b16 %v1570_v10  ;;  %v1590_v0 = vunpack.c.l.b16 %v1574_v52 }
  0x93   : > { %v1418_v24 = vsel %vm2251_vm9, %v1413_v60, %v1417_v12  ;;  %v1533_v60 = vld [vmem:[#allocation2 + $0x40] sm:$0xe] }
  0x94   : > { %v1467_v42 = vunpack.c.l.b16 %v1418_v24  ;;  %v1595_v59 = vpack.c.b16 %v1590_v0, %v1589_v62  ;;  %v1930_v14 = vrot.slane %v1533_v60, 9 }
  0x96   : > { %v1473_v45 = vpack.c.b16 %v1468_v51, %v1467_v42 }
  0x97   : > { %1920 = vmatmul.msk.bf16.vlgmr.msra.gmra.mxu3 %vm617_vm10, %v1471_v13  ;;  %v1134_v13 = vld [vmem:[#allocation2 + $0x38] sm:$0xe] }
  0x98   : > { %v1891_v23 = vrot.slane %v1134_v13, 9 }
  0x99   : > { %1895 = vmatmul.msk.bf16.gmra.mxu1 %vm617_vm10, %v1195_v17  ;;  %v1587_v17 = vunpack.c.l.b16 %v1562_v7  ;;  %v1446_v7 = vsel %vm2251_vm9, %v1441_v35, %v1445_v16 }
  0x9a   : > { %v1179_v5 = vsel %vm2301_vm13, %v1891_v23, %v1178_v21  ;;  %v1469_v12 = vunpack.c.l.b16 %v1446_v7 }
  0x9b   : > { %v1594_v43 = vpack.c.b16 %v1588_v18, %v1587_v17  ;;  %v1192_v33 = vunpack.c.l.b16 %v1179_v5  ;;  %v1577_v17 = vrot.slane %v1346_v34, 5  ;;  %v1931_v18 = vrot.slane %v1534_v41, 9 }
  0x9d   : > { %1933 = vmatmul.msk.bf16.vlgmr.msra.gmra.mxu0 %vm617_vm10, %v1593_v54  ;;  %v1193_v54 = vunpack.c.l.b16 %v1183_v20  ;;  %v1578_v32 = vsel %vm2301_vm13, %v1930_v14, %v1577_v17 }
  0x9e   : > { %1916 = vmatmul.msk.bf16.gmra.mxu2 %vm617_vm10, %v1906_v30  ;;  %v1451_v30 = vshll.u32 %v1347_v53, 16  ;;  %v1591_v21 = vunpack.c.l.b16 %v1578_v32 }
  0x9f   : > { %v1197_v50 = vpack.c.b16 %v1193_v54, %v1192_v33 }
  0xa0   : > { %v1453_v31 = vrot.slane %v1451_v30, 5 }
  0xa2   : > { %v1454_v55 = vor.u32 %v1453_v31, %v1450_v2 }
  0xa4   : > { %v1455_v56 = vrot.slane %v1454_v55, 4 }
  0xa7   : > { %1921 = vmatmul.msk.bf16.gmra.mxu3 %vm617_vm10, %v1472_v36  ;;  %v1459_v36 = vrot.slane %v1457_v48, 5 }
  0xa9   : > { %1896 = vmatmul.msk.bf16.gmra.mxu1 %vm617_vm10, %v1196_v6  ;;  %v1914_v6 = vor.u32 %v1952_v44, %v1913_v58  ;;  %v1460_v8 = vsel %vm2251_vm9, %v1455_v56, %v1459_v36 }
  0xaa   : > { %v1470_v15 = vunpack.c.l.b16 %v1460_v8 }
  0xac   : > { %v1474_v19 = vpack.c.b16 %v1470_v15, %v1469_v12 }
  0xad   : > { %1934 = vmatmul.msk.bf16.gmra.mxu0 %vm617_vm10, %v1594_v43 }
  0xae   : > { %1917 = vmatmul.msk.bf16.gmra.mxu2 %vm617_vm10, %v1910_v1  ;;  %v1581_v1 = vrot.slane %v1348_v37, 5 }
  0xb0   : > { %v1582_v53 = vsel %vm2301_vm13, %v1931_v18, %v1581_v1 }
  0xb1   : > { %v1592_v22 = vunpack.c.l.b16 %v1582_v53 }
  0xb3   : > { %v1596_v4 = vpack.c.b16 %v1592_v22, %v1591_v21 }
  0xb6   : > { %v648_v57 = vpop.f32.mrf.mxu1 }
  0xb7   : > { %1922 = vmatmul.msk.bf16.gmra.mxu3 %vm617_vm10, %v1473_v45 }
  0xb9   : > { %1897 = vmatmul.msk.bf16.gmra.mxu1 %vm617_vm10, %v1197_v50 }
  0xbd   : > { %1935 = vmatmul.msk.bf16.gmra.mxu0 %vm617_vm10, %v1595_v59 }
  0xbe   : > { %1918 = vmatmul.msk.bf16.gmra.mxu2 %vm617_vm10, %v1914_v6  ;;  %v2501_v11 = vpop.f32.mrf.mxu1 }
  0xc1   : > { %v653_v13 = vpop.f32.mrf.mxu2 }
  0xc6   : > { %v707_v23 = vpop.f32.mrf.mxu1 }
  0xc7   : > { %1923 = vmatmul.msk.bf16.gmra.mxu3 %vm617_vm10, %v1474_v19 }
  0xc9   : > { %v2509_v29 = vpop.f32.mrf.mxu2 }
  0xca   : > { %v2511_v24 = vpop.f32.mrf.mxu3  ;;  %v643_v9 = vpop.f32.mrf.mxu0 }
  0xcb   : > { %v708_v25 = vadd.f32 %v707_v23, %v643_v9 }
  0xcd   : > { %1936 = vmatmul.msk.bf16.gmra.mxu0 %vm617_vm10, %v1596_v4 }
  0xce   : > { %v709_v3 = vpop.f32.mrf.mxu1 }
  0xd1   : > { %v824_v30 = vpop.f32.mrf.mxu2 }
  0xd2   : > { %v2514_v43 = vpop.f32.mrf.mxu3  ;;  %v844_v63 = vadd.f32 %v824_v30, %v708_v25  ;;  %v645_v5 = vpop.f32.mrf.mxu0 }
  0xd3   : > { %v710_v15 = vadd.f32 %v709_v3, %v645_v5 }
  0xd6   : > { %v712_v20 = vpop.f32.mrf.mxu1 }
  0xd7   : > { %v713_v42 = vadd.f32 %v712_v20, %v648_v57 }
  0xd9   : > { %v826_v51 = vpop.f32.mrf.mxu2 }
  0xda   : > { %v906_v61 = vpop.f32.mrf.mxu3  ;;  %v1100_v27 = vpop.f32.mrf.mxu0 }
  0xdb   : > { %v926_v26 = vadd.f32 %v906_v61, %v844_v63 }
  0xdd   : > { %v1120_v2 = vadd.f32 %v1100_v27, %v926_v26 }
  0xde   : > { %v714_v28 = vpop.f32.mrf.mxu1 }
  0xdf   : > { %v715_v9 = vadd.f32 %v714_v28, %v2501_v11 }
  0xe1   : > { %v829_v31 = vpop.f32.mrf.mxu2 }
  0xe2   : > { %v908_v33 = vpop.f32.mrf.mxu3  ;;  %v846_v54 = vadd.f32 %v829_v31, %v713_v42  ;;  %v1102_v34 = vpop.f32.mrf.mxu0 }
  0xe6   : > { %v717_v37 = vpop.f32.mrf.mxu1 }
  0xe7   : > { %v718_v38 = vadd.f32 %v717_v37, %v653_v13  ;;  %v845_v13 = vadd.f32 %v826_v51, %v710_v15 }
  0xe9   : > { %v831_v39 = vpop.f32.mrf.mxu2  ;;  %v927_v17 = vadd.f32 %v908_v33, %v845_v13 }
  0xea   : > { %v911_v40 = vpop.f32.mrf.mxu3  ;;  %v1105_v45 = vpop.f32.mrf.mxu0  ;;  %v847_v5 = vadd.f32 %v831_v39, %v715_v9 }
  0xeb   : > { %v928_v46 = vadd.f32 %v911_v40, %v846_v54  ;;  %v1121_v53 = vadd.f32 %v1102_v34, %v927_v17 }
  0xed   : > { %v1122_v49 = vadd.f32 %v1105_v45, %v928_v46 }
  0xee   : > { %v2516_v47 = vpop.f32.mrf.mxu1 }
  0xf1   : > { %v834_v55 = vpop.f32.mrf.mxu2 }
  0xf2   : > { %v913_v48 = vpop.f32.mrf.mxu3  ;;  %v848_v50 = vadd.f32 %v834_v55, %v718_v38  ;;  %v1107_v10 = vpop.f32.mrf.mxu0 }
  0xf3   : > { %v929_v26 = vadd.f32 %v913_v48, %v847_v5  ;;  %v720_v48 = vadd.f32 %v2516_v47, %v2509_v29 }
  0xf5   : > { %v1123_v39 = vadd.f32 %v1107_v10, %v929_v26 }
  0xf6   : > { %v2518_v52 = vpop.f32.mrf.mxu1 }
  0xf9   : > { %v2520_v57 = vpop.f32.mrf.mxu2 }
  0xfa   : > { %v916_v58 = vpop.f32.mrf.mxu3  ;;  %v1110_v35 = vpop.f32.mrf.mxu0 }
  0xfb   : > { %v930_v44 = vadd.f32 %v916_v58, %v848_v50 }
  0xfd   : > { %v1124_v56 = vadd.f32 %v1110_v35, %v930_v44 }
  0xfe   : > { %v2522_v16 = vpop.f32.mrf.mxu1 }
 0x101   : > { %v2524_v36 = vpop.f32.mrf.mxu2 }
 0x102   : > { %v2526_v62 = vpop.f32.mrf.mxu3  ;;  %v2528_v0 = vpop.f32.mrf.mxu0 }
 0x106   : > { %v1222_v6 = vpop.f32.mrf.mxu1 }
 0x107   : > { %v1242_v32 = vadd.f32 %v1222_v6, %v1120_v2  ;;  %v849_v6 = vadd.f32 %v2520_v57, %v720_v48 }
 0x109   : > { %v2530_v7 = vpop.f32.mrf.mxu2  ;;  %v931_v17 = vadd.f32 %v2526_v62, %v849_v6 }
 0x10a   : > { %v2532_v8 = vpop.f32.mrf.mxu3  ;;  %v2534_v59 = vpop.f32.mrf.mxu0 }
 0x10e   : > { %v1224_v12 = vpop.f32.mrf.mxu1 }
 0x10f   : > { %v1243_v21 = vadd.f32 %v1224_v12, %v1121_v53 }
 0x111   : > { %v1305_v60 = vpop.f32.mrf.mxu2 }
 0x112   : > { %v2536_v41 = vpop.f32.mrf.mxu3  ;;  %v2538_v14 = vpop.f32.mrf.mxu0  ;;  %v1325_v23 = vadd.f32 %v1305_v60, %v1242_v32 }
 0x116   : > { %v1227_v18 = vpop.f32.mrf.mxu1 }
 0x117   : > { %v1244_v51 = vadd.f32 %v1227_v18, %v1122_v49 }
 0x119   : > { %v1307_v1 = vpop.f32.mrf.mxu2 }
 0x11a   : > { %v1499_v19 = vpop.f32.mrf.mxu3  ;;  %v1621_v22 = vpop.f32.mrf.mxu0  ;;  %v1326_v4 = vadd.f32 %v1307_v1, %v1243_v21 }
 0x11b   : > { %v1519_v3 = vadd.f32 %v1499_v19, %v1325_v23  ;;  %v723_v19 = vadd.f32 %v2518_v52, %v2511_v24  ;;  %v725_v24 = vadd.f32 %v2522_v16, %v2514_v43 }
 0x11d   : > { %v1641_v42 = vadd.f32 %v1621_v22, %v1519_v3  ;;  %v850_v57 = vadd.f32 %v2524_v36, %v723_v19  ;;  %v851_v36 = vadd.f32 %v2530_v7, %v725_v24 }
 0x11e   : > { %v1229_v63 = vpop.f32.mrf.mxu1 }
 0x11f   : > { %v1663_v11 = vmul.f32 %v1641_v42, %v1641_v42  ;;  %v1245_v46 = vadd.f32 %v1229_v63, %v1123_v39  ;;  %v932_v62 = vadd.f32 %v2532_v8, %v850_v57  ;;  %v933_v8 = vadd.f32 %v2536_v41, %v851_v36 }
 0x121   : > { %v1310_v25 = vpop.f32.mrf.mxu2  ;;  %v1127_v7 = vadd.f32 %v2538_v14, %v933_v8 }
 0x122   : > { %v1501_v30 = vpop.f32.mrf.mxu3  ;;  %v1623_v61 = vpop.f32.mrf.mxu0  ;;  %v1327_v2 = vadd.f32 %v1310_v25, %v1244_v51 }
 0x123   : > { %v1520_v20 = vadd.f32 %v1501_v30, %v1326_v4 }
 0x125   : > { %v1642_v27 = vadd.f32 %v1623_v61, %v1520_v20 }
 0x126   : > { %v1232_v40 = vpop.f32.mrf.mxu1 }
 0x127   : > { %v1649_v28 = vadd.f32 %v1642_v27, %v1641_v42  ;;  %v1664_v31 = vmul.f32 %v1642_v27, %v1642_v27  ;;  %v2020_v33 = vpack.c.bf16 %v1642_v27, %v1641_v42  ;;  %v1246_v60 = vadd.f32 %v1232_v40, %v1124_v56 }
 0x128   : > { %v1125_v56 = vadd.f32 %v2528_v0, %v931_v17  ;;  %v1126_v0 = vadd.f32 %v2534_v59, %v932_v62 }
 0x129   : > { %v1312_v54 = vpop.f32.mrf.mxu2  ;;  %v1671_v37 = vadd.f32 %v1664_v31, %v1663_v11  ;;  %2021 = vst [vmem:[%s2545_s14] sm:$0xff] %v2020_v33  }
 0x12a   : > { %v1504_v34 = vpop.f32.mrf.mxu3  ;;  %v1626_v45 = vpop.f32.mrf.mxu0  ;;  %v1328_v55 = vadd.f32 %v1312_v54, %v1245_v46 }
 0x12b   : > { %v1521_v38 = vadd.f32 %v1504_v34, %v1327_v2 }
 0x12d   : > { %v1643_v49 = vadd.f32 %v1626_v45, %v1521_v38 }
 0x12e   : > { %v1234_v10 = vpop.f32.mrf.mxu1 }
 0x12f   : > { %v1650_v50 = vadd.f32 %v1649_v28, %v1643_v49  ;;  %v1665_v58 = vmul.f32 %v1643_v49, %v1643_v49  ;;  %v1247_v4 = vadd.f32 %v1234_v10, %v1125_v56 }
 0x131   : > { %v1315_v44 = vpop.f32.mrf.mxu2  ;;  %v1672_v12 = vadd.f32 %v1671_v37, %v1665_v58 }
 0x132   : > { %v1506_v35 = vpop.f32.mrf.mxu3  ;;  %v1628_v13 = vpop.f32.mrf.mxu0  ;;  %v1329_v1 = vadd.f32 %v1315_v44, %v1246_v60 }
 0x133   : > { %v1522_v15 = vadd.f32 %v1506_v35, %v1328_v55 }
 0x135   : > { %v1644_v18 = vadd.f32 %v1628_v13, %v1522_v15 }
 0x136   : > { %v1237_v30 = vpop.f32.mrf.mxu1 }
 0x137   : > { %v1651_v29 = vadd.f32 %v1650_v50, %v1644_v18  ;;  %v1666_v47 = vmul.f32 %v1644_v18, %v1644_v18  ;;  %v2025_v32 = vpack.c.bf16 %v1644_v18, %v1643_v49  ;;  %v1248_v61 = vadd.f32 %v1237_v30, %v1126_v0 }
 0x139   : > { %v1317_v53 = vpop.f32.mrf.mxu2  ;;  %v1673_v21 = vadd.f32 %v1672_v12, %v1666_v47  ;;  %2052 = vst [vmem:[%s2545_s14 + $0x8] sm:$0xff] %v2025_v32  }
 0x13a   : > { %v1509_v23 = vpop.f32.mrf.mxu3  ;;  %v1631_v9 = vpop.f32.mrf.mxu0  ;;  %v1330_v25 = vadd.f32 %v1317_v53, %v1247_v4 }
 0x13b   : > { %v1523_v22 = vadd.f32 %v1509_v23, %v1329_v1 }
 0x13d   : > { %v1645_v3 = vadd.f32 %v1631_v9, %v1523_v22 }
 0x13e   : > { %v1239_v31 = vpop.f32.mrf.mxu1 }
 0x13f   : > { %v1652_v52 = vadd.f32 %v1651_v29, %v1645_v3  ;;  %v1667_v63 = vmul.f32 %v1645_v3, %v1645_v3  ;;  %v1249_v37 = vadd.f32 %v1239_v31, %v1127_v7 }
 0x141   : > { %v1320_v20 = vpop.f32.mrf.mxu2  ;;  %v1674_v42 = vadd.f32 %v1673_v21, %v1667_v63 }
 0x142   : > { %v1511_v5 = vpop.f32.mrf.mxu3  ;;  %v1633_v26 = vpop.f32.mrf.mxu0  ;;  %v1331_v2 = vadd.f32 %v1320_v20, %v1248_v61 }
 0x143   : > { %v1524_v51 = vadd.f32 %v1511_v5, %v1330_v25 }
 0x145   : > { %v1646_v27 = vadd.f32 %v1633_v26, %v1524_v51 }
 0x147   : > { %v1653_v11 = vadd.f32 %v1652_v52, %v1646_v27  ;;  %v1668_v28 = vmul.f32 %v1646_v27, %v1646_v27  ;;  %v2030_v43 = vpack.c.bf16 %v1646_v27, %v1645_v3 }
 0x149   : > { %v1675_v33 = vadd.f32 %v1674_v42, %v1668_v28  ;;  %2053 = vst [vmem:[%s2545_s14 + $0x10] sm:$0xff] %v2030_v43   ;;  %v1322_v34 = vpop.f32.mrf.mxu2 }
 0x14a   : > { %v1514_v16 = vpop.f32.mrf.mxu3  ;;  %v1636_v59 = vpop.f32.mrf.mxu0  ;;  %v1332_v39 = vadd.f32 %v1322_v34, %v1249_v37 }
 0x14b   : > { %v1525_v54 = vadd.f32 %v1514_v16, %v1331_v2 }
 0x14d   : > { %v1647_v38 = vadd.f32 %v1636_v59, %v1525_v54 }
 0x14f   : > { %v1654_v40 = vadd.f32 %v1653_v11, %v1647_v38  ;;  %v1669_v41 = vmul.f32 %v1647_v38, %v1647_v38 }
 0x151   : > { %v1676_v45 = vadd.f32 %v1675_v33, %v1669_v41 }
 0x152   : > { %v1516_v46 = vpop.f32.mrf.mxu3  ;;  %v1638_v55 = vpop.f32.mrf.mxu0 }
 0x153   : > { %v1526_v49 = vadd.f32 %v1516_v46, %v1332_v39 }
 0x155   : > { %v1648_v48 = vadd.f32 %v1638_v55, %v1526_v49 }
 0x157   : > { %v1655_v50 = vadd.f32 %v1654_v40, %v1648_v48  ;;  %v1670_v58 = vmul.f32 %v1648_v48, %v1648_v48  ;;  %v2035_v44 = vpack.c.bf16 %v1648_v48, %v1647_v38 }
 0x159   : > { %v1656_v35 = vrot.slane %v1655_v50, 4  ;;  %v1677_v6 = vadd.f32 %v1676_v45, %v1670_v58  ;;  %2054 = vst [vmem:[%s2545_s14 + $0x18] sm:$0xff] %v2035_v44  }
 0x15b   : > { %v1657_v14 = vadd.f32 %v1656_v35, %v1655_v50  ;;  %v1678_v12 = vrot.slane %v1677_v6, 4 }
 0x15d   : > { %v1658_v15 = vrot.slane %v1657_v14, 2  ;;  %v1679_v60 = vadd.f32 %v1678_v12, %v1677_v6 }
 0x15f   : > { %v1659_v13 = vadd.f32 %v1658_v15, %v1657_v14  ;;  %v1680_v10 = vrot.slane %v1679_v60, 2 }
 0x161   : > { %v1660_v17 = vrot.slane %v1659_v13, 1  ;;  %v1681_v18 = vadd.f32 %v1680_v10, %v1679_v60 }
 0x163   : > { %v1661_v1 = vadd.f32 %v1660_v17, %v1659_v13  ;;  %v1682_v19 = vrot.slane %v1681_v18, 1 }
 0x165   : > { %1662 = vst [vmem:[%s181_s18] sm:$0x1] %v1661_v1  ;;  %v1683_v29 = vadd.f32 %v1682_v19, %v1681_v18 }
 0x167   : > { %1684 = vst [vmem:[%s181_s18 + $0x1] sm:$0x1] %v1683_v29 }
 0x168 PF: > { %s14_s12 = sadd.s32 1, %s2073_s12  }
 0x169   : > { %p11_p4 = scmp.ge.s32.totalorder %s14_s12, 4  }
 0x16b   :  { %13 = sbr.rel (!%p11_p4) target bundleno = 1 (0x1), region = 83 }

// kernel: down_forward.4
= control target key start
LH: loop header
LB: loop body
LE: loop exit
PB: predicated region body
PF: predicated region fallthrough
CT: control target
= control target key end

     0   :  { %s2924_s18 = smov 0   ;;  %s3555_s0 = inlined_call_operand.vmem [shape: bf16[2,8,8,128], index: 0, kind: input, shape index: {}]   ;;  %s3556_s1 = inlined_call_operand.vmem [shape: f32[1,128], index: 1, kind: input, shape index: {}]   ;;  %s3557_s2 = inlined_call_operand.vmem [shape: f32[1,128], index: 2, kind: input, shape index: {}]   ;;  %s3558_s3 = inlined_call_operand.vmem [shape: bf16[9,128,128], index: 3, kind: input, shape index: {}]   ;;  %s3559_s4 = inlined_call_operand.vmem [shape: bf16[2,8,8,128], index: 4, kind: output, shape index: {0}]   ;;  %s3560_s5 = inlined_call_operand.vmem [shape: f32[2,2,128], index: 5, kind: output, shape index: {1}]  }
   0x1 LB: > { %s2230_s19 = sadd.s32 4294967295, %s2891_s18   ;;  %p2234_p0 = scmp.ge.s32.totalorder %s2891_s18, 1  ;;  %s2891_s18 = sphi %s2924_s18, %s16_s18  }
   0x2   : > { %p190_p1 = scmp.lt.s32.totalorder %s2891_s18, 3 }
   0x4   : > { %p191_p2 = pnand %p2234_p0, %p190_p1 }
   0x5   : > { %p222_p3 = scmp.lt.s32.totalorder (!%p191_p2), %s2230_s19, 1 }
   0x6   : > { %194 = sbr.rel (%p191_p2) target bundleno = 358 (0x166), region = 36 }
   0xb   : > { %v2751_v0 = vld [vmem:[%s3558_s3 + $0x78] sm:$0xff]  ;;  %v2893_v2 = vmov 0   ;;  %v2750_v3 = vld [vmem:[%s3558_s3 + $0x70] sm:$0xff]  ;;  %s3570_s19 = smov (!%p222_p3, %s2230_s19), 1  ;;  %v2749_v6 = vld [vmem:[%s3558_s3 + $0x68] sm:$0xff]  ;;  %vm394_vm0 = vcmask 1043456  }
   0xc   : > { %v2759_v1 = vld [vmem:[%s3558_s3 + $0xb8] sm:$0xff]  ;;  %301 = vst [vmem:[#allocation2 + $0x20] sm:$0xf] %v2893_v2  ;;  %2858 = vmatpush.bf16.msra.mxu1 %v2751_v0  ;;  %676 = vmatpush.bf16.msra.mxu0 %v2751_v0  ;;  %v2758_v4 = vld [vmem:[%s3558_s3 + $0xb0] sm:$0xff]  ;;  %s2730_s30 = sshll.u32 %s3570_s19, 5  ;;  %v2757_v10 = vld [vmem:[%s3558_s3 + $0xa8] sm:$0xff] }
   0xd   : > { %302 = vst [vmem:[#allocation2 + $0x24] sm:$0x1] %v2893_v2  ;;  %946 = vmatpush.bf16.msra.mxu2 %v2759_v1  ;;  %v2771_v5 = vld [vmem:[%s3558_s3 + $0xf8] sm:$0xff]  ;;  %v2770_v7 = vld [vmem:[%s3558_s3 + $0xf0] sm:$0xff]  ;;  %s226_s12 = scalar_lea.vmem %s3555_s0, %s2730_s30  ;;  %v2971_v13 = vld [vmem:[%s3556_s1] ss:$0 sm:$0xff]  ;;  %s3533_s17 = scalar_lea.vmem %s3559_s4, %s2730_s30 }
   0xe   : > { %303 = vst [vmem:[#allocation2 + $0x28] sm:$0xf] %v2893_v2  ;;  %1080 = vmatpush.bf16.msra.mxu3 %v2771_v5  ;;  %v2852_v8 = vld [vmem:[%s226_s12 + $0x8] sm:$0xff]   ;;  %v2853_v9 = vld [vmem:[%s226_s12 + $0x10] sm:$0xff]   ;;  %v2976_v14 = vld [vmem:[%s3557_s2] ss:$0 sm:$0xff] }
   0xf   : > { %304 = vst [vmem:[#allocation2 + $0x2c] sm:$0x1] %v2893_v2  ;;  %v2823_v11 = vunpack.c.h.bf16 %v2852_v8  ;;  %v2826_v12 = vunpack.c.l.bf16 %v2853_v9  ;;  %v2827_v15 = vunpack.c.h.bf16 %v2853_v9  ;;  %v2822_v16 = vunpack.c.l.bf16 %v2852_v8  ;;  %v2769_v17 = vld [vmem:[%s3558_s3 + $0xe8] sm:$0xff]  ;;  %v2985_v20 = vld [vmem:[%s226_s12] sm:$0xff]   ;;  %v2992_v23 = vld [vmem:[%s226_s12 + $0x18] sm:$0xff]   ;;  %s2239_s30 = sshll.u32 %s3570_s19, 1 }
  0x10   : > { %2859 = vmatpush.bf16.msra.mxu1 %v2750_v3  ;;  %677 = vmatpush.bf16.msra.mxu0 %v2750_v3  ;;  %293 = vst [vmem:[#allocation2] sm:$0xf] %v2893_v2  ;;  %v2748_v21 = vld [vmem:[%s3558_s3 + $0x60] sm:$0xff]  ;;  %v2818_v22 = vunpack.c.l.bf16 %v2985_v20  ;;  %v2830_v29 = vunpack.c.l.bf16 %v2992_v23  ;;  %vm400_vm1 = vcmask 1040384   ;;  %vm395_vm2 = vsmask.f32 7938  ;;  %s235_s22 = scalar_lea.vmem %s3560_s5, %s2239_s30 }
  0x11   : > { %947 = vmatpush.bf16.msra.mxu2 %v2758_v4  ;;  %v261_v18 = vmul.f32 %v2971_v13, %v2823_v11  ;;  %v262_v19 = vmul.f32 %v2971_v13, %v2826_v12  ;;  %294 = vst [vmem:[#allocation2 + $0x4] sm:$0x1] %v2893_v2  ;;  %v263_v24 = vmul.f32 %v2971_v13, %v2827_v15  ;;  %v2756_v26 = vld [vmem:[%s3558_s3 + $0xa0] sm:$0xff]  ;;  %v2747_v33 = vld [vmem:[%s3558_s3 + $0x58] sm:$0xff]  ;;  %vm401_vm3 = vsmask.f32 256  ;;  %vm3039_vm7 = vmand %vm394_vm0, %vm395_vm2 }
  0x12   : > { %1081 = vmatpush.bf16.msra.mxu3 %v2770_v7  ;;  %295 = vst [vmem:[#allocation2 + $0x8] sm:$0xf] %v2893_v2  ;;  %v260_v25 = vmul.f32 %v2971_v13, %v2822_v16  ;;  %v258_v30 = vmul.f32 %v2971_v13, %v2818_v22  ;;  %v2755_v37 = vld [vmem:[%s3558_s3 + $0x98] sm:$0xff]  ;;  %v2768_v40 = vld [vmem:[%s3558_s3 + $0xe0] sm:$0xff]  ;;  %v264_v41 = vmul.f32 %v2971_v13, %v2830_v29  ;;  %v2819_v42 = vunpack.c.h.bf16 %v2985_v20  ;;  %v2746_v43 = vld [vmem:[%s3558_s3 + $0x50] sm:$0xff] }
  0x13   : > { %v272_v27 = vadd.f32 %v2976_v14, %v261_v18  ;;  %v273_v28 = vadd.f32 %v2976_v14, %v262_v19  ;;  %296 = vst [vmem:[#allocation2 + $0xc] sm:$0x1] %v2893_v2  ;;  %v3012_v35 = vadd.f32 %v2976_v14, %v263_v24  ;;  %v2754_v50 = vld [vmem:[%s3558_s3 + $0x90] sm:$0xff]  ;;  %v418_v51 = vld [vmem:[#allocation2 + $0x20] sm:$0xf]  ;;  %vm830_vm6 = vcmask 1042432   ;;  %vm3052_vm8 = vmand %vm400_vm1, %vm401_vm3 }
  0x14   : > { %2860 = vmatpush.bf16.msra.mxu1 %v2749_v6  ;;  %678 = vmatpush.bf16.msra.mxu0 %v2749_v6  ;;  %297 = vst [vmem:[#allocation2 + $0x10] sm:$0xf] %v2893_v2  ;;  %v269_v34 = vadd.f32 %v2976_v14, %v258_v30  ;;  %v3015_v36 = vadd.f32 %v2976_v14, %v260_v25  ;;  %v421_v52 = vld [vmem:[#allocation2 + $0x24] sm:$0x1]  ;;  %vm480_vm4 = vsmask.f32 3328 }
  0x15   : > { %948 = vmatpush.bf16.msra.mxu2 %v2757_v10  ;;  %v280_v31 = vmax.f32 %v272_v27, 0.0  ;;  %v281_v32 = vmax.f32 %v273_v28, 0.0  ;;  %298 = vst [vmem:[#allocation2 + $0x14] sm:$0x1] %v2893_v2  ;;  %v424_v53 = vld [vmem:[#allocation2 + $0x28] sm:$0xf]  ;;  %v3047_v62 = vadd.f32 %v2976_v14, %v264_v41  ;;  %v259_v63 = vmul.f32 %v2971_v13, %v2819_v42 }
  0x16   : > { %1082 = vmatpush.bf16.msra.mxu3 %v2769_v17  ;;  %299 = vst [vmem:[#allocation2 + $0x18] sm:$0xf] %v2893_v2  ;;  %v277_v44 = vmax.f32 %v269_v34, 0.0  ;;  %vm481_vm5 = vsmask.f32 7440  ;;  %v282_v55 = vmax.f32 %v3012_v35, 0.0 }
  0x17   : > { %v288_v38 = vpack.c.bf16 %v280_v31, %v280_v31  ;;  %v289_v39 = vpack.c.bf16 %v281_v32, %v281_v32  ;;  %300 = vst [vmem:[#allocation2 + $0x1c] sm:$0x1] %v2893_v2  ;;  %v448_v45 = vld [vmem:[#allocation2] sm:$0xf]  ;;  %v279_v56 = vmax.f32 %v3015_v36, 0.0  ;;  %v2745_v6 = vld [vmem:[%s3558_s3 + $0x48] sm:$0xff]  ;;  %v270_v34 = vadd.f32 %v2976_v14, %v259_v63  ;;  %vm3120_vm11 = vmor %vm480_vm4, %vm481_vm5 }
  0x18   : > { %2861 = vmatpush.bf16.msra.mxu1 %v2748_v21  ;;  %679 = vmatpush.bf16.msra.mxu0 %v2748_v21  ;;  %305 = vst [vmem:[#allocation2 + $0x30] sm:$0xf] %v2893_v2  ;;  %v285_v54 = vpack.c.bf16 %v277_v44, %v277_v44  ;;  %v427_v60 = vld [vmem:[#allocation2 + $0x2c] sm:$0x1]  ;;  %v3044_v61 = vld [vmem:[#allocation2 + $0x4] sm:$0x1]  ;;  %v290_v25 = vpack.c.bf16 %v282_v55, %v282_v55 }
  0x19   : > { %949 = vmatpush.bf16.msra.mxu2 %v2756_v26  ;;  %v338_v46 = vshrl.u32 %v288_v38, 16  ;;  %v341_v47 = vshll.u32 %v288_v38, 16  ;;  %v346_v48 = vshrl.u32 %v289_v39, 16  ;;  %v349_v49 = vshll.u32 %v289_v39, 16  ;;  %306 = vst [vmem:[#allocation2 + $0x34] sm:$0x1] %v2893_v2 }
  0x1a   : > { %1083 = vmatpush.bf16.msra.mxu3 %v2768_v40  ;;  %307 = vst [vmem:[#allocation2 + $0x38] sm:$0xf] %v2893_v2  ;;  %v314_v1 = vshrl.u32 %v285_v54, 16  ;;  %v317_v3 = vshll.u32 %v285_v54, 16  ;;  %v484_v4 = vshrl.u32 %v448_v45, 16  ;;  %v487_v5 = vshll.u32 %v448_v45, 16 }
  0x1b   : > { %v340_v57 = vrot.slane %v338_v46, 7  ;;  %v348_v58 = vrot.slane %v346_v48, 7  ;;  %308 = vst [vmem:[#allocation2 + $0x3c] sm:$0x1] %v2893_v2  ;;  %v2767_v11 = vld [vmem:[%s3558_s3 + $0xd8] sm:$0xff]  ;;  %v493_v17 = vshll.u32 %v3044_v61, 16 }
  0x1c   : > { %2862 = vmatpush.bf16.msra.mxu1 %v2747_v33  ;;  %680 = vmatpush.bf16.msra.mxu0 %v2747_v33  ;;  %309 = vst [vmem:[#allocation2 + $0x40] sm:$0xf] %v2893_v2  ;;  %v316_v12 = vrot.slane %v314_v1, 7  ;;  %v486_v15 = vrot.slane %v484_v4, 4  ;;  %v489_v16 = vrot.slane %v487_v5, 5  ;;  %v2753_v21 = vld [vmem:[%s3558_s3 + $0x88] sm:$0xff] }
  0x1d   : > { %950 = vmatpush.bf16.msra.mxu2 %v2755_v37  ;;  %v343_v7 = vor.u32 %v341_v47, %v340_v57  ;;  %v344_v8 = vrot.slane %v340_v57, 4  ;;  %v351_v9 = vor.u32 %v349_v49, %v348_v58  ;;  %v352_v10 = vrot.slane %v348_v58, 4  ;;  %310 = vst [vmem:[#allocation2 + $0x44] sm:$0x1] %v2893_v2  ;;  %v397_v22 = vld [vmem:[#allocation2 + $0x8] sm:$0xf] }
  0x1e   : > { %311 = vst [vmem:[#allocation2 + $0x48] sm:$0xf] %v2893_v2  ;;  %v806_v24 = vld [vmem:[#allocation2] sm:$0xe]  ;;  %v319_v27 = vor.u32 %v317_v3, %v316_v12  ;;  %v320_v28 = vrot.slane %v316_v12, 4  ;;  %v490_v30 = vor.u32 %v489_v16, %v486_v15  ;;  %1084 = vmatpush.bf16.msra.mxu3 %v2767_v11  ;;  %v2766_v31 = vld [vmem:[%s3558_s3 + $0xd0] sm:$0xff]  ;;  %v3109_v47 = vpack.c.bf16 %v279_v56, %v279_v56 }
  0x1f   : > { %v419_v18 = vsel %vm3039_vm7, %v343_v7, %v418_v51  ;;  %v422_v19 = vsel %vm3052_vm8, %v344_v8, %v421_v52  ;;  %v425_v20 = vsel %vm3039_vm7, %v351_v9, %v424_v53  ;;  %v428_v26 = vsel %vm3052_vm8, %v352_v10, %v427_v60  ;;  %v403_v29 = vld [vmem:[#allocation2 + $0xc] sm:$0x1]  ;;  %v2744_v35 = vld [vmem:[%s3558_s3 + $0x40] sm:$0xff]  ;;  %v2743_v41 = vld [vmem:[%s3558_s3 + $0x38] sm:$0xff]  ;;  %312 = vst [vmem:[#allocation2 + $0x4c] sm:$0x1] %v2893_v2 }
  0x20   : > { %2863 = vmatpush.bf16.msra.mxu1 %v2746_v43  ;;  %681 = vmatpush.bf16.msra.mxu0 %v2746_v43  ;;  %420 = vst [vmem:[#allocation2 + $0x20] sm:$0xf] %v419_v18  ;;  %v3080_v32 = vrot.slane %v493_v17, 5  ;;  %vm831_vm9 = vcmask 1046532   ;;  %v2336_v33 = vrot.slane %v806_v24, 9  ;;  %v398_v37 = vsel %vm3039_vm7, %v319_v27, %v397_v22  ;;  %v2752_v42 = vld [vmem:[%s3558_s3 + $0x80] sm:$0xff] }
  0x21   : > { %951 = vmatpush.bf16.msra.mxu2 %v2754_v50  ;;  %423 = vst [vmem:[#allocation2 + $0x24] sm:$0x1] %v422_v19  ;;  %v3088_v38 = vrot.slane %v490_v30, 4  ;;  %v835_v39 = vrot.slane %v3044_v61, 5  ;;  %v283_v40 = vmax.f32 %v3047_v62, 0.0  ;;  %v404_v43 = vsel %vm3052_vm8, %v320_v28, %v403_v29  ;;  %vm3102_vm10 = vmor %vm830_vm6, %vm831_vm9  ;;  %v2779_v48 = vld [vmem:[%s3558_s3 + $0x138] sm:$0xff] }
  0x22   : > { %426 = vst [vmem:[#allocation2 + $0x28] sm:$0xf] %v425_v20  ;;  %v354_v45 = vshrl.u32 %v290_v25, 16  ;;  %v357_v46 = vshll.u32 %v290_v25, 16  ;;  %1085 = vmatpush.bf16.msra.mxu3 %v2766_v31  ;;  %v2765_v49 = vld [vmem:[%s3558_s3 + $0xc8] sm:$0xff]  ;;  %v2742_v2 = vld [vmem:[%s3558_s3 + $0x30] sm:$0xff] }
  0x23   : > { %429 = vst [vmem:[#allocation2 + $0x2c] sm:$0x1] %v428_v26  ;;  %v291_v50 = vpack.c.bf16 %v283_v40, %v283_v40  ;;  %v430_v52 = vld [vmem:[#allocation2 + $0x30] sm:$0xf]  ;;  %v278_v53 = vmax.f32 %v270_v34, 0.0  ;;  %v496_v54 = vsel %vm3120_vm11, %v3088_v38, %v3080_v32  ;;  %v3133_v55 = vsel %vm3102_vm10, %v2336_v33, %v835_v39  ;;  %v2799_v1 = vld [vmem:[%s3558_s3 + $0x1b8] sm:$0xff] }
  0x24   : > { %2864 = vmatpush.bf16.msra.mxu1 %v2745_v6  ;;  %682 = vmatpush.bf16.msra.mxu0 %v2745_v6  ;;  %399 = vst [vmem:[#allocation2 + $0x8] sm:$0xf] %v398_v37  ;;  %v356_v36 = vrot.slane %v354_v45, 7  ;;  %v2778_v56 = vld [vmem:[%s3558_s3 + $0x130] sm:$0xff]  ;;  %v2764_v3 = vld [vmem:[%s3558_s3 + $0xc0] sm:$0xff]  ;;  %v330_v5 = vshrl.u32 %v3109_v47, 16  ;;  %v882_v40 = vunpack.c.l.b16 %v3133_v55 }
  0x25   : > { %952 = vmatpush.bf16.msra.mxu2 %v2753_v21  ;;  %405 = vst [vmem:[#allocation2 + $0xc] sm:$0x1] %v404_v43  ;;  %v362_v57 = vshrl.u32 %v291_v50, 16  ;;  %v365_v58 = vshll.u32 %v291_v50, 16  ;;  %v433_v60 = vld [vmem:[#allocation2 + $0x34] sm:$0x1]  ;;  %v3144_v4 = vpack.c.bf16 %v278_v53, %v278_v53 }
  0x26   : > { %v359_v62 = vor.u32 %v357_v46, %v356_v36  ;;  %v360_v63 = vrot.slane %v356_v36, 4  ;;  %1086 = vmatpush.bf16.msra.mxu3 %v2765_v49  ;;  %v333_v10 = vshll.u32 %v3109_v47, 16  ;;  %v2741_v15 = vld [vmem:[%s3558_s3 + $0x28] sm:$0xff]  ;;  %v436_v25 = vld [vmem:[#allocation2 + $0x38] sm:$0xf]  ;;  %v2740_v53 = vld [vmem:[%s3558_s3 + $0x20] sm:$0xff] }
  0x27   : > { %v452_v61 = vld [vmem:[#allocation2 + $0x20] sm:$0xf]  ;;  %v364_v9 = vrot.slane %v362_v57, 7  ;;  %v322_v18 = vshrl.u32 %v3144_v4, 16  ;;  %v439_v26 = vld [vmem:[#allocation2 + $0x3c] sm:$0x1] }
  0x28   : > { %2865 = vmatpush.bf16.msra.mxu1 %v2744_v35  ;;  %683 = vmatpush.bf16.msra.mxu0 %v2744_v35  ;;  %v3147_v6 = vld [vmem:[#allocation2 + $0x24] sm:$0x1]  ;;  %v540_v7 = vshrl.u32 %v452_v61, 16  ;;  %v543_v8 = vshll.u32 %v452_v61, 16  ;;  %v431_v16 = vsel %vm3039_vm7, %v359_v62, %v430_v52  ;;  %v434_v17 = vsel %vm3052_vm8, %v360_v63, %v433_v60  ;;  %v2777_v29 = vld [vmem:[%s3558_s3 + $0x128] sm:$0xff]  ;;  %v2798_v32 = vld [vmem:[%s3558_s3 + $0x1b0] sm:$0xff] }
  0x29   : > { %953 = vmatpush.bf16.msra.mxu2 %v2752_v42  ;;  %v453_v11 = vld [vmem:[#allocation2 + $0x28] sm:$0xf]  ;;  %v549_v12 = vshll.u32 %v3147_v6, 16  ;;  %v367_v30 = vor.u32 %v365_v58, %v364_v9  ;;  %v368_v31 = vrot.slane %v364_v9, 4  ;;  %432 = vst [vmem:[#allocation2 + $0x30] sm:$0xf] %v431_v16 }
  0x2a   : > { %v3159_v19 = vld [vmem:[#allocation2 + $0x2c] sm:$0x1]  ;;  %v542_v20 = vrot.slane %v540_v7, 4  ;;  %v545_v21 = vrot.slane %v543_v8, 5  ;;  %v554_v22 = vshrl.u32 %v453_v11, 16  ;;  %v557_v24 = vshll.u32 %v453_v11, 16  ;;  %1087 = vmatpush.bf16.msra.mxu3 %v2764_v3 }
  0x2b   : > { %v551_v27 = vrot.slane %v549_v12, 5  ;;  %v563_v28 = vshll.u32 %v3159_v19, 16  ;;  %v449_v37 = vld [vmem:[#allocation2 + $0x8] sm:$0xf]  ;;  %435 = vst [vmem:[#allocation2 + $0x34] sm:$0x1] %v434_v17  ;;  %v437_v55 = vsel %vm3039_vm7, %v367_v30, %v436_v25  ;;  %v612_v11 = vunpack.c.l.b16 %v496_v54 }
  0x2c   : > { %777 = vmatpush.bf16.msrb.mxu1 %v2743_v41  ;;  %1326 = vmatpush.bf16.msrb.mxu0 %v2779_v48  ;;  %v546_v33 = vor.u32 %v545_v21, %v542_v20  ;;  %v556_v34 = vrot.slane %v554_v22, 4  ;;  %v559_v35 = vrot.slane %v557_v24, 5  ;;  %v807_v39 = vld [vmem:[#allocation2 + $0x8] sm:$0xe]  ;;  %v473_v42 = vld [vmem:[#allocation2 + $0xc] sm:$0x1] }
  0x2d   : > { %1635 = vmatpush.bf16.msrb.mxu2 %v2799_v1  ;;  %v565_v41 = vrot.slane %v563_v28, 5  ;;  %v498_v43 = vshrl.u32 %v449_v37, 16  ;;  %v501_v45 = vshll.u32 %v449_v37, 16  ;;  %v2337_v46 = vrot.slane %v807_v39, 9  ;;  %438 = vst [vmem:[#allocation2 + $0x38] sm:$0xf] %v437_v55 }
  0x2e   : > { %v547_v48 = vrot.slane %v546_v33, 4  ;;  %v560_v49 = vor.u32 %v559_v35, %v556_v34  ;;  %v507_v50 = vshll.u32 %v473_v42, 16  ;;  %v2776_v62 = vld [vmem:[%s3558_s3 + $0x120] sm:$0xff]  ;;  %v324_v7 = vrot.slane %v322_v18, 7  ;;  %v406_v8 = vld [vmem:[#allocation2 + $0x10] sm:$0xf] }
  0x2f   : > { %v500_v36 = vrot.slane %v498_v43, 4  ;;  %v503_v52 = vrot.slane %v501_v45, 5  ;;  %v332_v16 = vrot.slane %v330_v5, 7  ;;  %v409_v17 = vld [vmem:[#allocation2 + $0x14] sm:$0x1]  ;;  %v2739_v24 = vld [vmem:[%s3558_s3 + $0x18] sm:$0xff] }
  0x30   : > { %778 = vmatpush.bf16.msrb.mxu1 %v2742_v2  ;;  %1327 = vmatpush.bf16.msrb.mxu0 %v2778_v56  ;;  %v839_v2 = vrot.slane %v473_v42, 5  ;;  %v440_v56 = vsel %vm3052_vm8, %v368_v31, %v439_v26  ;;  %v552_v57 = vsel %vm3120_vm11, %v547_v48, %v551_v27  ;;  %v561_v58 = vrot.slane %v560_v49, 4  ;;  %v454_v12 = vld [vmem:[#allocation2 + $0x30] sm:$0xf]  ;;  %v412_v25 = vld [vmem:[#allocation2 + $0x18] sm:$0xf] }
  0x31   : > { %v509_v60 = vrot.slane %v507_v50, 5  ;;  %v616_v63 = vunpack.c.l.b16 %v552_v57  ;;  %v504_v1 = vor.u32 %v503_v52, %v500_v36  ;;  %441 = vst [vmem:[#allocation2 + $0x3c] sm:$0x1] %v440_v56  ;;  %v568_v22 = vshrl.u32 %v454_v12, 16  ;;  %v415_v26 = vld [vmem:[#allocation2 + $0x1c] sm:$0x1]  ;;  %1636 = vmatpush.bf16.msrb.mxu2 %v2798_v32 }
  0x32   : > { %v840_v61 = vsel %vm3102_vm10, %v2337_v46, %v839_v2  ;;  %v566_v9 = vsel %vm3120_vm11, %v561_v58, %v565_v41  ;;  %v571_v38 = vshll.u32 %v454_v12, 16  ;;  %v335_v5 = vor.u32 %v333_v10, %v332_v16  ;;  %v2775_v27 = vld [vmem:[%s3558_s3 + $0x118] sm:$0xff]  ;;  %v3206_v31 = vld [vmem:[#allocation2 + $0x34] sm:$0x1]  ;;  %v2797_v45 = vld [vmem:[%s3558_s3 + $0x1a8] sm:$0xff] }
  0x33   : > { %v883_v3 = vunpack.c.l.b16 %v840_v61  ;;  %v617_v20 = vunpack.c.l.b16 %v566_v9  ;;  %v505_v21 = vrot.slane %v504_v1, 4  ;;  %v2807_v28 = vld [vmem:[%s3558_s3 + $0x1f8] sm:$0xff]  ;;  %v570_v33 = vrot.slane %v568_v22, 4  ;;  %v3223_v46 = vld [vmem:[#allocation2 + $0x8] sm:$0xf]  ;;  %v2774_v36 = vld [vmem:[%s3558_s3 + $0x110] sm:$0xff] }
  0x34   : > { %779 = vmatpush.bf16.msrb.mxu1 %v2741_v15  ;;  %1328 = vmatpush.bf16.msrb.mxu0 %v2777_v29  ;;  %v325_v15 = vshll.u32 %v3144_v4, 16  ;;  %v328_v4 = vrot.slane %v324_v7, 4  ;;  %v336_v34 = vrot.slane %v332_v16, 4  ;;  %v573_v10 = vrot.slane %v571_v38, 5  ;;  %v455_v39 = vld [vmem:[#allocation2 + $0x38] sm:$0xf] }
  0x35   : > { %v890_v18 = vpack.c.b16 %v883_v3, %v882_v40  ;;  %v622_v29 = vpack.c.b16 %v617_v20, %v616_v63  ;;  %v510_v30 = vsel %vm3120_vm11, %v505_v21, %v509_v60  ;;  %v577_v35 = vshll.u32 %v3206_v31, 16  ;;  %1881 = vmatpush.bf16.msrb.mxu3 %v2807_v28  ;;  %v2738_v40 = vld [vmem:[%s3558_s3 + $0x10] sm:$0xff]  ;;  %1637 = vmatpush.bf16.msrb.mxu2 %v2797_v45  ;;  %v2410_v60 = vld [vmem:[#allocation2 + $0x8] sm:$0xf]  ;;  %v2772_v16 = vld [vmem:[%s3558_s3 + $0x100] sm:$0xff] }
  0x36   : > { %v327_v54 = vor.u32 %v325_v15, %v324_v7  ;;  %v613_v47 = vunpack.c.l.b16 %v510_v30  ;;  %v410_v41 = vsel %vm3052_vm8, %v328_v4, %v409_v17  ;;  %v413_v42 = vsel %vm3039_vm7, %v335_v5, %v412_v25  ;;  %v2737_v61 = vld [vmem:[%s3558_s3 + $0x8] sm:$0xff]  ;;  %v2736_v15 = vld [vmem:[%s3558_s3] sm:$0xff]  ;;  %v2787_v30 = vld [vmem:[%s3558_s3 + $0x178] sm:$0xff] }
  0x37   : > { %954 = vmatmul.bf16.vlgmr.msra.gmra.mxu2 %v890_v18  ;;  %694 = vmatmul.bf16.vlgmr.msra.gmra.mxu1 %v622_v29  ;;  %v416_v43 = vsel %vm3052_vm8, %v336_v34, %v415_v26  ;;  %v574_v50 = vor.u32 %v573_v10, %v570_v33  ;;  %v582_v2 = vshrl.u32 %v455_v39, 16  ;;  %411 = vst [vmem:[#allocation2 + $0x14] sm:$0x1] %v410_v41  ;;  %v579_v52 = vrot.slane %v577_v35, 5  ;;  %v2796_v35 = vld [vmem:[%s3558_s3 + $0x1a0] sm:$0xff] }
  0x38   : > { %780 = vmatpush.bf16.msrb.mxu1 %v2740_v53  ;;  %1329 = vmatpush.bf16.msrb.mxu0 %v2776_v62  ;;  %v407_v37 = vsel %vm3039_vm7, %v327_v54, %v406_v8  ;;  %v620_v48 = vpack.c.b16 %v613_v47, %v612_v11  ;;  %v3225_v49 = vld [vmem:[#allocation2 + $0x3c] sm:$0x1]  ;;  %v585_v53 = vshll.u32 %v455_v39, 16  ;;  %414 = vst [vmem:[#allocation2 + $0x18] sm:$0xf] %v413_v42  ;;  %v2773_v62 = vld [vmem:[%s3558_s3 + $0x108] sm:$0xff] }
  0x39   : > { %408 = vst [vmem:[#allocation2 + $0x10] sm:$0xf] %v407_v37  ;;  %v591_v55 = vshll.u32 %v3225_v49, 16  ;;  %v575_v56 = vrot.slane %v574_v50, 4  ;;  %v584_v57 = vrot.slane %v582_v2, 4  ;;  %v1134_v63 = vshrl.u32 %v3223_v46, 16  ;;  %1638 = vmatpush.bf16.msrb.mxu2 %v2796_v35 }
  0x3a   : > { %684 = vmatmul.bf16.vlgmr.msra.gmra.mxu0 %v620_v48  ;;  %417 = vst [vmem:[#allocation2 + $0x1c] sm:$0x1] %v416_v43  ;;  %v587_v58 = vrot.slane %v585_v53, 5  ;;  %v1137_v8 = vshll.u32 %v3223_v46, 16  ;;  %v2805_v42 = vld [vmem:[%s3558_s3 + $0x1e8] sm:$0xff]  ;;  %v2786_v53 = vld [vmem:[%s3558_s3 + $0x170] sm:$0xff] }
  0x3b   : > { %v580_v1 = vsel %vm3120_vm11, %v575_v56, %v579_v52  ;;  %v593_v7 = vrot.slane %v591_v55, 5  ;;  %v2784_v35 = vld [vmem:[%s3558_s3 + $0x160] sm:$0xff]  ;;  %v3375_v59 = vld [vmem:[#allocation2 + $0x34] sm:$0x1] }
  0x3c   : > { %781 = vmatpush.bf16.msrb.mxu1 %v2739_v24  ;;  %1330 = vmatpush.bf16.msrb.mxu0 %v2775_v27  ;;  %v588_v3 = vor.u32 %v587_v58, %v584_v57  ;;  %v2806_v24 = vld [vmem:[%s3558_s3 + $0x1f0] sm:$0xff]  ;;  %v618_v25 = vunpack.c.l.b16 %v580_v1  ;;  %v1139_v52 = vrot.slane %v1137_v8, 5 }
  0x3d   : > { %1882 = vmatpush.bf16.msrb.mxu3 %v2806_v24  ;;  %v2761_v24 = vld [vmem:[#allocation2 + $0x1c] sm:$0xf0] }
  0x3e   : > { %v589_v17 = vrot.slane %v588_v3, 4  ;;  %v474_v20 = vld [vmem:[#allocation2 + $0x14] sm:$0x1]  ;;  %v2795_v3 = vld [vmem:[%s3558_s3 + $0x198] sm:$0xff] }
  0x3f   : > { %v451_v32 = vld [vmem:[#allocation2 + $0x18] sm:$0xf]  ;;  %v521_v38 = vshll.u32 %v474_v20, 16  ;;  %1639 = vmatpush.bf16.msrb.mxu2 %v2795_v3  ;;  %v812_v3 = vld [vmem:[#allocation2 + $0x30] sm:$0xe] }
  0x40   : > { %782 = vmatpush.bf16.msrb.mxu1 %v2738_v40  ;;  %1331 = vmatpush.bf16.msrb.mxu0 %v2774_v36  ;;  %v450_v9 = vld [vmem:[#allocation2 + $0x10] sm:$0xf]  ;;  %v809_v54 = vld [vmem:[#allocation2 + $0x18] sm:$0xe]  ;;  %v594_v5 = vsel %vm3120_vm11, %v589_v17, %v593_v7  ;;  %v526_v29 = vshrl.u32 %v451_v32, 16  ;;  %v529_v47 = vshll.u32 %v451_v32, 16 }
  0x41   : > { %v2760_v11 = vld [vmem:[#allocation2 + $0xc] sm:$0xf0]  ;;  %v512_v21 = vshrl.u32 %v450_v9, 16  ;;  %v515_v18 = vshll.u32 %v450_v9, 16  ;;  %v475_v26 = vld [vmem:[#allocation2 + $0x1c] sm:$0x1]  ;;  %v619_v33 = vunpack.c.l.b16 %v594_v5  ;;  %1883 = vmatpush.bf16.msrb.mxu3 %v2805_v42 }
  0x42   : > { %v808_v12 = vld [vmem:[#allocation2 + $0x10] sm:$0xe]  ;;  %v2411_v22 = vor.u32 %v2760_v11, %v2410_v60  ;;  %v523_v34 = vrot.slane %v521_v38, 5  ;;  %v535_v10 = vshll.u32 %v475_v26, 16  ;;  %v528_v39 = vrot.slane %v526_v29, 4  ;;  %v3278_v7 = vld [vmem:[%s3558_s3 + $0x238] sm:$0xff] }
  0x43   : > { %v2338_v4 = vrot.slane %v808_v12, 9  ;;  %v514_v27 = vrot.slane %v512_v21, 4  ;;  %v517_v28 = vrot.slane %v515_v18, 5  ;;  %v843_v40 = vrot.slane %v474_v20, 5  ;;  %v1119_v48 = vld [vmem:[#allocation2 + $0x10] sm:$0xf] }
  0x44   : > { %783 = vmatpush.bf16.msrb.mxu1 %v2737_v61  ;;  %1332 = vmatpush.bf16.msrb.mxu0 %v2773_v62  ;;  %v2339_v41 = vrot.slane %v809_v54, 9  ;;  %v623_v43 = vpack.c.b16 %v619_v33, %v618_v25  ;;  %v531_v45 = vrot.slane %v529_v47, 5  ;;  %v847_v46 = vrot.slane %v475_v26, 5  ;;  %v3270_v62 = vld [vmem:[#allocation2 + $0xc] sm:$0x1] }
  0x45   : > { %1088 = vmatmul.bf16.vlgmr.msra.gmra.mxu3 %v2411_v22  ;;  %v518_v37 = vor.u32 %v517_v28, %v514_v27  ;;  %v844_v2 = vsel %vm3102_vm10, %v2338_v4, %v843_v40  ;;  %v1136_v36 = vrot.slane %v1134_v63, 4  ;;  %v537_v56 = vrot.slane %v535_v10, 5  ;;  %v810_v9 = vld [vmem:[#allocation2 + $0x20] sm:$0xe]  ;;  %v811_v11 = vld [vmem:[#allocation2 + $0x28] sm:$0xe] }
  0x46   : > { %v532_v55 = vor.u32 %v531_v45, %v528_v39  ;;  %v848_v57 = vsel %vm3102_vm10, %v2339_v41, %v847_v46  ;;  %v884_v58 = vunpack.c.l.b16 %v844_v2  ;;  %v1148_v63 = vshrl.u32 %v1119_v48, 16  ;;  %v2785_v21 = vld [vmem:[%s3558_s3 + $0x168] sm:$0xff]  ;;  %v2414_v22 = vld [vmem:[#allocation2 + $0x18] sm:$0xf]  ;;  %v2290_v33 = vld [vmem:[#allocation2] sm:$0xf] }
  0x47   : > { %v519_v50 = vrot.slane %v518_v37, 4  ;;  %699 = vmatmul.bf16.gmra.mxu1 %v623_v43  ;;  %v885_v61 = vunpack.c.l.b16 %v848_v57  ;;  %v1151_v1 = vshll.u32 %v1119_v48, 16  ;;  %v1143_v25 = vshll.u32 %v3270_v62, 16  ;;  %v2732_v37 = vld [vmem:[#allocation2 + $0x4] sm:$0xf0]  ;;  %v3308_v43 = vld [vmem:[%s3558_s3 + $0x230] sm:$0xff] }
  0x48   : > { %784 = vmatpush.bf16.msrb.mxu1 %v2736_v15  ;;  %1333 = vmatpush.bf16.msrb.mxu0 %v2772_v16  ;;  %v533_v8 = vrot.slane %v532_v55, 4  ;;  %v3280_v16 = vld [vmem:[#allocation2 + $0x14] sm:$0x1]  ;;  %v1150_v17 = vrot.slane %v1148_v63, 4  ;;  %v1140_v38 = vor.u32 %v1139_v52, %v1136_v36  ;;  %v2340_v54 = vrot.slane %v810_v9, 9 }
  0x49   : > { %v524_v60 = vsel %vm3120_vm11, %v519_v50, %v523_v34  ;;  %v891_v15 = vpack.c.b16 %v885_v61, %v884_v58  ;;  %v1153_v20 = vrot.slane %v1151_v1, 5  ;;  %v851_v4 = vrot.slane %v3147_v6, 5  ;;  %v1121_v34 = vld [vmem:[#allocation2 + $0x18] sm:$0xf]  ;;  %v2804_v6 = vld [vmem:[%s3558_s3 + $0x1e0] sm:$0xff] }
  0x4a   : > { %v614_v12 = vunpack.c.l.b16 %v524_v60  ;;  %v538_v18 = vsel %vm3120_vm11, %v533_v8, %v537_v56  ;;  %v1157_v26 = vshll.u32 %v3280_v16, 16  ;;  %v2341_v27 = vrot.slane %v811_v11, 9  ;;  %v1123_v45 = vld [vmem:[#allocation2 + $0x20] sm:$0xf]  ;;  %1884 = vmatpush.bf16.msrb.mxu3 %v2804_v6  ;;  %v2803_v50 = vld [vmem:[%s3558_s3 + $0x1d8] sm:$0xff] }
  0x4b   : > { %v615_v32 = vunpack.c.l.b16 %v538_v18  ;;  %959 = vmatmul.bf16.gmra.mxu2 %v891_v15  ;;  %v1154_v5 = vor.u32 %v1153_v20, %v1150_v17  ;;  %v855_v28 = vrot.slane %v3159_v19, 5  ;;  %v1141_v47 = vrot.slane %v1140_v38, 4  ;;  %v2794_v19 = vld [vmem:[%s3558_s3 + $0x190] sm:$0xff]  ;;  %v3320_v61 = vld [vmem:[#allocation2 + $0x1c] sm:$0x1] }
  0x4c   : > { %1500 = vmatpush.bf16.msra.mxu1 %v2787_v30  ;;  %2055 = vmatpush.bf16.msra.mxu0 %v3278_v7  ;;  %v2415_v30 = vor.u32 %v2761_v24, %v2414_v22  ;;  %v852_v10 = vsel %vm3102_vm10, %v2340_v54, %v851_v4  ;;  %v1145_v39 = vrot.slane %v1143_v25, 5  ;;  %v1159_v41 = vrot.slane %v1157_v26, 5  ;;  %v2783_v11 = vld [vmem:[%s3558_s3 + $0x158] sm:$0xff]  ;;  %v2418_v18 = vld [vmem:[#allocation2 + $0x28] sm:$0xf]  ;;  %v2792_v24 = vld [vmem:[%s3558_s3 + $0x180] sm:$0xff] }
  0x4d   : > { %v621_v29 = vpack.c.b16 %v615_v32, %v614_v12  ;;  %v1155_v40 = vrot.slane %v1154_v5, 4  ;;  %v856_v42 = vsel %vm3102_vm10, %v2341_v27, %v855_v28  ;;  %v1162_v46 = vshrl.u32 %v1121_v34, 16  ;;  %1640 = vmatpush.bf16.msrb.mxu2 %v2794_v19  ;;  %v2793_v12 = vld [vmem:[%s3558_s3 + $0x188] sm:$0xff]  ;;  %v3334_v22 = vld [vmem:[#allocation2 + $0x24] sm:$0x1] }
  0x4e   : > { %v1165_v48 = vshll.u32 %v1121_v34, 16  ;;  %v2291_v2 = vor.u32 %v2732_v37, %v2290_v33  ;;  %v886_v36 = vunpack.c.l.b16 %v852_v10  ;;  %v887_v52 = vunpack.c.l.b16 %v856_v42  ;;  %1885 = vmatpush.bf16.msrb.mxu3 %v2803_v50  ;;  %v2762_v32 = vld [vmem:[#allocation2 + $0x2c] sm:$0xf0]  ;;  %v2733_v34 = vld [vmem:[#allocation2 + $0x14] sm:$0xf0] }
  0x4f   : > { %689 = vmatmul.bf16.gmra.mxu0 %v621_v29  ;;  %v1146_v55 = vsel %vm3120_vm11, %v1141_v47, %v1145_v39  ;;  %v1160_v56 = vsel %vm3120_vm11, %v1155_v40, %v1159_v41  ;;  %v1176_v57 = vshrl.u32 %v1123_v45, 16  ;;  %v1179_v58 = vshll.u32 %v1123_v45, 16  ;;  %v2294_v33 = vld [vmem:[#allocation2 + $0x10] sm:$0xf]  ;;  %v445_v50 = vld [vmem:[#allocation2 + $0x44] sm:$0x1] }
  0x50   : > { %1501 = vmatpush.bf16.msra.mxu1 %v2786_v53  ;;  %2056 = vmatpush.bf16.msra.mxu0 %v3308_v43  ;;  %v2831_v53 = vunpack.c.h.bf16 %v2992_v23  ;;  %v1164_v63 = vrot.slane %v1162_v46, 4  ;;  %v1167_v1 = vrot.slane %v1165_v48, 5  ;;  %v1262_v8 = vunpack.c.l.b16 %v1146_v55  ;;  %v1127_v37 = vld [vmem:[#allocation2 + $0x30] sm:$0xf]  ;;  %v442_v48 = vld [vmem:[#allocation2 + $0x40] sm:$0xf] }
  0x51   : > { %v1263_v9 = vunpack.c.l.b16 %v1160_v56  ;;  %v892_v23 = vpack.c.b16 %v887_v52, %v886_v36  ;;  %v1178_v17 = vrot.slane %v1176_v57, 4  ;;  %v1181_v20 = vrot.slane %v1179_v58, 5  ;;  %1641 = vmatpush.bf16.msrb.mxu2 %v2793_v12  ;;  %v2802_v41 = vld [vmem:[%s3558_s3 + $0x1d0] sm:$0xff] }
  0x52   : > { %v265_v60 = vmul.f32 %v2971_v13, %v2831_v53  ;;  %v3331_v13 = vld [vmem:[%s3558_s3 + $0x228] sm:$0xff]  ;;  %v1168_v38 = vor.u32 %v1167_v1, %v1164_v63  ;;  %v1171_v54 = vshll.u32 %v3320_v61, 16  ;;  %v2342_v4 = vrot.slane %v812_v3, 9  ;;  %v2782_v42 = vld [vmem:[%s3558_s3 + $0x150] sm:$0xff]  ;;  %1886 = vmatpush.bf16.msrb.mxu3 %v2802_v41 }
  0x53   : > { %v1270_v5 = vpack.c.b16 %v1263_v9, %v1262_v8  ;;  %v863_v27 = vrot.slane %v3225_v49, 5  ;;  %v1182_v29 = vor.u32 %v1181_v20, %v1178_v17  ;;  %v2419_v47 = vor.u32 %v2762_v32, %v2418_v18  ;;  %v1672_v9 = vld [vmem:[#allocation2 + $0x10] sm:$0xf] }
  0x54   : > { %1502 = vmatpush.bf16.msra.mxu1 %v2785_v21  ;;  %v276_v15 = vadd.f32 %v2976_v14, %v265_v60  ;;  %v813_v21 = vld [vmem:[#allocation2 + $0x38] sm:$0xe]  ;;  %v859_v14 = vrot.slane %v3206_v31, 5  ;;  %2057 = vmatpush.bf16.msra.mxu0 %v3331_v13  ;;  %v1173_v19 = vrot.slane %v1171_v54, 5  ;;  %v1125_v31 = vld [vmem:[#allocation2 + $0x28] sm:$0xf]  ;;  %v2295_v55 = vor.u32 %v2733_v34, %v2294_v33 }
  0x55   : > { %1093 = vmatmul.bf16.gmra.mxu3 %v2415_v30  ;;  %v2343_v26 = vrot.slane %v813_v21, 9  ;;  %v1185_v30 = vshll.u32 %v3334_v22, 16  ;;  %1642 = vmatpush.bf16.msrb.mxu2 %v2792_v24  ;;  %v1183_v45 = vrot.slane %v1182_v29, 4  ;;  %v1190_v52 = vshrl.u32 %v1125_v31, 16  ;;  %v2801_v60 = vld [vmem:[%s3558_s3 + $0x1c8] sm:$0xff] }
  0x56   : > { %v284_v25 = vmax.f32 %v276_v15, 0.0  ;;  %v860_v49 = vsel %vm3102_vm10, %v2342_v4, %v859_v14  ;;  %v1193_v53 = vshll.u32 %v1125_v31, 16  ;;  %v1204_v1 = vshrl.u32 %v1127_v37, 16  ;;  %v3373_v15 = vld [vmem:[#allocation2 + $0x2c] sm:$0x1]  ;;  %1887 = vmatpush.bf16.msrb.mxu3 %v2801_v60  ;;  %v2811_v4 = vld [vmem:[%s3558_s3 + $0x218] sm:$0xff] }
  0x57   : > { %785 = vmatmul.bf16.vlgmr.msrb.gmra.mxu1 %v2291_v2  ;;  %v864_v39 = vsel %vm3102_vm10, %v2343_v26, %v863_v27  ;;  %v1187_v46 = vrot.slane %v1185_v30, 5  ;;  %v888_v57 = vunpack.c.l.b16 %v860_v49  ;;  %v1207_v3 = vshll.u32 %v1127_v37, 16  ;;  %v2781_v54 = vld [vmem:[%s3558_s3 + $0x148] sm:$0xff]  ;;  %v2800_v14 = vld [vmem:[%s3558_s3 + $0x1c0] sm:$0xff] }
  0x58   : > { %1503 = vmatpush.bf16.msra.mxu1 %v2784_v35  ;;  %v292_v28 = vpack.c.bf16 %v284_v25, %v284_v25  ;;  %v1169_v35 = vrot.slane %v1168_v38, 4  ;;  %v889_v58 = vunpack.c.l.b16 %v864_v39  ;;  %v1192_v17 = vrot.slane %v1190_v52, 4  ;;  %v2734_v39 = vld [vmem:[#allocation2 + $0x24] sm:$0xf0] }
  0x59   : > { %2866 = vmatpush.bf16.msra.mxu2 %v3278_v7  ;;  %v3358_v7 = vld [vmem:[%s3558_s3 + $0x220] sm:$0xff]  ;;  %v1195_v20 = vrot.slane %v1193_v53, 5  ;;  %v1689_v21 = vshrl.u32 %v1672_v9, 16  ;;  %v1692_v0 = vshll.u32 %v1672_v9, 16  ;;  %v1206_v32 = vrot.slane %v1204_v1, 4 }
  0x5a   : > { %v370_v10 = vshrl.u32 %v292_v28, 16  ;;  %v373_v6 = vshll.u32 %v292_v28, 16  ;;  %v1174_v56 = vsel %vm3120_vm11, %v1169_v35, %v1173_v19  ;;  %2058 = vmatpush.bf16.msra.mxu0 %v3358_v7  ;;  %v1209_v38 = vrot.slane %v1207_v3, 5  ;;  %v2422_v28 = vld [vmem:[#allocation2 + $0x38] sm:$0xf]  ;;  %1888 = vmatpush.bf16.msrb.mxu3 %v2800_v14  ;;  %v2809_v3 = vld [vmem:[%s3558_s3 + $0x208] sm:$0xff] }
  0x5b   : > { %964 = vmatmul.bf16.gmra.mxu2 %v892_v23  ;;  %v1674_v23 = vld [vmem:[#allocation2 + $0x18] sm:$0xf]  ;;  %v1264_v12 = vunpack.c.l.b16 %v1174_v56  ;;  %v1199_v26 = vshll.u32 %v3373_v15, 16  ;;  %v1213_v27 = vshll.u32 %v3375_v59, 16  ;;  %v1691_v29 = vrot.slane %v1689_v21, 4 }
  0x5c   : > { %1504 = vmatpush.bf16.msra.mxu1 %v2783_v11  ;;  %v372_v40 = vrot.slane %v370_v10, 7  ;;  %v1188_v11 = vsel %vm3120_vm11, %v1183_v45, %v1187_v46  ;;  %v1703_v18 = vshrl.u32 %v1674_v23, 16  ;;  %v1706_v24 = vshll.u32 %v1674_v23, 16  ;;  %v3389_v35 = vld [vmem:[#allocation2 + $0x14] sm:$0x1] }
  0x5d   : > { %2867 = vmatpush.bf16.msra.mxu2 %v3308_v43  ;;  %v1265_v25 = vunpack.c.l.b16 %v1188_v11  ;;  %v893_v43 = vpack.c.b16 %v889_v58, %v888_v57  ;;  %v1694_v30 = vrot.slane %v1692_v0, 5  ;;  %v2298_v19 = vld [vmem:[#allocation2 + $0x20] sm:$0xf]  ;;  %v1201_v49 = vrot.slane %v1199_v26, 5  ;;  %v1678_v57 = vld [vmem:[#allocation2 + $0x28] sm:$0xf] }
  0x5e   : > { %v375_v2 = vor.u32 %v373_v6, %v372_v40  ;;  %v376_v36 = vrot.slane %v372_v40, 4  ;;  %2059 = vmatpush.bf16.msra.mxu0 %v2811_v4  ;;  %v1705_v33 = vrot.slane %v1703_v18, 4  ;;  %v1708_v34 = vrot.slane %v1706_v24, 5  ;;  %v1129_v40 = vld [vmem:[#allocation2 + $0x38] sm:$0xf] }
  0x5f   : > { %1334 = vmatmul.bf16.vlgmr.msrb.gmra.mxu0 %v1270_v5  ;;  %v1196_v5 = vor.u32 %v1195_v20, %v1192_v17  ;;  %v1210_v6 = vor.u32 %v1209_v38, %v1206_v32  ;;  %v1695_v41 = vor.u32 %v1694_v30, %v1691_v29  ;;  %v2299_v52 = vor.u32 %v2734_v39, %v2298_v19  ;;  %v1676_v56 = vld [vmem:[#allocation2 + $0x20] sm:$0xf]  ;;  %v2578_v9 = vld [vmem:[#allocation2 + $0x10] sm:$0xf]  ;;  %v2788_v17 = vld [vmem:[#allocation2 + $0x14] sm:$0xf0] }
  0x60   : > { %1505 = vmatpush.bf16.msra.mxu1 %v2782_v42  ;;  %v443_v63 = vsel %vm3039_vm7, %v375_v2, %v442_v48  ;;  %v446_v8 = vsel %vm3052_vm8, %v376_v36, %v445_v50  ;;  %v1698_v42 = vshll.u32 %v3389_v35, 16  ;;  %v1709_v45 = vor.u32 %v1708_v34, %v1705_v33  ;;  %v2780_v2 = vld [vmem:[%s3558_s3 + $0x140] sm:$0xff]  ;;  %v3422_v19 = vld [vmem:[#allocation2 + $0x2c] sm:$0x1] }
  0x61   : > { %444 = vst [vmem:[#allocation2 + $0x40] sm:$0xf] %v443_v63  ;;  %2868 = vmatpush.bf16.msra.mxu2 %v3331_v13  ;;  %v3391_v13 = vld [vmem:[#allocation2 + $0x1c] sm:$0x1]  ;;  %v1197_v37 = vrot.slane %v1196_v5, 4  ;;  %v1211_v48 = vrot.slane %v1210_v6, 4 }
  0x62   : > { %447 = vst [vmem:[#allocation2 + $0x44] sm:$0x1] %v446_v8  ;;  %v1712_v46 = vshll.u32 %v3391_v13, 16  ;;  %v1215_v50 = vrot.slane %v1213_v27, 5  ;;  %v1696_v58 = vrot.slane %v1695_v41, 4  ;;  %v1700_v60 = vrot.slane %v1698_v42, 5 }
  0x63   : > { %v1202_v53 = vsel %vm3120_vm11, %v1197_v37, %v1201_v49  ;;  %v1710_v63 = vrot.slane %v1709_v45, 4  ;;  %v1221_v23 = vshll.u32 %v1129_v40, 16  ;;  %v1717_v20 = vshrl.u32 %v1676_v56, 16  ;;  %v2808_v27 = vld [vmem:[%s3558_s3 + $0x200] sm:$0xff] }
  0x64   : > { %1506 = vmatpush.bf16.msra.mxu1 %v2781_v54  ;;  %v1714_v1 = vrot.slane %v1712_v46, 5  ;;  %v1216_v8 = vsel %vm3120_vm11, %v1211_v48, %v1215_v50  ;;  %v1720_v21 = vshll.u32 %v1676_v56, 16  ;;  %v1731_v0 = vshrl.u32 %v1678_v57, 16  ;;  %v3420_v6 = vld [vmem:[#allocation2 + $0x24] sm:$0x1] }
  0x65   : > { %1098 = vmatmul.bf16.gmra.mxu3 %v2419_v47  ;;  %v1271_v47 = vpack.c.b16 %v1265_v25, %v1264_v12  ;;  %2869 = vmatpush.bf16.msra.mxu2 %v3358_v7  ;;  %v2810_v7 = vld [vmem:[%s3558_s3 + $0x210] sm:$0xff]  ;;  %v1734_v18 = vshll.u32 %v1678_v57, 16  ;;  %v1266_v24 = vunpack.c.l.b16 %v1202_v53  ;;  %v1267_v25 = vunpack.c.l.b16 %v1216_v8  ;;  %v2735_v53 = vld [vmem:[#allocation2 + $0x34] sm:$0xf0] }
  0x66   : > { %2060 = vmatpush.bf16.msra.mxu0 %v2810_v7  ;;  %v1701_v32 = vsel %vm3120_vm11, %v1696_v58, %v1700_v60  ;;  %v1715_v38 = vsel %vm3120_vm11, %v1710_v63, %v1714_v1  ;;  %v2579_v54 = vor.u32 %v2788_v17, %v2578_v9  ;;  %v1223_v14 = vrot.slane %v1221_v23, 5  ;;  %v2302_v50 = vld [vmem:[#allocation2 + $0x30] sm:$0xf]  ;;  %v1682_v63 = vld [vmem:[#allocation2 + $0x38] sm:$0xf] }
  0x67   : > { %790 = vmatmul.bf16.gmra.mxu1 %v2295_v55  ;;  %v1218_v55 = vshrl.u32 %v1129_v40, 16  ;;  %v1719_v29 = vrot.slane %v1717_v20, 4  ;;  %v1722_v30 = vrot.slane %v1720_v21, 5  ;;  %v1733_v33 = vrot.slane %v1731_v0, 4  ;;  %v1680_v60 = vld [vmem:[#allocation2 + $0x30] sm:$0xf] }
  0x68   : > { %v2763_v10 = vld [vmem:[#allocation2 + $0x3c] sm:$0xf0]  ;;  %1507 = vmatpush.bf16.msra.mxu1 %v2780_v2  ;;  %v1736_v34 = vrot.slane %v1734_v18, 5  ;;  %v1726_v42 = vshll.u32 %v3420_v6, 16  ;;  %v1740_v46 = vshll.u32 %v3422_v19, 16  ;;  %v2303_v1 = vor.u32 %v2735_v53, %v2302_v50 }
  0x69   : > { %v2423_v31 = vor.u32 %v2763_v10, %v2422_v28  ;;  %v1131_v36 = vld [vmem:[#allocation2 + $0x40] sm:$0xf]  ;;  %2870 = vmatpush.bf16.msra.mxu2 %v2811_v4  ;;  %v3413_v4 = vld [vmem:[#allocation2 + $0x3c] sm:$0x1]  ;;  %v3418_v28 = vld [vmem:[#allocation2 + $0x44] sm:$0x1]  ;;  %v1818_v10 = vunpack.c.l.b16 %v1715_v38  ;;  %v1723_v41 = vor.u32 %v1722_v30, %v1719_v29 }
  0x6a   : > { %v1232_v11 = vshrl.u32 %v1131_v36, 16  ;;  %v1235_v12 = vshll.u32 %v1131_v36, 16  ;;  %2061 = vmatpush.bf16.msra.mxu0 %v2809_v3  ;;  %v1227_v49 = vshll.u32 %v3413_v4, 16  ;;  %v1241_v40 = vshll.u32 %v3418_v28, 16  ;;  %v2582_v9 = vld [vmem:[#allocation2 + $0x20] sm:$0xf] }
  0x6b   : > { %969 = vmatmul.bf16.gmra.mxu2 %v893_v43  ;;  %v1220_v43 = vrot.slane %v1218_v55, 4  ;;  %v1737_v45 = vor.u32 %v1736_v34, %v1733_v33  ;;  %v1724_v55 = vrot.slane %v1723_v41, 4  ;;  %v1728_v56 = vrot.slane %v1726_v42, 5  ;;  %v2789_v23 = vld [vmem:[#allocation2 + $0x24] sm:$0xf0] }
  0x6c   : > { %v1234_v5 = vrot.slane %v1232_v11, 4  ;;  %v1237_v26 = vrot.slane %v1235_v12, 5  ;;  %v1742_v58 = vrot.slane %v1740_v46, 5  ;;  %v1363_v11 = vld [vmem:[#allocation2 + $0x8] sm:$0xe]  ;;  %v1745_v21 = vshrl.u32 %v1680_v60, 16 }
  0x6d   : > { %2871 = vmatpush.bf16.msra.mxu2 %v2810_v7  ;;  %v1224_v37 = vor.u32 %v1223_v14, %v1220_v43  ;;  %v1229_v7 = vrot.slane %v1227_v49, 5  ;;  %v1738_v57 = vrot.slane %v1737_v45, 4  ;;  %v1729_v12 = vsel %vm3120_vm11, %v1724_v55, %v1728_v56  ;;  %v1364_v20 = vld [vmem:[#allocation2 + $0x10] sm:$0xe] }
  0x6e   : > { %2062 = vmatpush.bf16.msra.mxu0 %v2808_v27  ;;  %v1238_v39 = vor.u32 %v1237_v26, %v1234_v5  ;;  %v1748_v0 = vshll.u32 %v1680_v60, 16  ;;  %v1759_v18 = vshrl.u32 %v1682_v63, 16  ;;  %v1393_v43 = vrot.slane %v3280_v16, 5  ;;  %v1918_v49 = vld [vmem:[#allocation2 + $0x10] sm:$0xe] }
  0x6f   : > { %1339 = vmatmul.bf16.gmra.mxu0 %v1271_v47  ;;  %v1817_v47 = vunpack.c.l.b16 %v1701_v32  ;;  %v1225_v2 = vrot.slane %v1224_v37, 4  ;;  %v1743_v17 = vsel %vm3120_vm11, %v1738_v57, %v1742_v58  ;;  %v2504_v14 = vrot.slane %v1363_v11, 9  ;;  %v1684_v58 = vld [vmem:[#allocation2 + $0x40] sm:$0xf]  ;;  %v1686_v60 = vld [vmem:[#allocation2 + $0x48] sm:$0xf] }
  0x70   : > { %v1239_v36 = vrot.slane %v1238_v39, 4  ;;  %v2505_v5 = vrot.slane %v1364_v20, 9  ;;  %v1819_v26 = vunpack.c.l.b16 %v1729_v12  ;;  %v1747_v29 = vrot.slane %v1745_v21, 4  ;;  %v1919_v39 = vld [vmem:[#allocation2 + $0x18] sm:$0xe] }
  0x71   : > { %2872 = vmatpush.bf16.msra.mxu2 %v2809_v3  ;;  %v1825_v48 = vpack.c.b16 %v1818_v10, %v1817_v47  ;;  %v1230_v3 = vsel %vm3120_vm11, %v1225_v2, %v1229_v7  ;;  %v1750_v30 = vrot.slane %v1748_v0, 5  ;;  %v1761_v33 = vrot.slane %v1759_v18, 4  ;;  %v3438_v47 = vld [vmem:[#allocation2 + $0x34] sm:$0x1]  ;;  %v3440_v10 = vld [vmem:[#allocation2 + $0x3c] sm:$0x1] }
  0x72   : > { %v1268_v32 = vunpack.c.l.b16 %v1230_v3  ;;  %v1394_v16 = vsel %vm3102_vm10, %v2505_v5, %v1393_v43  ;;  %v1754_v41 = vshll.u32 %v3438_v47, 16  ;;  %v1768_v45 = vshll.u32 %v3440_v10, 16  ;;  %v2586_v3 = vld [vmem:[#allocation2 + $0x30] sm:$0xf] }
  0x73   : > { %v1944_v50 = vrot.slane %v3389_v35, 5  ;;  %v1948_v2 = vrot.slane %v3391_v13, 5  ;;  %v2672_v7 = vrot.slane %v1918_v49, 9  ;;  %v2790_v35 = vld [vmem:[#allocation2 + $0x34] sm:$0xf0]  ;;  %v1773_v11 = vshrl.u32 %v1684_v58, 16 }
  0x74   : > { %v1756_v53 = vrot.slane %v1754_v41, 5  ;;  %v1770_v56 = vrot.slane %v1768_v45, 5  ;;  %v1366_v13 = vld [vmem:[#allocation2 + $0x20] sm:$0xe]  ;;  %v1776_v12 = vshll.u32 %v1684_v58, 16  ;;  %v1790_v20 = vshll.u32 %v1686_v60, 16 }
  0x75   : > { %1103 = vmatmul.bf16.gmra.mxu3 %v2423_v31  ;;  %v1272_v31 = vpack.c.b16 %v1267_v25, %v1266_v24  ;;  %2873 = vmatpush.bf16.msra.mxu2 %v2808_v27  ;;  %v1762_v24 = vshll.u32 %v1682_v63, 16  ;;  %v1389_v25 = vrot.slane %v3270_v62, 5  ;;  %v1820_v27 = vunpack.c.l.b16 %v1743_v17  ;;  %v1368_v58 = vld [vmem:[#allocation2 + $0x30] sm:$0xe] }
  0x76   : > { %v1945_v63 = vsel %vm3102_vm10, %v2672_v7, %v1944_v50  ;;  %v1787_v17 = vshrl.u32 %v1686_v60, 16  ;;  %v2587_v18 = vor.u32 %v2790_v35, %v2586_v3  ;;  %v2507_v43 = vrot.slane %v1366_v13, 9 }
  0x77   : > { %795 = vmatmul.bf16.gmra.mxu1 %v2299_v52  ;;  %v1243_v52 = vrot.slane %v1241_v40, 5  ;;  %v1764_v34 = vrot.slane %v1762_v24, 5  ;;  %v1390_v62 = vsel %vm3102_vm10, %v2504_v14, %v1389_v25  ;;  %v1826_v37 = vpack.c.b16 %v1820_v27, %v1819_v26  ;;  %v1920_v14 = vld [vmem:[#allocation2 + $0x20] sm:$0xe] }
  0x78   : > { %v1751_v40 = vor.u32 %v1750_v30, %v1747_v29  ;;  %v1436_v46 = vunpack.c.l.b16 %v1390_v62  ;;  %v1991_v21 = vunpack.c.l.b16 %v1945_v63  ;;  %v1397_v25 = vrot.slane %v3320_v61, 5 }
  0x79   : > { %v1244_v8 = vsel %vm3120_vm11, %v1239_v36, %v1243_v52  ;;  %v1765_v42 = vor.u32 %v1764_v34, %v1761_v33  ;;  %v2673_v36 = vrot.slane %v1919_v39, 9  ;;  %v1775_v5 = vrot.slane %v1773_v11, 4  ;;  %v3460_v33 = vld [vmem:[#allocation2 + $0x44] sm:$0x1]  ;;  %v3462_v34 = vld [vmem:[#allocation2 + $0x4c] sm:$0x1] }
  0x7a   : > { %v1269_v38 = vunpack.c.l.b16 %v1244_v8  ;;  %v1752_v52 = vrot.slane %v1751_v40, 4  ;;  %v1365_v8 = vld [vmem:[#allocation2 + $0x18] sm:$0xe]  ;;  %v1778_v26 = vrot.slane %v1776_v12, 5  ;;  %v1789_v27 = vrot.slane %v1787_v17, 4 }
  0x7b   : > { %1643 = vmatmul.bf16.vlgmr.msrb.gmra.mxu2 %v2579_v54  ;;  %v2583_v54 = vor.u32 %v2789_v23, %v2582_v9  ;;  %v1766_v55 = vrot.slane %v1765_v42, 4  ;;  %v2506_v24 = vrot.slane %v1365_v8, 9  ;;  %v1792_v29 = vrot.slane %v1790_v20, 5  ;;  %v1924_v12 = vld [vmem:[#allocation2 + $0x40] sm:$0xe] }
  0x7c   : > { %v1757_v9 = vsel %vm3120_vm11, %v1752_v52, %v1756_v53  ;;  %v1779_v49 = vor.u32 %v1778_v26, %v1775_v5  ;;  %v1782_v39 = vshll.u32 %v3460_v33, 16  ;;  %v1796_v41 = vshll.u32 %v3462_v34, 16  ;;  %v1925_v17 = vld [vmem:[#allocation2 + $0x48] sm:$0xe] }
  0x7d   : > { %v1771_v23 = vsel %vm3120_vm11, %v1766_v55, %v1770_v56  ;;  %v1793_v40 = vor.u32 %v1792_v29, %v1789_v27  ;;  %v2590_v55 = vld [vmem:[#allocation2 + $0x40] sm:$0xf]  ;;  %v2791_v56 = vld [vmem:[#allocation2 + $0x44] sm:$0xf0]  ;;  %v1405_v8 = vrot.slane %v3373_v15, 5  ;;  %v2509_v13 = vrot.slane %v1368_v58, 9 }
  0x7e   : > { %v1784_v7 = vrot.slane %v1782_v39, 5  ;;  %v1922_v15 = vld [vmem:[#allocation2 + $0x30] sm:$0xe]  ;;  %v1964_v26 = vrot.slane %v3440_v10, 5  ;;  %v1370_v10 = vld [vmem:[#allocation2 + $0x40] sm:$0xe] }
  0x7f   : > { %1344 = vmatmul.bf16.gmra.mxu0 %v1272_v31  ;;  %v1273_v31 = vpack.c.b16 %v1269_v38, %v1268_v32  ;;  %v1401_v32 = vrot.slane %v3334_v22, 5  ;;  %v1821_v38 = vunpack.c.l.b16 %v1757_v9  ;;  %v1921_v22 = vld [vmem:[#allocation2 + $0x28] sm:$0xe]  ;;  %v1409_v9 = vrot.slane %v3375_v59, 5 }
  0x81   : > { %v1402_v61 = vsel %vm3102_vm10, %v2507_v43, %v1401_v32  ;;  %v1410_v51 = vsel %vm3102_vm10, %v2509_v13, %v1409_v9  ;;  %v1923_v43 = vld [vmem:[#allocation2 + $0x38] sm:$0xe] }
  0x82   : > { %v1439_v45 = vunpack.c.l.b16 %v1402_v61  ;;  %v2677_v5 = vrot.slane %v1923_v43, 9 }
  0x85   : > { %1889 = vmatmul.bf16.vlgmr.msrb.gmra.mxu3 %v1825_v48  ;;  %v1437_v48 = vunpack.c.l.b16 %v1394_v16  ;;  %v2674_v16 = vrot.slane %v1920_v14, 9  ;;  %v1960_v14 = vrot.slane %v3438_v47, 5  ;;  %v1965_v47 = vsel %vm3102_vm10, %v2677_v5, %v1964_v26 }
  0x87   : > { %800 = vmatmul.bf16.gmra.mxu1 %v2303_v1  ;;  %v1444_v57 = vpack.c.b16 %v1437_v48, %v1436_v46  ;;  %v1949_v1 = vsel %vm3102_vm10, %v2673_v36, %v1948_v2  ;;  %v2675_v46 = vrot.slane %v1921_v22, 9  ;;  %v1956_v48 = vrot.slane %v3422_v19, 5  ;;  %v1369_v22 = vld [vmem:[#allocation2 + $0x38] sm:$0xe] }
  0x88   : > { %v1992_v0 = vunpack.c.l.b16 %v1949_v1  ;;  %v1780_v2 = vrot.slane %v1779_v49, 4  ;;  %v1794_v36 = vrot.slane %v1793_v40, 4  ;;  %v2591_v1 = vor.u32 %v2791_v56, %v2590_v55 }
  0x89   : > { %v1957_v53 = vsel %vm3102_vm10, %v2675_v46, %v1956_v48  ;;  %v2510_v39 = vrot.slane %v1369_v22, 9  ;;  %v1413_v40 = vrot.slane %v3413_v4, 5 }
  0x8a   : > { %v1999_v30 = vpack.c.b16 %v1992_v0, %v1991_v21  ;;  %v1994_v63 = vunpack.c.l.b16 %v1957_v53  ;;  %v1785_v19 = vsel %vm3120_vm11, %v1780_v2, %v1784_v7  ;;  %v1968_v0 = vrot.slane %v3460_v33, 5 }
  0x8b   : > { %1648 = vmatmul.bf16.gmra.mxu2 %v2583_v54  ;;  %v1822_v54 = vunpack.c.l.b16 %v1771_v23  ;;  %v1823_v23 = vunpack.c.l.b16 %v1785_v19 }
  0x8d   : > { %v1827_v62 = vpack.c.b16 %v1822_v54, %v1821_v38  ;;  %v1441_v38 = vunpack.c.l.b16 %v1410_v51  ;;  %v2676_v54 = vrot.slane %v1922_v15, 9 }
  0x8f   : > { %1349 = vmatmul.bf16.gmra.mxu0 %v1273_v31  ;;  %v1398_v31 = vsel %vm3102_vm10, %v2506_v24, %v1397_v25  ;;  %v2678_v24 = vrot.slane %v1924_v12, 9  ;;  %v2679_v25 = vrot.slane %v1925_v17, 9  ;;  %v1961_v61 = vsel %vm3102_vm10, %v2676_v54, %v1960_v14 }
  0x90   : > { %v1438_v42 = vunpack.c.l.b16 %v1398_v31 }
  0x91   : > { %v1969_v27 = vsel %vm3102_vm10, %v2678_v24, %v1968_v0 }
  0x92   : > { %v1445_v52 = vpack.c.b16 %v1439_v45, %v1438_v42  ;;  %v1997_v33 = vunpack.c.l.b16 %v1969_v27  ;;  %v1417_v42 = vrot.slane %v3418_v28, 5 }
  0x95   : > { %1894 = vmatmul.bf16.gmra.mxu3 %v1826_v37  ;;  %v1952_v37 = vrot.slane %v3420_v6, 5  ;;  %v1798_v6 = vrot.slane %v1796_v41, 5  ;;  %v2511_v41 = vrot.slane %v1370_v10, 9 }
  0x97   : > { %1508 = vmatmul.bf16.vlgmr.msra.gmra.mxu1 %v1444_v57  ;;  %v1953_v50 = vsel %vm3102_vm10, %v2674_v16, %v1952_v37  ;;  %v1367_v57 = vld [vmem:[#allocation2 + $0x28] sm:$0xe]  ;;  %v1799_v3 = vsel %vm3120_vm11, %v1794_v36, %v1798_v6  ;;  %v1996_v16 = vunpack.c.l.b16 %v1965_v47  ;;  %v1418_v2 = vsel %vm3102_vm10, %v2511_v41, %v1417_v42 }
  0x98   : > { %v1993_v60 = vunpack.c.l.b16 %v1953_v50  ;;  %v2508_v35 = vrot.slane %v1367_v57, 9  ;;  %v1824_v11 = vunpack.c.l.b16 %v1799_v3  ;;  %v1414_v50 = vsel %vm3102_vm10, %v2510_v39, %v1413_v40 }
  0x99   : > { %v1442_v7 = vunpack.c.l.b16 %v1414_v50  ;;  %v1443_v36 = vunpack.c.l.b16 %v1418_v2 }
  0x9a   : > { %v2000_v20 = vpack.c.b16 %v1994_v63, %v1993_v60  ;;  %v1406_v21 = vsel %vm3102_vm10, %v2508_v35, %v1405_v8  ;;  %v1828_v59 = vpack.c.b16 %v1824_v11, %v1823_v23 }
  0x9b   : > { %1653 = vmatmul.bf16.gmra.mxu2 %v2587_v18  ;;  %v1972_v18 = vrot.slane %v3462_v34, 5  ;;  %v1440_v32 = vunpack.c.l.b16 %v1406_v21 }
  0x9d   : > { %v1973_v29 = vsel %vm3102_vm10, %v2679_v25, %v1972_v18 }
  0x9e   : > { %v1998_v34 = vunpack.c.l.b16 %v1973_v29 }
  0x9f   : > { %2063 = vmatmul.bf16.vlgmr.msra.gmra.mxu0 %v1999_v30  ;;  %v1446_v30 = vpack.c.b16 %v1441_v38, %v1440_v32 }
  0xa0   : > { %v2002_v37 = vpack.c.b16 %v1998_v34, %v1997_v33 }
  0xa5   : > { %1899 = vmatmul.bf16.gmra.mxu3 %v1827_v62  ;;  %v1995_v62 = vunpack.c.l.b16 %v1961_v61 }
  0xa7   : > { %1513 = vmatmul.bf16.gmra.mxu1 %v1445_v52  ;;  %v2001_v46 = vpack.c.b16 %v1996_v16, %v1995_v62  ;;  %v1447_v52 = vpack.c.b16 %v1443_v36, %v1442_v7 }
  0xab   : > { %1658 = vmatmul.bf16.gmra.mxu2 %v2591_v1 }
  0xaf   : > { %2068 = vmatmul.bf16.gmra.mxu0 %v2000_v20 }
  0xb4   : > { %v3494_v31 = vpop.f32.mrf.mxu1 }
  0xb5   : > { %1904 = vmatmul.bf16.gmra.mxu3 %v1828_v59 }
  0xb7   : > { %1518 = vmatmul.bf16.gmra.mxu1 %v1446_v30  ;;  %v685_v49 = vpop.f32.mrf.mxu0 }
  0xba   : > { %v955_v45 = vpop.f32.mrf.mxu2 }
  0xbb   : > { %2078 = vmatmul.bf16.vlgmr.msra.gmra.mxu2 %v2002_v37 }
  0xbc   : > { %v697_v48 = vpop.f32.mrf.mxu1 }
  0xbf   : > { %2073 = vmatmul.bf16.gmra.mxu0 %v2001_v46  ;;  %v687_v6 = vpop.f32.mrf.mxu0 }
  0xc2   : > { %v957_v53 = vpop.f32.mrf.mxu2 }
  0xc4   : > { %v700_v4 = vpop.f32.mrf.mxu1 }
  0xc7   : > { %1523 = vmatmul.bf16.gmra.mxu1 %v1447_v52 }
  0xc8   : > { %v1089_v55 = vpop.f32.mrf.mxu3 }
  0xcc   : > { %v690_v28 = vpop.f32.mrf.mxu0  ;;  %v702_v56 = vpop.f32.mrf.mxu1 }
  0xce   : > { %v960_v58 = vpop.f32.mrf.mxu2 }
  0xd0   : > { %v1091_v57 = vpop.f32.mrf.mxu3 }
  0xd4   : > { %v692_v60 = vpop.f32.mrf.mxu0  ;;  %v786_v63 = vpop.f32.mrf.mxu1 }
  0xd5   : > { %v787_v1 = vadd.f32 %v786_v63, %v685_v49 }
  0xd6   : > { %v962_v3 = vpop.f32.mrf.mxu2 }
  0xd7   : > { %v975_v44 = vadd.f32 %v955_v45, %v787_v1 }
  0xd8   : > { %v1094_v19 = vpop.f32.mrf.mxu3 }
  0xd9   : > { %v1109_v35 = vadd.f32 %v1089_v55, %v975_v44 }
  0xdc   : > { %v1335_v8 = vpop.f32.mrf.mxu0  ;;  %v788_v13 = vpop.f32.mrf.mxu1 }
  0xdd   : > { %v1355_v9 = vadd.f32 %v1335_v8, %v1109_v35  ;;  %v789_v23 = vadd.f32 %v788_v13, %v687_v6 }
  0xde   : > { %v965_v12 = vpop.f32.mrf.mxu2 }
  0xdf   : > { %v976_v17 = vadd.f32 %v957_v53, %v789_v23 }
  0xe0   : > { %v3506_v11 = vpop.f32.mrf.mxu3 }
  0xe1   : > { %v1110_v55 = vadd.f32 %v1091_v57, %v976_v17 }
  0xe4   : > { %v1337_v20 = vpop.f32.mrf.mxu0  ;;  %v791_v21 = vpop.f32.mrf.mxu1 }
  0xe5   : > { %v792_v51 = vadd.f32 %v791_v21, %v690_v28 }
  0xe6   : > { %v967_v18 = vpop.f32.mrf.mxu2 }
  0xe7   : > { %v977_v15 = vadd.f32 %v960_v58, %v792_v51 }
  0xe8   : > { %v1099_v0 = vpop.f32.mrf.mxu3 }
  0xe9   : > { %v1111_v24 = vadd.f32 %v1094_v19, %v977_v15 }
  0xec   : > { %v1340_v25 = vpop.f32.mrf.mxu0  ;;  %v793_v59 = vpop.f32.mrf.mxu1 }
  0xed   : > { %v1357_v43 = vadd.f32 %v1340_v25, %v1111_v24  ;;  %v794_v32 = vadd.f32 %v793_v59, %v692_v60 }
  0xee   : > { %v970_v54 = vpop.f32.mrf.mxu2 }
  0xef   : > { %v978_v14 = vadd.f32 %v962_v3, %v794_v32 }
  0xf0   : > { %v3508_v38 = vpop.f32.mrf.mxu3 }
  0xf4   : > { %v1342_v5 = vpop.f32.mrf.mxu0  ;;  %v796_v26 = vpop.f32.mrf.mxu1 }
  0xf5   : > { %v797_v27 = vadd.f32 %v796_v26, %v3494_v31 }
  0xf6   : > { %v972_v30 = vpop.f32.mrf.mxu2 }
  0xf7   : > { %v979_v33 = vadd.f32 %v965_v12, %v797_v27 }
  0xf8   : > { %v3511_v29 = vpop.f32.mrf.mxu3 }
  0xf9   : > { %v1113_v34 = vadd.f32 %v1099_v0, %v979_v33 }
  0xfc   : > { %v1345_v61 = vpop.f32.mrf.mxu0  ;;  %v798_v47 = vpop.f32.mrf.mxu1 }
  0xfd   : > { %v3513_v22 = vadd.f32 %v1345_v61, %v1113_v34  ;;  %v799_v10 = vadd.f32 %v798_v47, %v697_v48 }
  0xfe   : > { %v1644_v62 = vpop.f32.mrf.mxu2 }
  0xff   : > { %v980_v16 = vadd.f32 %v967_v18, %v799_v10 }
 0x100   : > { %v3515_v37 = vpop.f32.mrf.mxu3 }
 0x104   : > { %v3517_v49 = vpop.f32.mrf.mxu0  ;;  %v801_v39 = vpop.f32.mrf.mxu1 }
 0x105   : > { %v802_v40 = vadd.f32 %v801_v39, %v700_v4  ;;  %v1356_v4 = vadd.f32 %v1337_v20, %v1110_v55  ;;  %v1114_v39 = vadd.f32 %v3508_v38, %v980_v16 }
 0x106   : > { %v1646_v41 = vpop.f32.mrf.mxu2 }
 0x107   : > { %v3519_v31 = vadd.f32 %v970_v54, %v802_v40 }
 0x108   : > { %v1890_v42 = vpop.f32.mrf.mxu3 }
 0x10c   : > { %v3521_v45 = vpop.f32.mrf.mxu0  ;;  %v803_v46 = vpop.f32.mrf.mxu1 }
 0x10d   : > { %v804_v50 = vadd.f32 %v803_v46, %v702_v56 }
 0x10e   : > { %v1649_v2 = vpop.f32.mrf.mxu2 }
 0x10f   : > { %v3523_v7 = vadd.f32 %v972_v30, %v804_v50 }
 0x110   : > { %v1892_v48 = vpop.f32.mrf.mxu3 }
 0x114   : > { %v3525_v36 = vpop.f32.mrf.mxu0  ;;  %v1509_v6 = vpop.f32.mrf.mxu1 }
 0x115   : > { %v1529_v52 = vadd.f32 %v1509_v6, %v1355_v9  ;;  %v1112_v9 = vadd.f32 %v3506_v11, %v978_v14 }
 0x116   : > { %v1651_v53 = vpop.f32.mrf.mxu2 }
 0x117   : > { %v1664_v28 = vadd.f32 %v1644_v62, %v1529_v52  ;;  %v1358_v25 = vadd.f32 %v1342_v5, %v1112_v9 }
 0x118   : > { %v1895_v1 = vpop.f32.mrf.mxu3 }
 0x119   : > { %v1910_v19 = vadd.f32 %v1890_v42, %v1664_v28 }
 0x11c   : > { %v2064_v58 = vpop.f32.mrf.mxu0  ;;  %v1511_v60 = vpop.f32.mrf.mxu1 }
 0x11d   : > { %v1530_v63 = vadd.f32 %v1511_v60, %v1356_v4  ;;  %v2084_v35 = vadd.f32 %v2064_v58, %v1910_v19 }
 0x11e   : > { %v1654_v56 = vpop.f32.mrf.mxu2 }
 0x11f   : > { %v1665_v3 = vadd.f32 %v1646_v41, %v1530_v63  ;;  %v2106_v21 = vmul.f32 %v2084_v35, %v2084_v35 }
 0x120   : > { %v1897_v0 = vpop.f32.mrf.mxu3 }
 0x121   : > { %v1911_v44 = vadd.f32 %v1892_v48, %v1665_v3 }
 0x124   : > { %v2066_v8 = vpop.f32.mrf.mxu0  ;;  %v1514_v13 = vpop.f32.mrf.mxu1 }
 0x125   : > { %v2085_v23 = vadd.f32 %v2066_v8, %v1911_v44  ;;  %v1531_v12 = vadd.f32 %v1514_v13, %v1357_v43 }
 0x126   : > { %v1656_v15 = vpop.f32.mrf.mxu2 }
 0x127   : > { %v2092_v57 = vadd.f32 %v2085_v23, %v2084_v35  ;;  %v2107_v17 = vmul.f32 %v2085_v23, %v2085_v23  ;;  %v2835_v20 = vpack.c.bf16 %v2085_v23, %v2084_v35  ;;  %v1666_v51 = vadd.f32 %v1649_v2, %v1531_v12 }
 0x128   : > { %v1900_v30 = vpop.f32.mrf.mxu3  ;;  %v1360_v2 = vadd.f32 %v3517_v49, %v1114_v39 }
 0x129   : > { %v2114_v18 = vadd.f32 %v2107_v17, %v2106_v21  ;;  %2836 = vst [vmem:[%s3533_s17] sm:$0xff] %v2835_v20   ;;  %v1912_v24 = vadd.f32 %v1895_v1, %v1666_v51 }
 0x12c   : > { %v2069_v59 = vpop.f32.mrf.mxu0  ;;  %v1516_v11 = vpop.f32.mrf.mxu1 }
 0x12d   : > { %v2086_v43 = vadd.f32 %v2069_v59, %v1912_v24  ;;  %v1532_v32 = vadd.f32 %v1516_v11, %v1358_v25 }
 0x12e   : > { %v1659_v34 = vpop.f32.mrf.mxu2 }
 0x12f   : > { %v2093_v54 = vadd.f32 %v2092_v57, %v2086_v43  ;;  %v2108_v14 = vmul.f32 %v2086_v43, %v2086_v43  ;;  %v1667_v26 = vadd.f32 %v1651_v53, %v1532_v32 }
 0x130   : > { %v1902_v48 = vpop.f32.mrf.mxu3 }
 0x131   : > { %v2115_v27 = vadd.f32 %v2114_v18, %v2108_v14  ;;  %v1913_v33 = vadd.f32 %v1897_v0, %v1667_v26 }
 0x134   : > { %v2071_v61 = vpop.f32.mrf.mxu0  ;;  %v1519_v47 = vpop.f32.mrf.mxu1 }
 0x135   : > { %v2087_v10 = vadd.f32 %v2071_v61, %v1913_v33  ;;  %v1533_v62 = vadd.f32 %v1519_v47, %v3513_v22  ;;  %v1115_v22 = vadd.f32 %v3511_v29, %v3519_v31 }
 0x136   : > { %v1661_v28 = vpop.f32.mrf.mxu2 }
 0x137   : > { %v2094_v5 = vadd.f32 %v2093_v54, %v2087_v10  ;;  %v2109_v40 = vmul.f32 %v2087_v10, %v2087_v10  ;;  %v2840_v41 = vpack.c.bf16 %v2087_v10, %v2086_v43  ;;  %v1668_v42 = vadd.f32 %v1654_v56, %v1533_v62 }
 0x138   : > { %v1361_v63 = vadd.f32 %v3521_v45, %v1115_v22  ;;  %v1116_v56 = vadd.f32 %v3515_v37, %v3523_v7  ;;  %v1905_v44 = vpop.f32.mrf.mxu3 }
 0x139   : > { %v2116_v46 = vadd.f32 %v2115_v27, %v2109_v40  ;;  %2855 = vst [vmem:[%s3533_s17 + $0x8] sm:$0xff] %v2840_v41   ;;  %v1914_v50 = vadd.f32 %v1900_v30, %v1668_v42 }
 0x13a   : > { %v1362_v9 = vadd.f32 %v3525_v36, %v1116_v56 }
 0x13c   : > { %v2074_v6 = vpop.f32.mrf.mxu0  ;;  %v1521_v52 = vpop.f32.mrf.mxu1 }
 0x13d   : > { %v2088_v53 = vadd.f32 %v2074_v6, %v1914_v50  ;;  %v1534_v55 = vadd.f32 %v1521_v52, %v1360_v2 }
 0x13e   : > { %v2079_v31 = vpop.f32.mrf.mxu2 }
 0x13f   : > { %v2095_v4 = vadd.f32 %v2094_v5, %v2088_v53  ;;  %v2110_v38 = vmul.f32 %v2088_v53, %v2088_v53  ;;  %v1669_v16 = vadd.f32 %v1656_v15, %v1534_v55 }
 0x140   : > { %v1907_v7 = vpop.f32.mrf.mxu3 }
 0x141   : > { %v2117_v58 = vadd.f32 %v2116_v46, %v2110_v38  ;;  %v1915_v60 = vadd.f32 %v1902_v48, %v1669_v16 }
 0x144   : > { %v2076_v1 = vpop.f32.mrf.mxu0  ;;  %v1524_v19 = vpop.f32.mrf.mxu1 }
 0x145   : > { %v2089_v49 = vadd.f32 %v2076_v1, %v1915_v60  ;;  %v1535_v3 = vadd.f32 %v1524_v19, %v1361_v63 }
 0x146   : > { %v2081_v18 = vpop.f32.mrf.mxu2 }
 0x147   : > { %v2096_v35 = vadd.f32 %v2095_v4, %v2089_v49  ;;  %v2111_v8 = vmul.f32 %v2089_v49, %v2089_v49  ;;  %v2845_v13 = vpack.c.bf16 %v2089_v49, %v2088_v53  ;;  %v1670_v29 = vadd.f32 %v1659_v34, %v1535_v3 }
 0x149   : > { %v2118_v23 = vadd.f32 %v2117_v58, %v2111_v8  ;;  %2856 = vst [vmem:[%s3533_s17 + $0x10] sm:$0xff] %v2845_v13   ;;  %v1916_v12 = vadd.f32 %v1905_v44, %v1670_v29 }
 0x14b   : > { %v2090_v21 = vadd.f32 %v2079_v31, %v1916_v12 }
 0x14c   : > { %v1526_v45 = vpop.f32.mrf.mxu1 }
 0x14d   : > { %v2097_v57 = vadd.f32 %v2096_v35, %v2090_v21  ;;  %v2112_v17 = vmul.f32 %v2090_v21, %v2090_v21  ;;  %v1536_v20 = vadd.f32 %v1526_v45, %v1362_v9 }
 0x14f   : > { %v2119_v51 = vadd.f32 %v2118_v23, %v2112_v17  ;;  %v1671_v37 = vadd.f32 %v1661_v28, %v1536_v20 }
 0x151   : > { %v1917_v0 = vadd.f32 %v1907_v7, %v1671_v37 }
 0x153   : > { %v2091_v15 = vadd.f32 %v2081_v18, %v1917_v0 }
 0x155   : > { %v2098_v24 = vadd.f32 %v2097_v57, %v2091_v15  ;;  %v2113_v25 = vmul.f32 %v2091_v15, %v2091_v15  ;;  %v2850_v59 = vpack.c.bf16 %v2091_v15, %v2090_v21 }
 0x157   : > { %v2099_v11 = vrot.slane %v2098_v24, 4  ;;  %v2120_v43 = vadd.f32 %v2119_v51, %v2113_v25  ;;  %2857 = vst [vmem:[%s3533_s17 + $0x18] sm:$0xff] %v2850_v59  }
 0x159   : > { %v2100_v36 = vadd.f32 %v2099_v11, %v2098_v24  ;;  %v2121_v32 = vrot.slane %v2120_v43, 4 }
 0x15b   : > { %v2101_v54 = vrot.slane %v2100_v36, 2  ;;  %v2122_v14 = vadd.f32 %v2121_v32, %v2120_v43 }
 0x15d   : > { %v2102_v26 = vadd.f32 %v2101_v54, %v2100_v36  ;;  %v2123_v27 = vrot.slane %v2122_v14, 2 }
 0x15f   : > { %v2103_v30 = vrot.slane %v2102_v26, 1  ;;  %v2124_v33 = vadd.f32 %v2123_v27, %v2122_v14 }
 0x161   : > { %v2104_v34 = vadd.f32 %v2103_v30, %v2102_v26  ;;  %v2125_v61 = vrot.slane %v2124_v33, 1 }
 0x163   : > { %2105 = vst [vmem:[%s235_s22] sm:$0x1] %v2104_v34  ;;  %v2126_v47 = vadd.f32 %v2125_v61, %v2124_v33 }
 0x165   : > { %2127 = vst [vmem:[%s235_s22 + $0x1] sm:$0x1] %v2126_v47 }
 0x166 PF: > { %s16_s18 = sadd.s32 1, %s2891_s18  }
 0x167   : > { %p13_p4 = scmp.ge.s32.totalorder %s16_s18, 4  }
 0x169   :  { %15 = sbr.rel (!%p13_p4) target bundleno = 1 (0x1), region = 88 }

</bundles_post_ra>
